<compile_context>
chip_gen: v6e
topology: v6e:2x2x1
jax: 0.10.0
libtpu: 0.0.40
codegen_flags: <defaults>
</compile_context>

<pallas_src>
import functools
import math

import numpy as np
import jax
import jax.numpy as jnp
from jax.experimental import pallas as pl
from jax.experimental.pallas import tpu as pltpu


# --------------------------------------------------------------------------
# Pallas kernel: (Cp, K) @ (K, M) + bias (+ residual) (+ ReLU)
#   grid = (M/tm, K/tk):  M leading (parallel), K trailing (arbitrary).
# --------------------------------------------------------------------------
def _mm_kernel(w_ref, x_ref, b_ref, *rest, relu, has_residual):
    if has_residual:
        r_ref, o_ref, acc_ref = rest
    else:
        o_ref, acc_ref = rest

    k = pl.program_id(1)

    @pl.when(k == 0)
    def _():
        acc_ref[...] = jnp.zeros_like(acc_ref)

    acc_ref[...] += jnp.dot(w_ref[...], x_ref[...],
                            preferred_element_type=jnp.float32)

    @pl.when(k == pl.num_programs(1) - 1)
    def _():
        y = acc_ref[...] + b_ref[...]
        if has_residual:
            y = y + r_ref[...]
        if relu:
            y = jnp.maximum(y, 0.0)
        o_ref[...] = y.astype(o_ref.dtype)


def _round_up(x, m):
    return (x + m - 1) // m * m


def _pick_tk(kpad, max_tk=1024):
    """Largest multiple of 128 that divides kpad and is <= max_tk."""
    best, t = 128, 128
    while t <= min(kpad, max_tk):
        if kpad % t == 0:
            best = t
        t += 128
    return best


def matmul_bias_T(wT, colsT, b, residual=None, relu=False):
    """y = wT @ colsT + b (+ residual), optional ReLU.  Output (Cout, M).

    wT:    (Cout, K)  weight matrix (rows = output channels)
    colsT: (K, M)     im2col matrix, M = n*ho*wo on the lane axis
    b:     (Cout,)
    residual: optional (Cout, M), added in f32 before the store.
    """
    cout, K = wT.shape
    K2, M = colsT.shape
    assert K == K2

    cp = _round_up(cout, 8)                  # full-sublane output rows
    kpad = _round_up(K, 128)
    mpad0 = _round_up(M, 128)
    tm = min(512, mpad0)
    mpad = _round_up(M, tm)
    tk = _pick_tk(kpad)
    nm, nk = mpad // tm, kpad // tk

    # bf16 MXU operands, zero padding contributes nothing to the dot.
    wTp = jnp.pad(wT.astype(jnp.bfloat16), ((0, cp - cout), (0, kpad - K)))
    xTp = jnp.pad(colsT.astype(jnp.bfloat16), ((0, kpad - K), (0, mpad - M)))
    b2 = jnp.pad(b.astype(jnp.float32), (0, cp - cout)).reshape(cp, 1)

    in_specs = [
        pl.BlockSpec((cp, tk), lambda i, k: (0, k)),   # weights
        pl.BlockSpec((tk, tm), lambda i, k: (k, i)),   # im2col tile
        pl.BlockSpec((cp, 1), lambda i, k: (0, 0)),    # bias (resident)
    ]
    inputs = [wTp, xTp, b2]

    has_res = residual is not None
    if has_res:
        rTp = jnp.pad(residual.astype(jnp.float32),
                      ((0, cp - cout), (0, mpad - M)))
        in_specs.append(pl.BlockSpec((cp, tm), lambda i, k: (0, i)))
        inputs.append(rTp)

    kernel = functools.partial(_mm_kernel, relu=relu, has_residual=has_res)

    out = pl.pallas_call(
        kernel,
        out_shape=jax.ShapeDtypeStruct((cp, mpad), jnp.float32),
        grid_spec=pltpu.PrefetchScalarGridSpec(
            num_scalar_prefetch=0,
            grid=(nm, nk),
            in_specs=in_specs,
            out_specs=pl.BlockSpec((cp, tm), lambda i, k: (0, i)),
            scratch_shapes=[pltpu.VMEM((cp, tm), jnp.float32)],
        ),
        compiler_params=pltpu.CompilerParams(
            dimension_semantics=("parallel", "arbitrary"),
        ),
    )(*inputs)

    return out[:cout, :M]


# --------------------------------------------------------------------------
# Glue: im2col on CNHW activations (gather / reshape only — no MACs here)
# --------------------------------------------------------------------------
def _im2col_cnhw(x, kh, kw, stride, padding, lhs_dilation=1):
    """x: (C, n, H, W).  Returns (C*kh*kw, n*Ho*Wo); K rows ordered (c, i, j),
    M cols ordered (n, ho, wo)."""
    c, n, h, w = x.shape
    if (kh == 1 and kw == 1 and stride == 1 and padding == 0
            and lhs_dilation == 1):
        return x.reshape(c, n * h * w), h, w
    if lhs_dilation > 1:
        hd = (h - 1) * lhs_dilation + 1
        wd = (w - 1) * lhs_dilation + 1
        xd = jnp.zeros((c, n, hd, wd), x.dtype)
        xd = xd.at[:, :, ::lhs_dilation, ::lhs_dilation].set(x)
        x, h, w = xd, hd, wd
    xp = jnp.pad(x, ((0, 0), (0, 0), (padding, padding), (padding, padding)))
    hp, wp = h + 2 * padding, w + 2 * padding
    ho = (hp - kh) // stride + 1
    wo = (wp - kw) // stride + 1
    ii = (jnp.arange(ho) * stride)[:, None] + jnp.arange(kh)[None, :]   # (Ho,kh)
    jj = (jnp.arange(wo) * stride)[:, None] + jnp.arange(kw)[None, :]   # (Wo,kw)
    # (C, n, Ho, kh, Wo, kw)
    patches = xp[:, :, ii[:, :, None, None], jj[None, None, :, :]]
    patches = patches.transpose(0, 3, 5, 1, 2, 4)                       # (C,kh,kw,n,Ho,Wo)
    return patches.reshape(c * kh * kw, n * ho * wo), ho, wo


def conv2d_c(x_c, w, b, stride=1, padding=0, relu=False, residual_c=None):
    """PyTorch-semantics Conv2d on CNHW activations.
    x_c: (Cin, n, H, W), w: (Cout, Cin, kh, kw).  Returns (Cout, n, Ho, Wo)."""
    cout, cin, kh, kw = w.shape
    n = x_c.shape[1]
    colsT, ho, wo = _im2col_cnhw(x_c.astype(jnp.bfloat16),
                                 kh, kw, stride, padding)
    wmatT = w.reshape(cout, cin * kh * kw)                               # (Cout, K)
    res = None if residual_c is None else residual_c.reshape(cout, -1)
    y = matmul_bias_T(wmatT, colsT, b, residual=res, relu=relu)
    return y.reshape(cout, n, ho, wo)


def conv_transpose2d_c(x_c, w, b, stride, padding):
    """PyTorch-semantics ConvTranspose2d on CNHW activations.
    x_c: (Cin, n, H, W), w: (Cin, Cout, kh, kw)."""
    cin, cout, kh, kw = w.shape
    n = x_c.shape[1]
    w_eff = jnp.flip(w, axis=(2, 3)).transpose(1, 0, 2, 3)               # (Cout,Cin,kh,kw)
    colsT, ho, wo = _im2col_cnhw(x_c.astype(jnp.bfloat16), kh, kw, 1,
                                 kh - 1 - padding, lhs_dilation=stride)
    wmatT = w_eff.reshape(cout, cin * kh * kw)
    y = matmul_bias_T(wmatT, colsT, b)
    return y.reshape(cout, n, ho, wo)


# --------------------------------------------------------------------------
# CSNet parameters (deterministic, PyTorch-default-style uniform init) + forward
# --------------------------------------------------------------------------
K_STRIDE, COLOR, MR = 20, 3, 12


def _conv_init(key, cout, cin, kh, kw):
    k1, k2 = jax.random.split(key)
    bound = 1.0 / math.sqrt(cin * kh * kw)
    w = jax.random.uniform(k1, (cout, cin, kh, kw), jnp.float32, -bound, bound)
    b = jax.random.uniform(k2, (cout,), jnp.float32, -bound, bound)
    return w, b


def csnet_init(key):
    keys = jax.random.split(key, 11)
    params = {}
    params["conv0"] = _conv_init(keys[0], MR, COLOR, 2 * K_STRIDE, 2 * K_STRIDE)
    kd1, kd2 = jax.random.split(keys[1])
    bound = 1.0 / math.sqrt(COLOR * (2 * K_STRIDE) ** 2)
    params["deconv0"] = (
        jax.random.uniform(kd1, (MR, COLOR, 2 * K_STRIDE, 2 * K_STRIDE),
                           jnp.float32, -bound, bound),
        jax.random.uniform(kd2, (COLOR,), jnp.float32, -bound, bound),
    )
    names = ["conv1_1", "conv1_2", "conv1_3",
             "conv2_1", "conv2_2", "conv2_3",
             "conv3_1", "conv3_2", "conv3_3"]
    shapes = [(64, COLOR, 11, 11), (32, 64, 1, 1), (COLOR, 32, 7, 7)] * 3
    for i, (nm, sh) in enumerate(zip(names, shapes)):
        params[nm] = _conv_init(keys[2 + i], *sh)
    return params


@jax.jit
def csnet_forward(params, x):
    # NCHW -> CNHW once at entry; back to NCHW only at the exits.
    x_c = x.transpose(1, 0, 2, 3)

    meas_c = conv2d_c(x_c, *params["conv0"], stride=K_STRIDE, padding=K_STRIDE)
    y0_c = conv_transpose2d_c(meas_c, *params["deconv0"],
                              stride=K_STRIDE, padding=K_STRIDE)

    def block(yin_c, p1, p2, p3):
        y = conv2d_c(yin_c, *params[p1], stride=1, padding=5, relu=True)
        y = conv2d_c(y, *params[p2], stride=1, padding=0, relu=True)
        return conv2d_c(y, *params[p3], stride=1, padding=3, residual_c=yin_c)

    y1_c = block(y0_c, "conv1_1", "conv1_2", "conv1_3")
    y2_c = block(y1_c, "conv2_1", "conv2_2", "conv2_3")
    y_c = block(y2_c, "conv3_1", "conv3_2", "conv3_3")

    return meas_c.transpose(1, 0, 2, 3), y_c.transpose(1, 0, 2, 3)


# --------------------------------------------------------------------------
# Pure-XLA f32 reference (for correctness check only)
# --------------------------------------------------------------------------
def _ref_conv(x, w, b, stride, padding, lhs_dilation=(1, 1)):
    y = jax.lax.conv_general_dilated(
        x, w, window_strides=(stride, stride),
        padding=((padding, padding), (padding, padding)),
        lhs_dilation=lhs_dilation,
        dimension_numbers=("NCHW", "OIHW", "NCHW"))
    return y + b.reshape(1, -1, 1, 1)


@jax.jit
def csnet_reference(params, x):
    measurement = _ref_conv(x, *params["conv0"], K_STRIDE, K_STRIDE)
    wt, bt = params["deconv0"]
    w_eff = jnp.flip(wt, axis=(2, 3)).transpose(1, 0, 2, 3)
    y0 = _ref_conv(measurement, w_eff, bt, 1, 2 * K_STRIDE - 1 - K_STRIDE,
                   lhs_dilation=(K_STRIDE, K_STRIDE))

    def block(yin, p1, p2, p3):
        y = jax.nn.relu(_ref_conv(yin, *params[p1], 1, 5))
        y = jax.nn.relu(_ref_conv(y, *params[p2], 1, 0))
        return yin + _ref_conv(y, *params[p3], 1, 3)

    y1 = block(y0, "conv1_1", "conv1_2", "conv1_3")
    y2 = block(y1, "conv2_1", "conv2_2", "conv2_3")
    y = block(y2, "conv3_1", "conv3_2", "conv3_3")
    return measurement, y


if __name__ == "__main__":
    key = jax.random.PRNGKey(0)
    kp, kx = jax.random.split(key)
    params = csnet_init(kp)

    # NCHW, 3 channels, spatial a multiple of k_stride=20 so deconv0 restores
    # the input resolution (required by the residual adds).
    x = jax.random.normal(kx, (2, 3, 20, 20), jnp.float32)

    meas, y = csnet_forward(params, x)
    jax.block_until_ready((meas, y))

    assert meas.shape == (2, 12, 2, 2), meas.shape
    assert y.shape == x.shape, y.shape

    meas_ref, y_ref = csnet_reference(params, x)
    # bf16 MXU operands with f32 accumulation vs. a pure-f32 XLA reference.
    np.testing.assert_allclose(np.asarray(meas), np.asarray(meas_ref),
                               rtol=2e-2, atol=2e-2)
    np.testing.assert_allclose(np.asarray(y), np.asarray(y_ref),
                               rtol=2e-2, atol=2e-2)

    print("KERNEL_OK")
</pallas_src>

<mosaic_0001>
module attributes {stable_mosaic.version = 11 : i64} {
  func.func @_mm_kernel(%arg0: i32, %arg1: i32, %arg2: memref<16x256xbf16, #tpu.memory_space<vmem>>, %arg3: memref<256x128xbf16, #tpu.memory_space<vmem>>, %arg4: memref<16x1xf32, #tpu.memory_space<vmem>>, %arg5: memref<16x128xf32, #tpu.memory_space<vmem>>, %arg6: memref<16x128xf32, #tpu.memory_space<vmem>>) attributes {dimension_semantics = [#tpu.dimension_semantics<parallel>, #tpu.dimension_semantics<arbitrary>], iteration_bounds = array<i64: 1, 19>, scalar_prefetch = 0 : i64, scratch_operands = 1 : i64, tpu.core_type = #tpu.core_type<tc>, window_params = [{transform_indices = @transform_0, window_bounds = array<i64: 16, 256>}, {transform_indices = @transform_1, window_bounds = array<i64: 256, 128>}, {pipeline_mode = #tpu.pipeline_mode<synchronous>, transform_indices = @transform_2, window_bounds = array<i64: 16, 1>}, {transform_indices = @transform_3, window_bounds = array<i64: 16, 128>}]} {
    %c0_i32 = arith.constant 0 : i32
    %0 = arith.cmpi eq, %arg1, %c0_i32 : i32
    %1 = arith.extui %0 : i1 to i32
    %c0_i32_0 = arith.constant 0 : i32
    %2 = arith.cmpi ne, %1, %c0_i32_0 : i32
    scf.if %2 {
      %cst_9 = arith.constant 0.000000e+00 : f32
      %12 = vector.broadcast %cst_9 : f32 to vector<16x128xf32>
      %c0_10 = arith.constant 0 : index
      %c0_11 = arith.constant 0 : index
      %13 = vector.load %arg6[%c0_10, %c0_11] : memref<16x128xf32, #tpu.memory_space<vmem>>, vector<16x128xf32>
      tpu.vector_store %arg6[%c0_10, %c0_11], %12 {strides = array<i32>} : memref<16x128xf32, #tpu.memory_space<vmem>>, vector<16x128xf32>,
    } else {
    }
    %c0 = arith.constant 0 : index
    %c0_1 = arith.constant 0 : index
    %3 = vector.load %arg6[%c0, %c0_1] : memref<16x128xf32, #tpu.memory_space<vmem>>, vector<16x128xf32>
    %c0_2 = arith.constant 0 : index
    %c0_3 = arith.constant 0 : index
    %4 = vector.load %arg2[%c0_2, %c0_3] : memref<16x256xbf16, #tpu.memory_space<vmem>>, vector<16x256xbf16>
    %c0_4 = arith.constant 0 : index
    %c0_5 = arith.constant 0 : index
    %5 = vector.load %arg3[%c0_4, %c0_5] : memref<256x128xbf16, #tpu.memory_space<vmem>>, vector<256x128xbf16>
    %cst = arith.constant dense<0.000000e+00> : vector<16x128xf32>
    %6 = tpu.matmul %4, %5, %cst {dimension_numbers = #tpu.dot_dimension_numbers<[1], [0], [0], [1], [0, 0, 1, 1], [], []>} : vector<16x256xbf16>, vector<256x128xbf16>, vector<16x128xf32> -> vector<16x128xf32>
    %7 = arith.addf %3, %6 : vector<16x128xf32>
    %c0_6 = arith.constant 0 : index
    %c0_7 = arith.constant 0 : index
    %8 = vector.load %arg6[%c0_6, %c0_7] : memref<16x128xf32, #tpu.memory_space<vmem>>, vector<16x128xf32>
    tpu.vector_store %arg6[%c0_6, %c0_7], %7 {strides = array<i32>} : memref<16x128xf32, #tpu.memory_space<vmem>>, vector<16x128xf32>,
    %c18_i32 = arith.constant 18 : i32
    %9 = arith.cmpi eq, %arg1, %c18_i32 : i32
    %10 = arith.extui %9 : i1 to i32
    %c0_i32_8 = arith.constant 0 : i32
    %11 = arith.cmpi ne, %10, %c0_i32_8 : i32
    scf.if %11 {
      %c0_9 = arith.constant 0 : index
      %c0_10 = arith.constant 0 : index
      %12 = vector.load %arg6[%c0_9, %c0_10] : memref<16x128xf32, #tpu.memory_space<vmem>>, vector<16x128xf32>
      %c0_11 = arith.constant 0 : index
      %c0_12 = arith.constant 0 : index
      %13 = vector.load %arg4[%c0_11, %c0_12] : memref<16x1xf32, #tpu.memory_space<vmem>>, vector<16x1xf32>
      %14 = vector.broadcast %13 : vector<16x1xf32> to vector<16x128xf32>
      %15 = arith.addf %12, %14 : vector<16x128xf32>
      %c0_13 = arith.constant 0 : index
      %c0_14 = arith.constant 0 : index
      %16 = vector.load %arg5[%c0_13, %c0_14] : memref<16x128xf32, #tpu.memory_space<vmem>>, vector<16x128xf32>
      tpu.vector_store %arg5[%c0_13, %c0_14], %15 {strides = array<i32>} : memref<16x128xf32, #tpu.memory_space<vmem>>, vector<16x128xf32>,
    } else {
    }
    return
  }
  func.func @transform_0(%arg0: i32, %arg1: i32) -> (i32, i32) {
    %c0_i32 = arith.constant 0 : i32
    %c0_i32_0 = arith.constant 0 : i32
    return %c0_i32, %arg1 : i32, i32
  }
  func.func @transform_1(%arg0: i32, %arg1: i32) -> (i32, i32) {
    %c0_i32 = arith.constant 0 : i32
    return %arg1, %arg0 : i32, i32
  }
  func.func @transform_2(%arg0: i32, %arg1: i32) -> (i32, i32) {
    %c0_i32 = arith.constant 0 : i32
    %c0_i32_0 = arith.constant 0 : i32
    %c0_i32_1 = arith.constant 0 : i32
    return %c0_i32, %c0_i32_0 : i32, i32
  }
  func.func @transform_3(%arg0: i32, %arg1: i32) -> (i32, i32) {
    %c0_i32 = arith.constant 0 : i32
    %c0_i32_0 = arith.constant 0 : i32
    return %c0_i32, %arg0 : i32, i32
  }
}

module attributes {stable_mosaic.version = 11 : i64} {
  func.func @_mm_kernel(%arg0: i32, %arg1: i32, %arg2: memref<8x768xbf16, #tpu.memory_space<vmem>>, %arg3: memref<768x512xbf16, #tpu.memory_space<vmem>>, %arg4: memref<8x1xf32, #tpu.memory_space<vmem>>, %arg5: memref<8x512xf32, #tpu.memory_space<vmem>>, %arg6: memref<8x512xf32, #tpu.memory_space<vmem>>) attributes {dimension_semantics = [#tpu.dimension_semantics<parallel>, #tpu.dimension_semantics<arbitrary>], iteration_bounds = array<i64: 2, 25>, scalar_prefetch = 0 : i64, scratch_operands = 1 : i64, tpu.core_type = #tpu.core_type<tc>, window_params = [{transform_indices = @transform_0, window_bounds = array<i64: 8, 768>}, {transform_indices = @transform_1, window_bounds = array<i64: 768, 512>}, {pipeline_mode = #tpu.pipeline_mode<synchronous>, transform_indices = @transform_2, window_bounds = array<i64: 8, 1>}, {transform_indices = @transform_3, window_bounds = array<i64: 8, 512>}]} {
    %c0_i32 = arith.constant 0 : i32
    %0 = arith.cmpi eq, %arg1, %c0_i32 : i32
    %1 = arith.extui %0 : i1 to i32
    %c0_i32_0 = arith.constant 0 : i32
    %2 = arith.cmpi ne, %1, %c0_i32_0 : i32
    scf.if %2 {
      %cst_9 = arith.constant 0.000000e+00 : f32
      %12 = vector.broadcast %cst_9 : f32 to vector<8x512xf32>
      %c0_10 = arith.constant 0 : index
      %c0_11 = arith.constant 0 : index
      %13 = vector.load %arg6[%c0_10, %c0_11] : memref<8x512xf32, #tpu.memory_space<vmem>>, vector<8x512xf32>
      tpu.vector_store %arg6[%c0_10, %c0_11], %12 {strides = array<i32>} : memref<8x512xf32, #tpu.memory_space<vmem>>, vector<8x512xf32>,
    } else {
    }
    %c0 = arith.constant 0 : index
    %c0_1 = arith.constant 0 : index
    %3 = vector.load %arg6[%c0, %c0_1] : memref<8x512xf32, #tpu.memory_space<vmem>>, vector<8x512xf32>
    %c0_2 = arith.constant 0 : index
    %c0_3 = arith.constant 0 : index
    %4 = vector.load %arg2[%c0_2, %c0_3] : memref<8x768xbf16, #tpu.memory_space<vmem>>, vector<8x768xbf16>
    %c0_4 = arith.constant 0 : index
    %c0_5 = arith.constant 0 : index
    %5 = vector.load %arg3[%c0_4, %c0_5] : memref<768x512xbf16, #tpu.memory_space<vmem>>, vector<768x512xbf16>
    %cst = arith.constant dense<0.000000e+00> : vector<8x512xf32>
    %6 = tpu.matmul %4, %5, %cst {dimension_numbers = #tpu.dot_dimension_numbers<[1], [0], [0], [1], [0, 0, 1, 1], [], []>} : vector<8x768xbf16>, vector<768x512xbf16>, vector<8x512xf32> -> vector<8x512xf32>
    %7 = arith.addf %3, %6 : vector<8x512xf32>
    %c0_6 = arith.constant 0 : index
    %c0_7 = arith.constant 0 : index
    %8 = vector.load %arg6[%c0_6, %c0_7] : memref<8x512xf32, #tpu.memory_space<vmem>>, vector<8x512xf32>
    tpu.vector_store %arg6[%c0_6, %c0_7], %7 {strides = array<i32>} : memref<8x512xf32, #tpu.memory_space<vmem>>, vector<8x512xf32>,
    %c24_i32 = arith.constant 24 : i32
    %9 = arith.cmpi eq, %arg1, %c24_i32 : i32
    %10 = arith.extui %9 : i1 to i32
    %c0_i32_8 = arith.constant 0 : i32
    %11 = arith.cmpi ne, %10, %c0_i32_8 : i32
    scf.if %11 {
      %c0_9 = arith.constant 0 : index
      %c0_10 = arith.constant 0 : index
      %12 = vector.load %arg6[%c0_9, %c0_10] : memref<8x512xf32, #tpu.memory_space<vmem>>, vector<8x512xf32>
      %c0_11 = arith.constant 0 : index
      %c0_12 = arith.constant 0 : index
      %13 = vector.load %arg4[%c0_11, %c0_12] : memref<8x1xf32, #tpu.memory_space<vmem>>, vector<8x1xf32>
      %14 = vector.broadcast %13 : vector<8x1xf32> to vector<8x512xf32>
      %15 = arith.addf %12, %14 : vector<8x512xf32>
      %c0_13 = arith.constant 0 : index
      %c0_14 = arith.constant 0 : index
      %16 = vector.load %arg5[%c0_13, %c0_14] : memref<8x512xf32, #tpu.memory_space<vmem>>, vector<8x512xf32>
      tpu.vector_store %arg5[%c0_13, %c0_14], %15 {strides = array<i32>} : memref<8x512xf32, #tpu.memory_space<vmem>>, vector<8x512xf32>,
    } else {
    }
    return
  }
  func.func @transform_0(%arg0: i32, %arg1: i32) -> (i32, i32) {
    %c0_i32 = arith.constant 0 : i32
    %c0_i32_0 = arith.constant 0 : i32
    return %c0_i32, %arg1 : i32, i32
  }
  func.func @transform_1(%arg0: i32, %arg1: i32) -> (i32, i32) {
    %c0_i32 = arith.constant 0 : i32
    return %arg1, %arg0 : i32, i32
  }
  func.func @transform_2(%arg0: i32, %arg1: i32) -> (i32, i32) {
    %c0_i32 = arith.constant 0 : i32
    %c0_i32_0 = arith.constant 0 : i32
    %c0_i32_1 = arith.constant 0 : i32
    return %c0_i32, %c0_i32_0 : i32, i32
  }
  func.func @transform_3(%arg0: i32, %arg1: i32) -> (i32, i32) {
    %c0_i32 = arith.constant 0 : i32
    %c0_i32_0 = arith.constant 0 : i32
    return %c0_i32, %arg0 : i32, i32
  }
}

module attributes {stable_mosaic.version = 11 : i64} {
  func.func @_mm_kernel(%arg0: i32, %arg1: i32, %arg2: memref<64x384xbf16, #tpu.memory_space<vmem>>, %arg3: memref<384x512xbf16, #tpu.memory_space<vmem>>, %arg4: memref<64x1xf32, #tpu.memory_space<vmem>>, %arg5: memref<64x512xf32, #tpu.memory_space<vmem>>, %arg6: memref<64x512xf32, #tpu.memory_space<vmem>>) attributes {dimension_semantics = [#tpu.dimension_semantics<parallel>, #tpu.dimension_semantics<arbitrary>], iteration_bounds = array<i64: 2, 1>, scalar_prefetch = 0 : i64, scratch_operands = 1 : i64, tpu.core_type = #tpu.core_type<tc>, window_params = [{transform_indices = @transform_0, window_bounds = array<i64: 64, 384>}, {transform_indices = @transform_1, window_bounds = array<i64: 384, 512>}, {pipeline_mode = #tpu.pipeline_mode<synchronous>, transform_indices = @transform_2, window_bounds = array<i64: 64, 1>}, {transform_indices = @transform_3, window_bounds = array<i64: 64, 512>}]} {
    %c0_i32 = arith.constant 0 : i32
    %0 = arith.cmpi eq, %arg1, %c0_i32 : i32
    %1 = arith.extui %0 : i1 to i32
    %c0_i32_0 = arith.constant 0 : i32
    %2 = arith.cmpi ne, %1, %c0_i32_0 : i32
    scf.if %2 {
      %cst_10 = arith.constant 0.000000e+00 : f32
      %12 = vector.broadcast %cst_10 : f32 to vector<64x512xf32>
      %c0_11 = arith.constant 0 : index
      %c0_12 = arith.constant 0 : index
      %13 = vector.load %arg6[%c0_11, %c0_12] : memref<64x512xf32, #tpu.memory_space<vmem>>, vector<64x512xf32>
      tpu.vector_store %arg6[%c0_11, %c0_12], %12 {strides = array<i32>} : memref<64x512xf32, #tpu.memory_space<vmem>>, vector<64x512xf32>,
    } else {
    }
    %c0 = arith.constant 0 : index
    %c0_1 = arith.constant 0 : index
    %3 = vector.load %arg6[%c0, %c0_1] : memref<64x512xf32, #tpu.memory_space<vmem>>, vector<64x512xf32>
    %c0_2 = arith.constant 0 : index
    %c0_3 = arith.constant 0 : index
    %4 = vector.load %arg2[%c0_2, %c0_3] : memref<64x384xbf16, #tpu.memory_space<vmem>>, vector<64x384xbf16>
    %c0_4 = arith.constant 0 : index
    %c0_5 = arith.constant 0 : index
    %5 = vector.load %arg3[%c0_4, %c0_5] : memref<384x512xbf16, #tpu.memory_space<vmem>>, vector<384x512xbf16>
    %cst = arith.constant dense<0.000000e+00> : vector<64x512xf32>
    %6 = tpu.matmul %4, %5, %cst {dimension_numbers = #tpu.dot_dimension_numbers<[1], [0], [0], [1], [0, 0, 1, 1], [], []>} : vector<64x384xbf16>, vector<384x512xbf16>, vector<64x512xf32> -> vector<64x512xf32>
    %7 = arith.addf %3, %6 : vector<64x512xf32>
    %c0_6 = arith.constant 0 : index
    %c0_7 = arith.constant 0 : index
    %8 = vector.load %arg6[%c0_6, %c0_7] : memref<64x512xf32, #tpu.memory_space<vmem>>, vector<64x512xf32>
    tpu.vector_store %arg6[%c0_6, %c0_7], %7 {strides = array<i32>} : memref<64x512xf32, #tpu.memory_space<vmem>>, vector<64x512xf32>,
    %c0_i32_8 = arith.constant 0 : i32
    %9 = arith.cmpi eq, %arg1, %c0_i32_8 : i32
    %10 = arith.extui %9 : i1 to i32
    %c0_i32_9 = arith.constant 0 : i32
    %11 = arith.cmpi ne, %10, %c0_i32_9 : i32
    scf.if %11 {
      %c0_10 = arith.constant 0 : index
      %c0_11 = arith.constant 0 : index
      %12 = vector.load %arg6[%c0_10, %c0_11] : memref<64x512xf32, #tpu.memory_space<vmem>>, vector<64x512xf32>
      %c0_12 = arith.constant 0 : index
      %c0_13 = arith.constant 0 : index
      %13 = vector.load %arg4[%c0_12, %c0_13] : memref<64x1xf32, #tpu.memory_space<vmem>>, vector<64x1xf32>
      %14 = vector.broadcast %13 : vector<64x1xf32> to vector<64x512xf32>
      %15 = arith.addf %12, %14 : vector<64x512xf32>
      %cst_14 = arith.constant 0.000000e+00 : f32
      %16 = vector.broadcast %cst_14 : f32 to vector<64x512xf32>
      %17 = arith.maximumf %15, %16 : vector<64x512xf32>
      %c0_15 = arith.constant 0 : index
      %c0_16 = arith.constant 0 : index
      %18 = vector.load %arg5[%c0_15, %c0_16] : memref<64x512xf32, #tpu.memory_space<vmem>>, vector<64x512xf32>
      tpu.vector_store %arg5[%c0_15, %c0_16], %17 {strides = array<i32>} : memref<64x512xf32, #tpu.memory_space<vmem>>, vector<64x512xf32>,
    } else {
    }
    return
  }
  func.func @transform_0(%arg0: i32, %arg1: i32) -> (i32, i32) {
    %c0_i32 = arith.constant 0 : i32
    %c0_i32_0 = arith.constant 0 : i32
    return %c0_i32, %arg1 : i32, i32
  }
  func.func @transform_1(%arg0: i32, %arg1: i32) -> (i32, i32) {
    %c0_i32 = arith.constant 0 : i32
    return %arg1, %arg0 : i32, i32
  }
  func.func @transform_2(%arg0: i32, %arg1: i32) -> (i32, i32) {
    %c0_i32 = arith.constant 0 : i32
    %c0_i32_0 = arith.constant 0 : i32
    %c0_i32_1 = arith.constant 0 : i32
    return %c0_i32, %c0_i32_0 : i32, i32
  }
  func.func @transform_3(%arg0: i32, %arg1: i32) -> (i32, i32) {
    %c0_i32 = arith.constant 0 : i32
    %c0_i32_0 = arith.constant 0 : i32
    return %c0_i32, %arg0 : i32, i32
  }
}

module attributes {stable_mosaic.version = 11 : i64} {
  func.func @_mm_kernel(%arg0: i32, %arg1: i32, %arg2: memref<32x128xbf16, #tpu.memory_space<vmem>>, %arg3: memref<128x512xbf16, #tpu.memory_space<vmem>>, %arg4: memref<32x1xf32, #tpu.memory_space<vmem>>, %arg5: memref<32x512xf32, #tpu.memory_space<vmem>>, %arg6: memref<32x512xf32, #tpu.memory_space<vmem>>) attributes {dimension_semantics = [#tpu.dimension_semantics<parallel>, #tpu.dimension_semantics<arbitrary>], iteration_bounds = array<i64: 2, 1>, scalar_prefetch = 0 : i64, scratch_operands = 1 : i64, tpu.core_type = #tpu.core_type<tc>, window_params = [{transform_indices = @transform_0, window_bounds = array<i64: 32, 128>}, {transform_indices = @transform_1, window_bounds = array<i64: 128, 512>}, {pipeline_mode = #tpu.pipeline_mode<synchronous>, transform_indices = @transform_2, window_bounds = array<i64: 32, 1>}, {transform_indices = @transform_3, window_bounds = array<i64: 32, 512>}]} {
    %c0_i32 = arith.constant 0 : i32
    %0 = arith.cmpi eq, %arg1, %c0_i32 : i32
    %1 = arith.extui %0 : i1 to i32
    %c0_i32_0 = arith.constant 0 : i32
    %2 = arith.cmpi ne, %1, %c0_i32_0 : i32
    scf.if %2 {
      %cst_10 = arith.constant 0.000000e+00 : f32
      %12 = vector.broadcast %cst_10 : f32 to vector<32x512xf32>
      %c0_11 = arith.constant 0 : index
      %c0_12 = arith.constant 0 : index
      %13 = vector.load %arg6[%c0_11, %c0_12] : memref<32x512xf32, #tpu.memory_space<vmem>>, vector<32x512xf32>
      tpu.vector_store %arg6[%c0_11, %c0_12], %12 {strides = array<i32>} : memref<32x512xf32, #tpu.memory_space<vmem>>, vector<32x512xf32>,
    } else {
    }
    %c0 = arith.constant 0 : index
    %c0_1 = arith.constant 0 : index
    %3 = vector.load %arg6[%c0, %c0_1] : memref<32x512xf32, #tpu.memory_space<vmem>>, vector<32x512xf32>
    %c0_2 = arith.constant 0 : index
    %c0_3 = arith.constant 0 : index
    %4 = vector.load %arg2[%c0_2, %c0_3] : memref<32x128xbf16, #tpu.memory_space<vmem>>, vector<32x128xbf16>
    %c0_4 = arith.constant 0 : index
    %c0_5 = arith.constant 0 : index
    %5 = vector.load %arg3[%c0_4, %c0_5] : memref<128x512xbf16, #tpu.memory_space<vmem>>, vector<128x512xbf16>
    %cst = arith.constant dense<0.000000e+00> : vector<32x512xf32>
    %6 = tpu.matmul %4, %5, %cst {dimension_numbers = #tpu.dot_dimension_numbers<[1], [0], [0], [1], [0, 0, 1, 1], [], []>} : vector<32x128xbf16>, vector<128x512xbf16>, vector<32x512xf32> -> vector<32x512xf32>
    %7 = arith.addf %3, %6 : vector<32x512xf32>
    %c0_6 = arith.constant 0 : index
    %c0_7 = arith.constant 0 : index
    %8 = vector.load %arg6[%c0_6, %c0_7] : memref<32x512xf32, #tpu.memory_space<vmem>>, vector<32x512xf32>
    tpu.vector_store %arg6[%c0_6, %c0_7], %7 {strides = array<i32>} : memref<32x512xf32, #tpu.memory_space<vmem>>, vector<32x512xf32>,
    %c0_i32_8 = arith.constant 0 : i32
    %9 = arith.cmpi eq, %arg1, %c0_i32_8 : i32
    %10 = arith.extui %9 : i1 to i32
    %c0_i32_9 = arith.constant 0 : i32
    %11 = arith.cmpi ne, %10, %c0_i32_9 : i32
    scf.if %11 {
      %c0_10 = arith.constant 0 : index
      %c0_11 = arith.constant 0 : index
      %12 = vector.load %arg6[%c0_10, %c0_11] : memref<32x512xf32, #tpu.memory_space<vmem>>, vector<32x512xf32>
      %c0_12 = arith.constant 0 : index
      %c0_13 = arith.constant 0 : index
      %13 = vector.load %arg4[%c0_12, %c0_13] : memref<32x1xf32, #tpu.memory_space<vmem>>, vector<32x1xf32>
      %14 = vector.broadcast %13 : vector<32x1xf32> to vector<32x512xf32>
      %15 = arith.addf %12, %14 : vector<32x512xf32>
      %cst_14 = arith.constant 0.000000e+00 : f32
      %16 = vector.broadcast %cst_14 : f32 to vector<32x512xf32>
      %17 = arith.maximumf %15, %16 : vector<32x512xf32>
      %c0_15 = arith.constant 0 : index
      %c0_16 = arith.constant 0 : index
      %18 = vector.load %arg5[%c0_15, %c0_16] : memref<32x512xf32, #tpu.memory_space<vmem>>, vector<32x512xf32>
      tpu.vector_store %arg5[%c0_15, %c0_16], %17 {strides = array<i32>} : memref<32x512xf32, #tpu.memory_space<vmem>>, vector<32x512xf32>,
    } else {
    }
    return
  }
  func.func @transform_0(%arg0: i32, %arg1: i32) -> (i32, i32) {
    %c0_i32 = arith.constant 0 : i32
    %c0_i32_0 = arith.constant 0 : i32
    return %c0_i32, %arg1 : i32, i32
  }
  func.func @transform_1(%arg0: i32, %arg1: i32) -> (i32, i32) {
    %c0_i32 = arith.constant 0 : i32
    return %arg1, %arg0 : i32, i32
  }
  func.func @transform_2(%arg0: i32, %arg1: i32) -> (i32, i32) {
    %c0_i32 = arith.constant 0 : i32
    %c0_i32_0 = arith.constant 0 : i32
    %c0_i32_1 = arith.constant 0 : i32
    return %c0_i32, %c0_i32_0 : i32, i32
  }
  func.func @transform_3(%arg0: i32, %arg1: i32) -> (i32, i32) {
    %c0_i32 = arith.constant 0 : i32
    %c0_i32_0 = arith.constant 0 : i32
    return %c0_i32, %arg0 : i32, i32
  }
}

module attributes {stable_mosaic.version = 11 : i64} {
  func.func @_mm_kernel(%arg0: i32, %arg1: i32, %arg2: memref<8x128xbf16, #tpu.memory_space<vmem>>, %arg3: memref<128x512xbf16, #tpu.memory_space<vmem>>, %arg4: memref<8x1xf32, #tpu.memory_space<vmem>>, %arg5: memref<8x512xf32, #tpu.memory_space<vmem>>, %arg6: memref<8x512xf32, #tpu.memory_space<vmem>>, %arg7: memref<8x512xf32, #tpu.memory_space<vmem>>) attributes {dimension_semantics = [#tpu.dimension_semantics<parallel>, #tpu.dimension_semantics<arbitrary>], iteration_bounds = array<i64: 2, 13>, scalar_prefetch = 0 : i64, scratch_operands = 1 : i64, tpu.core_type = #tpu.core_type<tc>, window_params = [{transform_indices = @transform_0, window_bounds = array<i64: 8, 128>}, {transform_indices = @transform_1, window_bounds = array<i64: 128, 512>}, {pipeline_mode = #tpu.pipeline_mode<synchronous>, transform_indices = @transform_2, window_bounds = array<i64: 8, 1>}, {transform_indices = @transform_3, window_bounds = array<i64: 8, 512>}, {transform_indices = @transform_4, window_bounds = array<i64: 8, 512>}]} {
    %c0_i32 = arith.constant 0 : i32
    %0 = arith.cmpi eq, %arg1, %c0_i32 : i32
    %1 = arith.extui %0 : i1 to i32
    %c0_i32_0 = arith.constant 0 : i32
    %2 = arith.cmpi ne, %1, %c0_i32_0 : i32
    scf.if %2 {
      %cst_9 = arith.constant 0.000000e+00 : f32
      %12 = vector.broadcast %cst_9 : f32 to vector<8x512xf32>
      %c0_10 = arith.constant 0 : index
      %c0_11 = arith.constant 0 : index
      %13 = vector.load %arg7[%c0_10, %c0_11] : memref<8x512xf32, #tpu.memory_space<vmem>>, vector<8x512xf32>
      tpu.vector_store %arg7[%c0_10, %c0_11], %12 {strides = array<i32>} : memref<8x512xf32, #tpu.memory_space<vmem>>, vector<8x512xf32>,
    } else {
    }
    %c0 = arith.constant 0 : index
    %c0_1 = arith.constant 0 : index
    %3 = vector.load %arg7[%c0, %c0_1] : memref<8x512xf32, #tpu.memory_space<vmem>>, vector<8x512xf32>
    %c0_2 = arith.constant 0 : index
    %c0_3 = arith.constant 0 : index
    %4 = vector.load %arg2[%c0_2, %c0_3] : memref<8x128xbf16, #tpu.memory_space<vmem>>, vector<8x128xbf16>
    %c0_4 = arith.constant 0 : index
    %c0_5 = arith.constant 0 : index
    %5 = vector.load %arg3[%c0_4, %c0_5] : memref<128x512xbf16, #tpu.memory_space<vmem>>, vector<128x512xbf16>
    %cst = arith.constant dense<0.000000e+00> : vector<8x512xf32>
    %6 = tpu.matmul %4, %5, %cst {dimension_numbers = #tpu.dot_dimension_numbers<[1], [0], [0], [1], [0, 0, 1, 1], [], []>} : vector<8x128xbf16>, vector<128x512xbf16>, vector<8x512xf32> -> vector<8x512xf32>
    %7 = arith.addf %3, %6 : vector<8x512xf32>
    %c0_6 = arith.constant 0 : index
    %c0_7 = arith.constant 0 : index
    %8 = vector.load %arg7[%c0_6, %c0_7] : memref<8x512xf32, #tpu.memory_space<vmem>>, vector<8x512xf32>
    tpu.vector_store %arg7[%c0_6, %c0_7], %7 {strides = array<i32>} : memref<8x512xf32, #tpu.memory_space<vmem>>, vector<8x512xf32>,
    %c12_i32 = arith.constant 12 : i32
    %9 = arith.cmpi eq, %arg1, %c12_i32 : i32
    %10 = arith.extui %9 : i1 to i32
    %c0_i32_8 = arith.constant 0 : i32
    %11 = arith.cmpi ne, %10, %c0_i32_8 : i32
    scf.if %11 {
      %c0_9 = arith.constant 0 : index
      %c0_10 = arith.constant 0 : index
      %12 = vector.load %arg7[%c0_9, %c0_10] : memref<8x512xf32, #tpu.memory_space<vmem>>, vector<8x512xf32>
      %c0_11 = arith.constant 0 : index
      %c0_12 = arith.constant 0 : index
      %13 = vector.load %arg4[%c0_11, %c0_12] : memref<8x1xf32, #tpu.memory_space<vmem>>, vector<8x1xf32>
      %14 = vector.broadcast %13 : vector<8x1xf32> to vector<8x512xf32>
      %15 = arith.addf %12, %14 : vector<8x512xf32>
      %c0_13 = arith.constant 0 : index
      %c0_14 = arith.constant 0 : index
      %16 = vector.load %arg5[%c0_13, %c0_14] : memref<8x512xf32, #tpu.memory_space<vmem>>, vector<8x512xf32>
      %17 = arith.addf %15, %16 : vector<8x512xf32>
      %c0_15 = arith.constant 0 : index
      %c0_16 = arith.constant 0 : index
      %18 = vector.load %arg6[%c0_15, %c0_16] : memref<8x512xf32, #tpu.memory_space<vmem>>, vector<8x512xf32>
      tpu.vector_store %arg6[%c0_15, %c0_16], %17 {strides = array<i32>} : memref<8x512xf32, #tpu.memory_space<vmem>>, vector<8x512xf32>,
    } else {
    }
    return
  }
  func.func @transform_0(%arg0: i32, %arg1: i32) -> (i32, i32) {
    %c0_i32 = arith.constant 0 : i32
    %c0_i32_0 = arith.constant 0 : i32
    return %c0_i32, %arg1 : i32, i32
  }
  func.func @transform_1(%arg0: i32, %arg1: i32) -> (i32, i32) {
    %c0_i32 = arith.constant 0 : i32
    return %arg1, %arg0 : i32, i32
  }
  func.func @transform_2(%arg0: i32, %arg1: i32) -> (i32, i32) {
    %c0_i32 = arith.constant 0 : i32
    %c0_i32_0 = arith.constant 0 : i32
    %c0_i32_1 = arith.constant 0 : i32
    return %c0_i32, %c0_i32_0 : i32, i32
  }
  func.func @transform_3(%arg0: i32, %arg1: i32) -> (i32, i32) {
    %c0_i32 = arith.constant 0 : i32
    %c0_i32_0 = arith.constant 0 : i32
    return %c0_i32, %arg0 : i32, i32
  }
  func.func @transform_4(%arg0: i32, %arg1: i32) -> (i32, i32) {
    %c0_i32 = arith.constant 0 : i32
    %c0_i32_0 = arith.constant 0 : i32
    return %c0_i32, %arg0 : i32, i32
  }
}

</mosaic_0001>

<bundles_post_ra>
// kernel: csnet_forward.11
= control target key start
LH: loop header
LB: loop body
LE: loop exit
PB: predicated region body
PF: predicated region fallthrough
CT: control target
= control target key end

     0   :  { %s731_s12 = smov 0   ;;  %s733_s13 = smov 0   ;;  %s835_s0 = inlined_call_operand.vmem [shape: bf16[16,4864], index: 0, kind: input, shape index: {}]   ;;  %s836_s1 = inlined_call_operand.vmem [shape: bf16[4864,128], index: 1, kind: input, shape index: {}]   ;;  %s837_s2 = inlined_call_operand.vmem [shape: f32[16,1], index: 2, kind: input, shape index: {}]   ;;  %s838_s3 = inlined_call_operand.vmem [shape: f32[16,128], index: 3, kind: output, shape index: {}]  }
   0x1   :  { %s735_s14 = smov 0   ;;  %s737_s15 = smov 0  }
   0x2   :  { %s739_s16 = smov 0  }
   0x3 LB: > { %s22_s17 = sadd.s32 1, %s703_s15  ;;  %p39_p1 = scmp.ne.s32.totalorder %s695_s13, %s691_s12  ;;  %s707_s16 = sphi %s739_s16, %s13_s16   ;;  %s703_s15 = sphi %s737_s15, %s842_s15   ;;  %s699_s14 = sphi %s735_s14, %s841_s14   ;;  %s695_s13 = sphi %s733_s13, %s840_s13   ;;  %s691_s12 = sphi %s731_s12, %s839_s12  }
   0x4   : > { %p23_p0 = scmp.ge.s32.totalorder %s22_s17, 19  ;;  %p40_p2 = scmp.eq.s32.totalorder %s707_s16, 0 }
   0x5   : > { %s32_s19 = sadd.s32 1, %s695_s13  ;;  %p553_p5 = scmp.ge.s32.totalorder %s707_s16, 19 }
   0x6   : > { %s844_s17 = smov (%p23_p0, %s22_s17), 0  ;;  %p41_p3 = por %p40_p2, %p39_p1 }
   0x7   : > { %s29_s18 = ssub.s32 %s703_s15, %s844_s17  ;;  %143 = sbr.rel (%p553_p5) target bundleno = 17 (0x11), region = 20 }
   0x8   : > { %p30_p4 = scmp.eq.s32.totalorder %s29_s18, 0 }
   0xa   : > { %s766_s20 = scalar_select %p30_p4, %s695_s13, %s32_s19  }
   0xc   : > { %146 = sbr.rel (!%p41_p3) target bundleno = 17 (0x11), region = 24  ;;  %s148_s21 = sand.u32 (%p41_p3), 1, %s695_s13  }
   0xd   : > { %s584_s22 = sshll.u32 (%p41_p3), %s703_s15, 3  ;;  %s554_s23 = sshll.u32 (%p41_p3), %s148_s21, 4 }
   0xe   : > { %s153_s26 = scalar_lea.vmem (%p41_p3), %s835_s0, %s584_s22  ;;  %s150_s27 = scalar_lea.vmem (%p41_p3), [#allocation3], %s554_s23 }
   0xf   : > { %v184_v0 = vld [vmem:[%s153_s26] sm:$0xff] (%p41_p3)  ;;  %v186_v1 = vld [vmem:[%s153_s26 + $0x98] sm:$0xff] (%p41_p3) }
  0x10   : > { %185 = vst [vmem:[%s150_s27] sm:$0xff] (%p41_p3), %v184_v0  ;;  %187 = vst [vmem:[%s150_s27 + $0x8] sm:$0xff] (%p41_p3), %v186_v1 }
  0x11 PF: > { %p557_p6 = scmp.ge.s32.totalorder %s707_s16, 1  ;;  %p204_p7 = scmp.lt.s32.totalorder %s707_s16, 20 }
  0x13   : > { %p205_p8 = pnand %p557_p6, %p204_p7 }
  0x14   : > { %s211_s28 = sand.u32 (!%p205_p8), 1, %s691_s12   ;;  %s559_s29 = sshll.u32 (!%p205_p8), %s699_s14, 5 }
  0x15   : > { %208 = sbr.rel (%p205_p8) target bundleno = 403 (0x193), region = 66  ;;  %s778_s30 = sshll.u32 (!%p205_p8), %s211_s28, 4 }
  0x16   : > { %p243_p9 = scmp.lt.s32.totalorder (!%p205_p8), %s559_s29, 607  ;;  %s213_s8 = scalar_lea.vmem (!%p205_p8), [#allocation3], %s778_s30 }
  0x17   : > { %p561_p10 = scmp.ne.s32.totalorder (!%p205_p8), %s699_s14, 0 }
  0x1a   : > { %s846_s29 = smov (!%p243_p9, %s559_s29), 607  ;;  %259 = sbr.rel (%p561_p10) target bundleno = 33 (0x21), region = 74 }
  0x1b   : > { %s560_s4 = sshll.u32 %s846_s29, 2 }
  0x1c   : > { %s783_s7 = scalar_lea.vmem %s836_s1, %s560_s4 }
  0x1f   : > { %v709_v2 = vmov 0.0  }
  0x20   : > { %260 = vst [vmem:[#allocation2] sm:$0xff] %v709_v2  ;;  %261 = vst [vmem:[#allocation2 + $0x8] sm:$0xff] %v709_v2 }
  0x21 PF: > { %v649_v3 = vld [vmem:[%s783_s7 + $0x78] sm:$0xff]   ;;  %v651_v5 = vld [vmem:[%s783_s7 + $0x70] sm:$0xff]   ;;  %v653_v7 = vld [vmem:[%s783_s7 + $0x68] sm:$0xff]   ;;  %p580_p11 = scmp.ne.s32.totalorder %s699_s14, 18 }
  0x22   : > { %v650_v4 = vld [vmem:[%s783_s7 + $0x38] sm:$0xff]   ;;  %585 = vmatprep.subr.bf16.mxu0 %v649_v3  ;;  %v652_v6 = vld [vmem:[%s783_s7 + $0x30] sm:$0xff]   ;;  %v654_v8 = vld [vmem:[%s783_s7 + $0x28] sm:$0xff]  }
  0x23   : > { %586 = vmatpush3.bf16.msra.mxu0 %v650_v4  ;;  %v655_v9 = vld [vmem:[%s783_s7 + $0x60] sm:$0xff]   ;;  %v657_v11 = vld [vmem:[%s783_s7 + $0x58] sm:$0xff]   ;;  %v659_v13 = vld [vmem:[%s783_s7 + $0x50] sm:$0xff]  }
  0x24   : > { %587 = vmatprep.subr.bf16.mxu0 %v651_v5  ;;  %v656_v10 = vld [vmem:[%s783_s7 + $0x20] sm:$0xff]   ;;  %v658_v12 = vld [vmem:[%s783_s7 + $0x18] sm:$0xff]   ;;  %v660_v15 = vld [vmem:[%s783_s7 + $0x10] sm:$0xff]  }
  0x25   : > { %v667_v14 = vld [vmem:[%s213_s8 + $0x4] ss:$8 sps:$4 sm:$0xff]   ;;  %v665_v20 = vld [vmem:[%s213_s8] ss:$8 sps:$4 sm:$0xff]  }
  0x26   : > { %436 = vmatprep.mubr.bf16.mxu0 %v667_v14  ;;  %v661_v16 = vld [vmem:[%s783_s7 + $0x48] sm:$0xff]   ;;  %v663_v18 = vld [vmem:[%s783_s7 + $0x40] sm:$0xff]  }
  0x27   : > { %588 = vmatpush3.bf16.msra.mxu0 %v652_v6  ;;  %v662_v17 = vld [vmem:[%s783_s7 + $0x8] sm:$0xff]   ;;  %v664_v19 = vld [vmem:[%s783_s7] sm:$0xff]  }
  0x28   : > { %589 = vmatprep.subr.bf16.mxu0 %v653_v7  ;;  %v262_v22 = vld [vmem:[#allocation2] sm:$0xff]  ;;  %v263_v27 = vld [vmem:[#allocation2 + $0x8] sm:$0xff] }
  0x2b   : > { %590 = vmatpush3.bf16.msra.mxu0 %v654_v8 }
  0x2c   : > { %591 = vmatprep.subr.bf16.mxu0 %v655_v9 }
  0x2f   : > { %592 = vmatpush3.bf16.msra.mxu0 %v656_v10 }
  0x30   : > { %593 = vmatprep.subr.bf16.mxu0 %v657_v11 }
  0x33   : > { %594 = vmatpush3.bf16.msra.mxu0 %v658_v12 }
  0x34   : > { %595 = vmatprep.subr.bf16.mxu0 %v659_v13 }
  0x37   : > { %596 = vmatpush3.bf16.msra.mxu0 %v660_v15 }
  0x38   : > { %597 = vmatprep.subr.bf16.mxu0 %v661_v16 }
  0x3b   : > { %598 = vmatpush3.bf16.msra.mxu0 %v662_v17 }
  0x3c   : > { %599 = vmatprep.subr.bf16.mxu0 %v663_v18 }
  0x3f   : > { %600 = vmatpush3.bf16.msra.mxu0 %v664_v19 }
  0x42   : > { %437 = vmatmul.mubr.bf16.vlgmr.msra.gmra.mxu0 %v665_v20 }
 0x102   : > { %v601_v21 = vpop.f32.mrf.mxu0 }
 0x104   : > { %v602_v23 = vpop.f32.mrf.mxu0 }
 0x105   : > { %v603_v24 = vadd.f32 %v602_v23, %v601_v21 }
 0x106   : > { %v604_v25 = vpop.f32.mrf.mxu0 }
 0x107   : > { %v445_v26 = vadd.f32 %v603_v24, %v262_v22 }
 0x108   : > { %v605_v28 = vpop.f32.mrf.mxu0 }
 0x109   : > { %447 = vst [vmem:[#allocation2] sm:$0xff] %v445_v26  ;;  %v606_v29 = vadd.f32 %v605_v28, %v604_v25  ;;  %452 = sbr.rel (%p580_p11) target bundleno = 403 (0x193), region = 78 }
 0x10b   : > { %v446_v30 = vadd.f32 %v606_v29, %v263_v27 }
 0x10d   : > { %448 = vst [vmem:[#allocation2 + $0x8] sm:$0xff] %v446_v30 }
 0x10e   : > { %v455_v31 = vld [vmem:[%s837_s2] sm:$0xff]  ;;  %v710_v32 = vmov 0   ;;  %v456_v33 = vld [vmem:[%s837_s2 + $0x8] sm:$0xff] }
 0x10f   : > { %668 = vset.pattern.permute.xlu0 %v710_v32 }
 0x110   : > { %459 = vperm.xlu0 %668, %v455_v31   ;;  %v453_v34 = vld [vmem:[#allocation2] sm:$0xff] }
 0x114   : > { %464 = vperm.xlu0 %668, %v456_v33   ;;  %v454_v37 = vld [vmem:[#allocation2 + $0x8] sm:$0xff] }
 0x18b   : > { %v460_v35 = vpop.permute.xlu0 %459 }
 0x18c   : > { %v467_v36 = vadd.f32 %v460_v35, %v453_v34 }
 0x18e   : > { %469 = vst [vmem:[%s838_s3] sm:$0xff] %v467_v36 }
 0x18f   : > { %v465_v38 = vpop.permute.xlu0 %464 }
 0x190   : > { %v468_v39 = vadd.f32 %v465_v38, %v454_v37 }
 0x192   : > { %470 = vst [vmem:[%s838_s3 + $0x8] sm:$0xff] %v468_v39 }
 0x193 PF: > { %s13_s16 = sadd.s32 1, %s707_s16   ;;  %s839_s12 = smov %s695_s13 }
 0x194   : > { %p10_p12 = scmp.ge.s32.totalorder %s13_s16, 21   ;;  %s840_s13 = smov %s766_s20 }
 0x195   : > { %s841_s14 = smov %s703_s15  ;;  %s842_s15 = smov %s844_s17 }
 0x196   :  { %12 = sbr.rel (!%p10_p12) target bundleno = 3 (0x3), region = 116 }

// kernel: csnet_forward.12
= control target key start
LH: loop header
LB: loop body
LE: loop exit
PB: predicated region body
PF: predicated region fallthrough
CT: control target
= control target key end

     0   :  { %s2815_s12 = smov 0   ;;  %s2817_s13 = smov 0   ;;  %s3535_s0 = inlined_call_operand.vmem [shape: bf16[8,19200], index: 0, kind: input, shape index: {}]   ;;  %s3536_s1 = inlined_call_operand.vmem [shape: bf16[19200,1024], index: 1, kind: input, shape index: {}]   ;;  %s3537_s2 = inlined_call_operand.vmem [shape: f32[8,1], index: 2, kind: input, shape index: {}]   ;;  %s3538_s3 = inlined_call_operand.vmem [shape: f32[8,1024], index: 3, kind: output, shape index: {}]  }
   0x1   :  { %s2819_s14 = smov 0   ;;  %s2821_s15 = smov 0  }
   0x2   :  { %s2823_s16 = smov 0   ;;  %s2825_s17 = smov 0  }
   0x3   :  { %s2827_s18 = smov 0  }
   0x4 LB: > { %s22_s19 = sadd.s32 1, %s2783_s16  ;;  %s25_s20 = sadd.s32 1, %s2787_s17  ;;  %s2791_s18 = sphi %s2827_s18, %s13_s18   ;;  %s2787_s17 = sphi %s2825_s17, %s3544_s17   ;;  %s2783_s16 = sphi %s2823_s16, %s3543_s16   ;;  %s2779_s15 = sphi %s2821_s15, %s3542_s15   ;;  %s2775_s14 = sphi %s2819_s14, %s3541_s14   ;;  %s2771_s13 = sphi %s2817_s13, %s3540_s13   ;;  %s2767_s12 = sphi %s2815_s12, %s3539_s12  }
   0x5   : > { %p23_p0 = scmp.ge.s32.totalorder %s22_s19, 25  ;;  %p67_p1 = scmp.ne.s32.totalorder %s2771_s13, %s2767_s12 }
   0x6   : > { %p68_p2 = scmp.eq.s32.totalorder %s2791_s18, 0  ;;  %s60_s24 = sadd.s32 1, %s2771_s13 }
   0x7   : > { %s3546_s19 = smov (%p23_p0, %s22_s19), 0  ;;  %s3548_s20 = smov (!%p23_p0, %s25_s20), %s2787_s17 }
   0x8   : > { %p69_p3 = por %p68_p2, %p67_p1  ;;  %p27_p4 = scmp.ge.s32.totalorder %s3548_s20, 2 }
   0x9   : > { %s55_s21 = ssub.s32 %s2783_s16, %s3546_s19  ;;  %p2171_p6 = scmp.ge.s32.totalorder %s2791_s18, 50 }
   0xa   : > { %s3550_s20 = smov (%p27_p4, %s3548_s20), 0 }
   0xb   : > { %s56_s22 = ssub.s32 %s2787_s17, %s3550_s20  ;;  %143 = sbr.rel (%p2171_p6) target bundleno = 120 (0x78), region = 20 }
   0xc   : > { %s57_s23 = sor.u32 %s56_s22, %s55_s21 }
   0xd   : > { %p58_p5 = scmp.eq.s32.totalorder %s57_s23, 0 }
   0xf   : > { %s2866_s25 = scalar_select %p58_p5, %s2771_s13, %s60_s24  }
  0x10   : > { %155 = sbr.rel (!%p69_p3) target bundleno = 120 (0x78), region = 28  ;;  %s157_s26 = sand.u32 (%p69_p3), 1, %s2771_s13  }
  0x11   : > { %s2382_s27 = smul.u32 (%p69_p3), 1536, %s157_s26  ;;  %s2172_s28 = sshll.u32 (%p69_p3), %s2787_s17, 2 }
  0x12   : > { %s2381_s29 = smul.u32 (%p69_p3), 768, %s2783_s16 }
  0x13   : > { %s2880_s8 = scalar_lea.vmem (%p69_p3), [#allocation3], %s2382_s27 }
  0x14   : > { %s163_s30 = sadd.s32 (%p69_p3), %s2381_s29, %s2172_s28 }
  0x15   : > { %s2174_s4 = sshll.u32 %s163_s30, 2 }
  0x16   : > { %s2875_s7 = scalar_lea.vmem %s3536_s1, %s2174_s4 }
  0x17   : > { %v178_v0 = vld [vmem:[%s2875_s7] sm:$0xff]  ;;  %v180_v1 = vld [vmem:[%s2875_s7 + $0x8] sm:$0xff] }
  0x18   : > { %v182_v2 = vld [vmem:[%s2875_s7 + $0x20] sm:$0xff]  ;;  %179 = vst [vmem:[%s2880_s8] sm:$0xff] %v178_v0  ;;  %181 = vst [vmem:[%s2880_s8 + $0x8] sm:$0xff] %v180_v1  ;;  %v184_v3 = vld [vmem:[%s2875_s7 + $0x28] sm:$0xff] }
  0x19   : > { %183 = vst [vmem:[%s2880_s8 + $0x10] sm:$0xff] %v182_v2  ;;  %v186_v4 = vld [vmem:[%s2875_s7 + $0x40] sm:$0xff]  ;;  %v188_v5 = vld [vmem:[%s2875_s7 + $0x48] sm:$0xff]  ;;  %185 = vst [vmem:[%s2880_s8 + $0x18] sm:$0xff] %v184_v3 }
  0x1a   : > { %187 = vst [vmem:[%s2880_s8 + $0x20] sm:$0xff] %v186_v4  ;;  %189 = vst [vmem:[%s2880_s8 + $0x28] sm:$0xff] %v188_v5  ;;  %v190_v6 = vld [vmem:[%s2875_s7 + $0x60] sm:$0xff]  ;;  %v192_v7 = vld [vmem:[%s2875_s7 + $0x68] sm:$0xff] }
  0x1b   : > { %v194_v8 = vld [vmem:[%s2875_s7 + $0x80] sm:$0xff]  ;;  %191 = vst [vmem:[%s2880_s8 + $0x30] sm:$0xff] %v190_v6  ;;  %193 = vst [vmem:[%s2880_s8 + $0x38] sm:$0xff] %v192_v7  ;;  %v196_v9 = vld [vmem:[%s2875_s7 + $0x88] sm:$0xff] }
  0x1c   : > { %195 = vst [vmem:[%s2880_s8 + $0x40] sm:$0xff] %v194_v8  ;;  %v198_v10 = vld [vmem:[%s2875_s7 + $0xa0] sm:$0xff]  ;;  %v200_v11 = vld [vmem:[%s2875_s7 + $0xa8] sm:$0xff]  ;;  %197 = vst [vmem:[%s2880_s8 + $0x48] sm:$0xff] %v196_v9 }
  0x1d   : > { %199 = vst [vmem:[%s2880_s8 + $0x50] sm:$0xff] %v198_v10  ;;  %201 = vst [vmem:[%s2880_s8 + $0x58] sm:$0xff] %v200_v11  ;;  %v202_v12 = vld [vmem:[%s2875_s7 + $0xc0] sm:$0xff]  ;;  %v204_v13 = vld [vmem:[%s2875_s7 + $0xc8] sm:$0xff] }
  0x1e   : > { %v206_v14 = vld [vmem:[%s2875_s7 + $0xe0] sm:$0xff]  ;;  %203 = vst [vmem:[%s2880_s8 + $0x60] sm:$0xff] %v202_v12  ;;  %205 = vst [vmem:[%s2880_s8 + $0x68] sm:$0xff] %v204_v13  ;;  %v208_v15 = vld [vmem:[%s2875_s7 + $0xe8] sm:$0xff] }
  0x1f   : > { %207 = vst [vmem:[%s2880_s8 + $0x70] sm:$0xff] %v206_v14  ;;  %v210_v16 = vld [vmem:[%s2875_s7 + $0x100] sm:$0xff]  ;;  %v212_v17 = vld [vmem:[%s2875_s7 + $0x108] sm:$0xff]  ;;  %209 = vst [vmem:[%s2880_s8 + $0x78] sm:$0xff] %v208_v15 }
  0x20   : > { %211 = vst [vmem:[%s2880_s8 + $0x80] sm:$0xff] %v210_v16  ;;  %213 = vst [vmem:[%s2880_s8 + $0x88] sm:$0xff] %v212_v17  ;;  %v214_v18 = vld [vmem:[%s2875_s7 + $0x120] sm:$0xff]  ;;  %v216_v19 = vld [vmem:[%s2875_s7 + $0x128] sm:$0xff] }
  0x21   : > { %v218_v20 = vld [vmem:[%s2875_s7 + $0x140] sm:$0xff]  ;;  %215 = vst [vmem:[%s2880_s8 + $0x90] sm:$0xff] %v214_v18  ;;  %217 = vst [vmem:[%s2880_s8 + $0x98] sm:$0xff] %v216_v19  ;;  %v220_v21 = vld [vmem:[%s2875_s7 + $0x148] sm:$0xff] }
  0x22   : > { %219 = vst [vmem:[%s2880_s8 + $0xa0] sm:$0xff] %v218_v20  ;;  %v222_v22 = vld [vmem:[%s2875_s7 + $0x160] sm:$0xff]  ;;  %v224_v23 = vld [vmem:[%s2875_s7 + $0x168] sm:$0xff]  ;;  %221 = vst [vmem:[%s2880_s8 + $0xa8] sm:$0xff] %v220_v21 }
  0x23   : > { %223 = vst [vmem:[%s2880_s8 + $0xb0] sm:$0xff] %v222_v22  ;;  %225 = vst [vmem:[%s2880_s8 + $0xb8] sm:$0xff] %v224_v23  ;;  %v226_v24 = vld [vmem:[%s2875_s7 + $0x180] sm:$0xff]  ;;  %v228_v25 = vld [vmem:[%s2875_s7 + $0x188] sm:$0xff] }
  0x24   : > { %v230_v26 = vld [vmem:[%s2875_s7 + $0x1a0] sm:$0xff]  ;;  %227 = vst [vmem:[%s2880_s8 + $0xc0] sm:$0xff] %v226_v24  ;;  %229 = vst [vmem:[%s2880_s8 + $0xc8] sm:$0xff] %v228_v25  ;;  %v232_v27 = vld [vmem:[%s2875_s7 + $0x1a8] sm:$0xff] }
  0x25   : > { %231 = vst [vmem:[%s2880_s8 + $0xd0] sm:$0xff] %v230_v26  ;;  %v234_v28 = vld [vmem:[%s2875_s7 + $0x1c0] sm:$0xff]  ;;  %v236_v29 = vld [vmem:[%s2875_s7 + $0x1c8] sm:$0xff]  ;;  %233 = vst [vmem:[%s2880_s8 + $0xd8] sm:$0xff] %v232_v27 }
  0x26   : > { %235 = vst [vmem:[%s2880_s8 + $0xe0] sm:$0xff] %v234_v28  ;;  %237 = vst [vmem:[%s2880_s8 + $0xe8] sm:$0xff] %v236_v29  ;;  %v238_v30 = vld [vmem:[%s2875_s7 + $0x1e0] sm:$0xff]  ;;  %v240_v31 = vld [vmem:[%s2875_s7 + $0x1e8] sm:$0xff] }
  0x27   : > { %v242_v32 = vld [vmem:[%s2875_s7 + $0x200] sm:$0xff]  ;;  %239 = vst [vmem:[%s2880_s8 + $0xf0] sm:$0xff] %v238_v30  ;;  %241 = vst [vmem:[%s2880_s8 + $0xf8] sm:$0xff] %v240_v31  ;;  %v244_v33 = vld [vmem:[%s2875_s7 + $0x208] sm:$0xff] }
  0x28   : > { %243 = vst [vmem:[%s2880_s8 + $0x100] sm:$0xff] %v242_v32  ;;  %v246_v34 = vld [vmem:[%s2875_s7 + $0x220] sm:$0xff]  ;;  %v248_v35 = vld [vmem:[%s2875_s7 + $0x228] sm:$0xff]  ;;  %245 = vst [vmem:[%s2880_s8 + $0x108] sm:$0xff] %v244_v33 }
  0x29   : > { %247 = vst [vmem:[%s2880_s8 + $0x110] sm:$0xff] %v246_v34  ;;  %249 = vst [vmem:[%s2880_s8 + $0x118] sm:$0xff] %v248_v35  ;;  %v250_v36 = vld [vmem:[%s2875_s7 + $0x240] sm:$0xff]  ;;  %v252_v37 = vld [vmem:[%s2875_s7 + $0x248] sm:$0xff] }
  0x2a   : > { %v254_v38 = vld [vmem:[%s2875_s7 + $0x260] sm:$0xff]  ;;  %251 = vst [vmem:[%s2880_s8 + $0x120] sm:$0xff] %v250_v36  ;;  %253 = vst [vmem:[%s2880_s8 + $0x128] sm:$0xff] %v252_v37  ;;  %v256_v39 = vld [vmem:[%s2875_s7 + $0x268] sm:$0xff] }
  0x2b   : > { %255 = vst [vmem:[%s2880_s8 + $0x130] sm:$0xff] %v254_v38  ;;  %v258_v40 = vld [vmem:[%s2875_s7 + $0x280] sm:$0xff]  ;;  %v260_v41 = vld [vmem:[%s2875_s7 + $0x288] sm:$0xff]  ;;  %257 = vst [vmem:[%s2880_s8 + $0x138] sm:$0xff] %v256_v39 }
  0x2c   : > { %259 = vst [vmem:[%s2880_s8 + $0x140] sm:$0xff] %v258_v40  ;;  %261 = vst [vmem:[%s2880_s8 + $0x148] sm:$0xff] %v260_v41  ;;  %v262_v42 = vld [vmem:[%s2875_s7 + $0x2a0] sm:$0xff]  ;;  %v264_v43 = vld [vmem:[%s2875_s7 + $0x2a8] sm:$0xff] }
  0x2d   : > { %v266_v44 = vld [vmem:[%s2875_s7 + $0x2c0] sm:$0xff]  ;;  %263 = vst [vmem:[%s2880_s8 + $0x150] sm:$0xff] %v262_v42  ;;  %265 = vst [vmem:[%s2880_s8 + $0x158] sm:$0xff] %v264_v43  ;;  %v268_v45 = vld [vmem:[%s2875_s7 + $0x2c8] sm:$0xff] }
  0x2e   : > { %267 = vst [vmem:[%s2880_s8 + $0x160] sm:$0xff] %v266_v44  ;;  %v270_v46 = vld [vmem:[%s2875_s7 + $0x2e0] sm:$0xff]  ;;  %v272_v47 = vld [vmem:[%s2875_s7 + $0x2e8] sm:$0xff]  ;;  %269 = vst [vmem:[%s2880_s8 + $0x168] sm:$0xff] %v268_v45 }
  0x2f   : > { %271 = vst [vmem:[%s2880_s8 + $0x170] sm:$0xff] %v270_v46  ;;  %273 = vst [vmem:[%s2880_s8 + $0x178] sm:$0xff] %v272_v47  ;;  %v274_v48 = vld [vmem:[%s2875_s7 + $0x300] sm:$0xff]  ;;  %v276_v49 = vld [vmem:[%s2875_s7 + $0x308] sm:$0xff] }
  0x30   : > { %v278_v50 = vld [vmem:[%s2875_s7 + $0x320] sm:$0xff]  ;;  %275 = vst [vmem:[%s2880_s8 + $0x180] sm:$0xff] %v274_v48  ;;  %277 = vst [vmem:[%s2880_s8 + $0x188] sm:$0xff] %v276_v49  ;;  %v280_v51 = vld [vmem:[%s2875_s7 + $0x328] sm:$0xff] }
  0x31   : > { %279 = vst [vmem:[%s2880_s8 + $0x190] sm:$0xff] %v278_v50  ;;  %v282_v52 = vld [vmem:[%s2875_s7 + $0x340] sm:$0xff]  ;;  %v284_v53 = vld [vmem:[%s2875_s7 + $0x348] sm:$0xff]  ;;  %281 = vst [vmem:[%s2880_s8 + $0x198] sm:$0xff] %v280_v51 }
  0x32   : > { %283 = vst [vmem:[%s2880_s8 + $0x1a0] sm:$0xff] %v282_v52  ;;  %285 = vst [vmem:[%s2880_s8 + $0x1a8] sm:$0xff] %v284_v53  ;;  %v286_v54 = vld [vmem:[%s2875_s7 + $0x360] sm:$0xff]  ;;  %v288_v55 = vld [vmem:[%s2875_s7 + $0x368] sm:$0xff] }
  0x33   : > { %v290_v56 = vld [vmem:[%s2875_s7 + $0x380] sm:$0xff]  ;;  %287 = vst [vmem:[%s2880_s8 + $0x1b0] sm:$0xff] %v286_v54  ;;  %289 = vst [vmem:[%s2880_s8 + $0x1b8] sm:$0xff] %v288_v55  ;;  %v292_v57 = vld [vmem:[%s2875_s7 + $0x388] sm:$0xff] }
  0x34   : > { %291 = vst [vmem:[%s2880_s8 + $0x1c0] sm:$0xff] %v290_v56  ;;  %v294_v58 = vld [vmem:[%s2875_s7 + $0x3a0] sm:$0xff]  ;;  %v296_v59 = vld [vmem:[%s2875_s7 + $0x3a8] sm:$0xff]  ;;  %293 = vst [vmem:[%s2880_s8 + $0x1c8] sm:$0xff] %v292_v57 }
  0x35   : > { %295 = vst [vmem:[%s2880_s8 + $0x1d0] sm:$0xff] %v294_v58  ;;  %297 = vst [vmem:[%s2880_s8 + $0x1d8] sm:$0xff] %v296_v59  ;;  %v298_v60 = vld [vmem:[%s2875_s7 + $0x3c0] sm:$0xff]  ;;  %v300_v61 = vld [vmem:[%s2875_s7 + $0x3c8] sm:$0xff] }
  0x36   : > { %v302_v62 = vld [vmem:[%s2875_s7 + $0x3e0] sm:$0xff]  ;;  %299 = vst [vmem:[%s2880_s8 + $0x1e0] sm:$0xff] %v298_v60  ;;  %301 = vst [vmem:[%s2880_s8 + $0x1e8] sm:$0xff] %v300_v61  ;;  %v304_v63 = vld [vmem:[%s2875_s7 + $0x3e8] sm:$0xff] }
  0x37   : > { %303 = vst [vmem:[%s2880_s8 + $0x1f0] sm:$0xff] %v302_v62  ;;  %v306_v0 = vld [vmem:[%s2875_s7 + $0x400] sm:$0xff]  ;;  %v308_v1 = vld [vmem:[%s2875_s7 + $0x408] sm:$0xff]  ;;  %305 = vst [vmem:[%s2880_s8 + $0x1f8] sm:$0xff] %v304_v63 }
  0x38   : > { %307 = vst [vmem:[%s2880_s8 + $0x200] sm:$0xff] %v306_v0  ;;  %309 = vst [vmem:[%s2880_s8 + $0x208] sm:$0xff] %v308_v1  ;;  %v310_v2 = vld [vmem:[%s2875_s7 + $0x420] sm:$0xff]  ;;  %v312_v3 = vld [vmem:[%s2875_s7 + $0x428] sm:$0xff] }
  0x39   : > { %v314_v4 = vld [vmem:[%s2875_s7 + $0x440] sm:$0xff]  ;;  %311 = vst [vmem:[%s2880_s8 + $0x210] sm:$0xff] %v310_v2  ;;  %313 = vst [vmem:[%s2880_s8 + $0x218] sm:$0xff] %v312_v3  ;;  %v316_v5 = vld [vmem:[%s2875_s7 + $0x448] sm:$0xff] }
  0x3a   : > { %315 = vst [vmem:[%s2880_s8 + $0x220] sm:$0xff] %v314_v4  ;;  %v318_v6 = vld [vmem:[%s2875_s7 + $0x460] sm:$0xff]  ;;  %v320_v7 = vld [vmem:[%s2875_s7 + $0x468] sm:$0xff]  ;;  %317 = vst [vmem:[%s2880_s8 + $0x228] sm:$0xff] %v316_v5 }
  0x3b   : > { %319 = vst [vmem:[%s2880_s8 + $0x230] sm:$0xff] %v318_v6  ;;  %321 = vst [vmem:[%s2880_s8 + $0x238] sm:$0xff] %v320_v7  ;;  %v322_v8 = vld [vmem:[%s2875_s7 + $0x480] sm:$0xff]  ;;  %v324_v9 = vld [vmem:[%s2875_s7 + $0x488] sm:$0xff] }
  0x3c   : > { %v326_v10 = vld [vmem:[%s2875_s7 + $0x4a0] sm:$0xff]  ;;  %323 = vst [vmem:[%s2880_s8 + $0x240] sm:$0xff] %v322_v8  ;;  %325 = vst [vmem:[%s2880_s8 + $0x248] sm:$0xff] %v324_v9  ;;  %v328_v11 = vld [vmem:[%s2875_s7 + $0x4a8] sm:$0xff] }
  0x3d   : > { %327 = vst [vmem:[%s2880_s8 + $0x250] sm:$0xff] %v326_v10  ;;  %v330_v12 = vld [vmem:[%s2875_s7 + $0x4c0] sm:$0xff]  ;;  %v332_v13 = vld [vmem:[%s2875_s7 + $0x4c8] sm:$0xff]  ;;  %329 = vst [vmem:[%s2880_s8 + $0x258] sm:$0xff] %v328_v11 }
  0x3e   : > { %331 = vst [vmem:[%s2880_s8 + $0x260] sm:$0xff] %v330_v12  ;;  %333 = vst [vmem:[%s2880_s8 + $0x268] sm:$0xff] %v332_v13  ;;  %v334_v14 = vld [vmem:[%s2875_s7 + $0x4e0] sm:$0xff]  ;;  %v336_v15 = vld [vmem:[%s2875_s7 + $0x4e8] sm:$0xff] }
  0x3f   : > { %v338_v16 = vld [vmem:[%s2875_s7 + $0x500] sm:$0xff]  ;;  %335 = vst [vmem:[%s2880_s8 + $0x270] sm:$0xff] %v334_v14  ;;  %337 = vst [vmem:[%s2880_s8 + $0x278] sm:$0xff] %v336_v15  ;;  %v340_v17 = vld [vmem:[%s2875_s7 + $0x508] sm:$0xff] }
  0x40   : > { %339 = vst [vmem:[%s2880_s8 + $0x280] sm:$0xff] %v338_v16  ;;  %v342_v18 = vld [vmem:[%s2875_s7 + $0x520] sm:$0xff]  ;;  %v344_v19 = vld [vmem:[%s2875_s7 + $0x528] sm:$0xff]  ;;  %341 = vst [vmem:[%s2880_s8 + $0x288] sm:$0xff] %v340_v17 }
  0x41   : > { %343 = vst [vmem:[%s2880_s8 + $0x290] sm:$0xff] %v342_v18  ;;  %345 = vst [vmem:[%s2880_s8 + $0x298] sm:$0xff] %v344_v19  ;;  %v346_v20 = vld [vmem:[%s2875_s7 + $0x540] sm:$0xff]  ;;  %v348_v21 = vld [vmem:[%s2875_s7 + $0x548] sm:$0xff] }
  0x42   : > { %v350_v22 = vld [vmem:[%s2875_s7 + $0x560] sm:$0xff]  ;;  %347 = vst [vmem:[%s2880_s8 + $0x2a0] sm:$0xff] %v346_v20  ;;  %349 = vst [vmem:[%s2880_s8 + $0x2a8] sm:$0xff] %v348_v21  ;;  %v352_v23 = vld [vmem:[%s2875_s7 + $0x568] sm:$0xff] }
  0x43   : > { %351 = vst [vmem:[%s2880_s8 + $0x2b0] sm:$0xff] %v350_v22  ;;  %v354_v24 = vld [vmem:[%s2875_s7 + $0x580] sm:$0xff]  ;;  %v356_v25 = vld [vmem:[%s2875_s7 + $0x588] sm:$0xff]  ;;  %353 = vst [vmem:[%s2880_s8 + $0x2b8] sm:$0xff] %v352_v23 }
  0x44   : > { %355 = vst [vmem:[%s2880_s8 + $0x2c0] sm:$0xff] %v354_v24  ;;  %357 = vst [vmem:[%s2880_s8 + $0x2c8] sm:$0xff] %v356_v25  ;;  %v358_v26 = vld [vmem:[%s2875_s7 + $0x5a0] sm:$0xff]  ;;  %v360_v27 = vld [vmem:[%s2875_s7 + $0x5a8] sm:$0xff] }
  0x45   : > { %v362_v28 = vld [vmem:[%s2875_s7 + $0x5c0] sm:$0xff]  ;;  %359 = vst [vmem:[%s2880_s8 + $0x2d0] sm:$0xff] %v358_v26  ;;  %361 = vst [vmem:[%s2880_s8 + $0x2d8] sm:$0xff] %v360_v27  ;;  %v364_v29 = vld [vmem:[%s2875_s7 + $0x5c8] sm:$0xff] }
  0x46   : > { %363 = vst [vmem:[%s2880_s8 + $0x2e0] sm:$0xff] %v362_v28  ;;  %v366_v30 = vld [vmem:[%s2875_s7 + $0x5e0] sm:$0xff]  ;;  %v368_v31 = vld [vmem:[%s2875_s7 + $0x5e8] sm:$0xff]  ;;  %365 = vst [vmem:[%s2880_s8 + $0x2e8] sm:$0xff] %v364_v29 }
  0x47   : > { %367 = vst [vmem:[%s2880_s8 + $0x2f0] sm:$0xff] %v366_v30  ;;  %369 = vst [vmem:[%s2880_s8 + $0x2f8] sm:$0xff] %v368_v31  ;;  %v370_v32 = vld [vmem:[%s2875_s7 + $0x600] sm:$0xff]  ;;  %v372_v33 = vld [vmem:[%s2875_s7 + $0x608] sm:$0xff] }
  0x48   : > { %v374_v34 = vld [vmem:[%s2875_s7 + $0x620] sm:$0xff]  ;;  %371 = vst [vmem:[%s2880_s8 + $0x300] sm:$0xff] %v370_v32  ;;  %373 = vst [vmem:[%s2880_s8 + $0x308] sm:$0xff] %v372_v33  ;;  %v376_v35 = vld [vmem:[%s2875_s7 + $0x628] sm:$0xff] }
  0x49   : > { %375 = vst [vmem:[%s2880_s8 + $0x310] sm:$0xff] %v374_v34  ;;  %v378_v36 = vld [vmem:[%s2875_s7 + $0x640] sm:$0xff]  ;;  %v380_v37 = vld [vmem:[%s2875_s7 + $0x648] sm:$0xff]  ;;  %377 = vst [vmem:[%s2880_s8 + $0x318] sm:$0xff] %v376_v35 }
  0x4a   : > { %379 = vst [vmem:[%s2880_s8 + $0x320] sm:$0xff] %v378_v36  ;;  %381 = vst [vmem:[%s2880_s8 + $0x328] sm:$0xff] %v380_v37  ;;  %v382_v38 = vld [vmem:[%s2875_s7 + $0x660] sm:$0xff]  ;;  %v384_v39 = vld [vmem:[%s2875_s7 + $0x668] sm:$0xff] }
  0x4b   : > { %v386_v40 = vld [vmem:[%s2875_s7 + $0x680] sm:$0xff]  ;;  %383 = vst [vmem:[%s2880_s8 + $0x330] sm:$0xff] %v382_v38  ;;  %385 = vst [vmem:[%s2880_s8 + $0x338] sm:$0xff] %v384_v39  ;;  %v388_v41 = vld [vmem:[%s2875_s7 + $0x688] sm:$0xff] }
  0x4c   : > { %387 = vst [vmem:[%s2880_s8 + $0x340] sm:$0xff] %v386_v40  ;;  %v390_v42 = vld [vmem:[%s2875_s7 + $0x6a0] sm:$0xff]  ;;  %v392_v43 = vld [vmem:[%s2875_s7 + $0x6a8] sm:$0xff]  ;;  %389 = vst [vmem:[%s2880_s8 + $0x348] sm:$0xff] %v388_v41 }
  0x4d   : > { %391 = vst [vmem:[%s2880_s8 + $0x350] sm:$0xff] %v390_v42  ;;  %393 = vst [vmem:[%s2880_s8 + $0x358] sm:$0xff] %v392_v43  ;;  %v394_v44 = vld [vmem:[%s2875_s7 + $0x6c0] sm:$0xff]  ;;  %v396_v45 = vld [vmem:[%s2875_s7 + $0x6c8] sm:$0xff] }
  0x4e   : > { %v398_v46 = vld [vmem:[%s2875_s7 + $0x6e0] sm:$0xff]  ;;  %395 = vst [vmem:[%s2880_s8 + $0x360] sm:$0xff] %v394_v44  ;;  %397 = vst [vmem:[%s2880_s8 + $0x368] sm:$0xff] %v396_v45  ;;  %v400_v47 = vld [vmem:[%s2875_s7 + $0x6e8] sm:$0xff] }
  0x4f   : > { %399 = vst [vmem:[%s2880_s8 + $0x370] sm:$0xff] %v398_v46  ;;  %v402_v48 = vld [vmem:[%s2875_s7 + $0x700] sm:$0xff]  ;;  %v404_v49 = vld [vmem:[%s2875_s7 + $0x708] sm:$0xff]  ;;  %401 = vst [vmem:[%s2880_s8 + $0x378] sm:$0xff] %v400_v47 }
  0x50   : > { %403 = vst [vmem:[%s2880_s8 + $0x380] sm:$0xff] %v402_v48  ;;  %405 = vst [vmem:[%s2880_s8 + $0x388] sm:$0xff] %v404_v49  ;;  %v406_v50 = vld [vmem:[%s2875_s7 + $0x720] sm:$0xff]  ;;  %v408_v51 = vld [vmem:[%s2875_s7 + $0x728] sm:$0xff] }
  0x51   : > { %v410_v52 = vld [vmem:[%s2875_s7 + $0x740] sm:$0xff]  ;;  %407 = vst [vmem:[%s2880_s8 + $0x390] sm:$0xff] %v406_v50  ;;  %409 = vst [vmem:[%s2880_s8 + $0x398] sm:$0xff] %v408_v51  ;;  %v412_v53 = vld [vmem:[%s2875_s7 + $0x748] sm:$0xff] }
  0x52   : > { %411 = vst [vmem:[%s2880_s8 + $0x3a0] sm:$0xff] %v410_v52  ;;  %v414_v54 = vld [vmem:[%s2875_s7 + $0x760] sm:$0xff]  ;;  %v416_v55 = vld [vmem:[%s2875_s7 + $0x768] sm:$0xff]  ;;  %413 = vst [vmem:[%s2880_s8 + $0x3a8] sm:$0xff] %v412_v53 }
  0x53   : > { %415 = vst [vmem:[%s2880_s8 + $0x3b0] sm:$0xff] %v414_v54  ;;  %417 = vst [vmem:[%s2880_s8 + $0x3b8] sm:$0xff] %v416_v55  ;;  %v418_v56 = vld [vmem:[%s2875_s7 + $0x780] sm:$0xff]  ;;  %v420_v57 = vld [vmem:[%s2875_s7 + $0x788] sm:$0xff] }
  0x54   : > { %v422_v58 = vld [vmem:[%s2875_s7 + $0x7a0] sm:$0xff]  ;;  %419 = vst [vmem:[%s2880_s8 + $0x3c0] sm:$0xff] %v418_v56  ;;  %421 = vst [vmem:[%s2880_s8 + $0x3c8] sm:$0xff] %v420_v57  ;;  %v424_v59 = vld [vmem:[%s2875_s7 + $0x7a8] sm:$0xff] }
  0x55   : > { %423 = vst [vmem:[%s2880_s8 + $0x3d0] sm:$0xff] %v422_v58  ;;  %v426_v60 = vld [vmem:[%s2875_s7 + $0x7c0] sm:$0xff]  ;;  %v428_v61 = vld [vmem:[%s2875_s7 + $0x7c8] sm:$0xff]  ;;  %425 = vst [vmem:[%s2880_s8 + $0x3d8] sm:$0xff] %v424_v59 }
  0x56   : > { %427 = vst [vmem:[%s2880_s8 + $0x3e0] sm:$0xff] %v426_v60  ;;  %429 = vst [vmem:[%s2880_s8 + $0x3e8] sm:$0xff] %v428_v61  ;;  %v430_v62 = vld [vmem:[%s2875_s7 + $0x7e0] sm:$0xff]  ;;  %v432_v63 = vld [vmem:[%s2875_s7 + $0x7e8] sm:$0xff] }
  0x57   : > { %v434_v0 = vld [vmem:[%s2875_s7 + $0x800] sm:$0xff]  ;;  %431 = vst [vmem:[%s2880_s8 + $0x3f0] sm:$0xff] %v430_v62  ;;  %433 = vst [vmem:[%s2880_s8 + $0x3f8] sm:$0xff] %v432_v63  ;;  %v436_v1 = vld [vmem:[%s2875_s7 + $0x808] sm:$0xff] }
  0x58   : > { %435 = vst [vmem:[%s2880_s8 + $0x400] sm:$0xff] %v434_v0  ;;  %v438_v2 = vld [vmem:[%s2875_s7 + $0x820] sm:$0xff]  ;;  %v440_v3 = vld [vmem:[%s2875_s7 + $0x828] sm:$0xff]  ;;  %437 = vst [vmem:[%s2880_s8 + $0x408] sm:$0xff] %v436_v1 }
  0x59   : > { %439 = vst [vmem:[%s2880_s8 + $0x410] sm:$0xff] %v438_v2  ;;  %441 = vst [vmem:[%s2880_s8 + $0x418] sm:$0xff] %v440_v3  ;;  %v442_v4 = vld [vmem:[%s2875_s7 + $0x840] sm:$0xff]  ;;  %v444_v5 = vld [vmem:[%s2875_s7 + $0x848] sm:$0xff] }
  0x5a   : > { %v446_v6 = vld [vmem:[%s2875_s7 + $0x860] sm:$0xff]  ;;  %443 = vst [vmem:[%s2880_s8 + $0x420] sm:$0xff] %v442_v4  ;;  %445 = vst [vmem:[%s2880_s8 + $0x428] sm:$0xff] %v444_v5  ;;  %v448_v7 = vld [vmem:[%s2875_s7 + $0x868] sm:$0xff] }
  0x5b   : > { %447 = vst [vmem:[%s2880_s8 + $0x430] sm:$0xff] %v446_v6  ;;  %v450_v8 = vld [vmem:[%s2875_s7 + $0x880] sm:$0xff]  ;;  %v452_v9 = vld [vmem:[%s2875_s7 + $0x888] sm:$0xff]  ;;  %449 = vst [vmem:[%s2880_s8 + $0x438] sm:$0xff] %v448_v7 }
  0x5c   : > { %451 = vst [vmem:[%s2880_s8 + $0x440] sm:$0xff] %v450_v8  ;;  %453 = vst [vmem:[%s2880_s8 + $0x448] sm:$0xff] %v452_v9  ;;  %v454_v10 = vld [vmem:[%s2875_s7 + $0x8a0] sm:$0xff]  ;;  %v456_v11 = vld [vmem:[%s2875_s7 + $0x8a8] sm:$0xff] }
  0x5d   : > { %v458_v12 = vld [vmem:[%s2875_s7 + $0x8c0] sm:$0xff]  ;;  %455 = vst [vmem:[%s2880_s8 + $0x450] sm:$0xff] %v454_v10  ;;  %457 = vst [vmem:[%s2880_s8 + $0x458] sm:$0xff] %v456_v11  ;;  %v460_v13 = vld [vmem:[%s2875_s7 + $0x8c8] sm:$0xff] }
  0x5e   : > { %459 = vst [vmem:[%s2880_s8 + $0x460] sm:$0xff] %v458_v12  ;;  %v462_v14 = vld [vmem:[%s2875_s7 + $0x8e0] sm:$0xff]  ;;  %v464_v15 = vld [vmem:[%s2875_s7 + $0x8e8] sm:$0xff]  ;;  %461 = vst [vmem:[%s2880_s8 + $0x468] sm:$0xff] %v460_v13 }
  0x5f   : > { %463 = vst [vmem:[%s2880_s8 + $0x470] sm:$0xff] %v462_v14  ;;  %465 = vst [vmem:[%s2880_s8 + $0x478] sm:$0xff] %v464_v15  ;;  %v466_v16 = vld [vmem:[%s2875_s7 + $0x900] sm:$0xff]  ;;  %v468_v17 = vld [vmem:[%s2875_s7 + $0x908] sm:$0xff] }
  0x60   : > { %v470_v18 = vld [vmem:[%s2875_s7 + $0x920] sm:$0xff]  ;;  %467 = vst [vmem:[%s2880_s8 + $0x480] sm:$0xff] %v466_v16  ;;  %469 = vst [vmem:[%s2880_s8 + $0x488] sm:$0xff] %v468_v17  ;;  %v472_v19 = vld [vmem:[%s2875_s7 + $0x928] sm:$0xff] }
  0x61   : > { %471 = vst [vmem:[%s2880_s8 + $0x490] sm:$0xff] %v470_v18  ;;  %v474_v20 = vld [vmem:[%s2875_s7 + $0x940] sm:$0xff]  ;;  %v476_v21 = vld [vmem:[%s2875_s7 + $0x948] sm:$0xff]  ;;  %473 = vst [vmem:[%s2880_s8 + $0x498] sm:$0xff] %v472_v19 }
  0x62   : > { %475 = vst [vmem:[%s2880_s8 + $0x4a0] sm:$0xff] %v474_v20  ;;  %477 = vst [vmem:[%s2880_s8 + $0x4a8] sm:$0xff] %v476_v21  ;;  %v478_v22 = vld [vmem:[%s2875_s7 + $0x960] sm:$0xff]  ;;  %v480_v23 = vld [vmem:[%s2875_s7 + $0x968] sm:$0xff] }
  0x63   : > { %v482_v24 = vld [vmem:[%s2875_s7 + $0x980] sm:$0xff]  ;;  %479 = vst [vmem:[%s2880_s8 + $0x4b0] sm:$0xff] %v478_v22  ;;  %481 = vst [vmem:[%s2880_s8 + $0x4b8] sm:$0xff] %v480_v23  ;;  %v484_v25 = vld [vmem:[%s2875_s7 + $0x988] sm:$0xff] }
  0x64   : > { %483 = vst [vmem:[%s2880_s8 + $0x4c0] sm:$0xff] %v482_v24  ;;  %v486_v26 = vld [vmem:[%s2875_s7 + $0x9a0] sm:$0xff]  ;;  %v488_v27 = vld [vmem:[%s2875_s7 + $0x9a8] sm:$0xff]  ;;  %485 = vst [vmem:[%s2880_s8 + $0x4c8] sm:$0xff] %v484_v25 }
  0x65   : > { %487 = vst [vmem:[%s2880_s8 + $0x4d0] sm:$0xff] %v486_v26  ;;  %489 = vst [vmem:[%s2880_s8 + $0x4d8] sm:$0xff] %v488_v27  ;;  %v490_v28 = vld [vmem:[%s2875_s7 + $0x9c0] sm:$0xff]  ;;  %v492_v29 = vld [vmem:[%s2875_s7 + $0x9c8] sm:$0xff] }
  0x66   : > { %v494_v30 = vld [vmem:[%s2875_s7 + $0x9e0] sm:$0xff]  ;;  %491 = vst [vmem:[%s2880_s8 + $0x4e0] sm:$0xff] %v490_v28  ;;  %493 = vst [vmem:[%s2880_s8 + $0x4e8] sm:$0xff] %v492_v29  ;;  %v496_v31 = vld [vmem:[%s2875_s7 + $0x9e8] sm:$0xff] }
  0x67   : > { %495 = vst [vmem:[%s2880_s8 + $0x4f0] sm:$0xff] %v494_v30  ;;  %v498_v32 = vld [vmem:[%s2875_s7 + $0xa00] sm:$0xff]  ;;  %v500_v33 = vld [vmem:[%s2875_s7 + $0xa08] sm:$0xff]  ;;  %497 = vst [vmem:[%s2880_s8 + $0x4f8] sm:$0xff] %v496_v31 }
  0x68   : > { %499 = vst [vmem:[%s2880_s8 + $0x500] sm:$0xff] %v498_v32  ;;  %501 = vst [vmem:[%s2880_s8 + $0x508] sm:$0xff] %v500_v33  ;;  %v502_v34 = vld [vmem:[%s2875_s7 + $0xa20] sm:$0xff]  ;;  %v504_v35 = vld [vmem:[%s2875_s7 + $0xa28] sm:$0xff] }
  0x69   : > { %v506_v36 = vld [vmem:[%s2875_s7 + $0xa40] sm:$0xff]  ;;  %503 = vst [vmem:[%s2880_s8 + $0x510] sm:$0xff] %v502_v34  ;;  %505 = vst [vmem:[%s2880_s8 + $0x518] sm:$0xff] %v504_v35  ;;  %v508_v37 = vld [vmem:[%s2875_s7 + $0xa48] sm:$0xff] }
  0x6a   : > { %507 = vst [vmem:[%s2880_s8 + $0x520] sm:$0xff] %v506_v36  ;;  %v510_v38 = vld [vmem:[%s2875_s7 + $0xa60] sm:$0xff]  ;;  %v512_v39 = vld [vmem:[%s2875_s7 + $0xa68] sm:$0xff]  ;;  %509 = vst [vmem:[%s2880_s8 + $0x528] sm:$0xff] %v508_v37 }
  0x6b   : > { %511 = vst [vmem:[%s2880_s8 + $0x530] sm:$0xff] %v510_v38  ;;  %513 = vst [vmem:[%s2880_s8 + $0x538] sm:$0xff] %v512_v39  ;;  %v514_v40 = vld [vmem:[%s2875_s7 + $0xa80] sm:$0xff]  ;;  %v516_v41 = vld [vmem:[%s2875_s7 + $0xa88] sm:$0xff] }
  0x6c   : > { %v518_v42 = vld [vmem:[%s2875_s7 + $0xaa0] sm:$0xff]  ;;  %515 = vst [vmem:[%s2880_s8 + $0x540] sm:$0xff] %v514_v40  ;;  %517 = vst [vmem:[%s2880_s8 + $0x548] sm:$0xff] %v516_v41  ;;  %v520_v43 = vld [vmem:[%s2875_s7 + $0xaa8] sm:$0xff] }
  0x6d   : > { %519 = vst [vmem:[%s2880_s8 + $0x550] sm:$0xff] %v518_v42  ;;  %v522_v44 = vld [vmem:[%s2875_s7 + $0xac0] sm:$0xff]  ;;  %v524_v45 = vld [vmem:[%s2875_s7 + $0xac8] sm:$0xff]  ;;  %521 = vst [vmem:[%s2880_s8 + $0x558] sm:$0xff] %v520_v43 }
  0x6e   : > { %523 = vst [vmem:[%s2880_s8 + $0x560] sm:$0xff] %v522_v44  ;;  %525 = vst [vmem:[%s2880_s8 + $0x568] sm:$0xff] %v524_v45  ;;  %v526_v46 = vld [vmem:[%s2875_s7 + $0xae0] sm:$0xff]  ;;  %v528_v47 = vld [vmem:[%s2875_s7 + $0xae8] sm:$0xff] }
  0x6f   : > { %v530_v48 = vld [vmem:[%s2875_s7 + $0xb00] sm:$0xff]  ;;  %527 = vst [vmem:[%s2880_s8 + $0x570] sm:$0xff] %v526_v46  ;;  %529 = vst [vmem:[%s2880_s8 + $0x578] sm:$0xff] %v528_v47  ;;  %v532_v49 = vld [vmem:[%s2875_s7 + $0xb08] sm:$0xff] }
  0x70   : > { %531 = vst [vmem:[%s2880_s8 + $0x580] sm:$0xff] %v530_v48  ;;  %v534_v50 = vld [vmem:[%s2875_s7 + $0xb20] sm:$0xff]  ;;  %v536_v51 = vld [vmem:[%s2875_s7 + $0xb28] sm:$0xff]  ;;  %533 = vst [vmem:[%s2880_s8 + $0x588] sm:$0xff] %v532_v49 }
  0x71   : > { %535 = vst [vmem:[%s2880_s8 + $0x590] sm:$0xff] %v534_v50  ;;  %537 = vst [vmem:[%s2880_s8 + $0x598] sm:$0xff] %v536_v51  ;;  %v538_v52 = vld [vmem:[%s2875_s7 + $0xb40] sm:$0xff]  ;;  %v540_v53 = vld [vmem:[%s2875_s7 + $0xb48] sm:$0xff] }
  0x72   : > { %v542_v54 = vld [vmem:[%s2875_s7 + $0xb60] sm:$0xff]  ;;  %539 = vst [vmem:[%s2880_s8 + $0x5a0] sm:$0xff] %v538_v52  ;;  %541 = vst [vmem:[%s2880_s8 + $0x5a8] sm:$0xff] %v540_v53  ;;  %v544_v55 = vld [vmem:[%s2875_s7 + $0xb68] sm:$0xff] }
  0x73   : > { %543 = vst [vmem:[%s2880_s8 + $0x5b0] sm:$0xff] %v542_v54  ;;  %v546_v56 = vld [vmem:[%s2875_s7 + $0xb80] sm:$0xff]  ;;  %v548_v57 = vld [vmem:[%s2875_s7 + $0xb88] sm:$0xff]  ;;  %545 = vst [vmem:[%s2880_s8 + $0x5b8] sm:$0xff] %v544_v55 }
  0x74   : > { %547 = vst [vmem:[%s2880_s8 + $0x5c0] sm:$0xff] %v546_v56  ;;  %549 = vst [vmem:[%s2880_s8 + $0x5c8] sm:$0xff] %v548_v57  ;;  %v550_v58 = vld [vmem:[%s2875_s7 + $0xba0] sm:$0xff]  ;;  %v552_v59 = vld [vmem:[%s2875_s7 + $0xba8] sm:$0xff] }
  0x75   : > { %v554_v60 = vld [vmem:[%s2875_s7 + $0xbc0] sm:$0xff]  ;;  %551 = vst [vmem:[%s2880_s8 + $0x5d0] sm:$0xff] %v550_v58  ;;  %553 = vst [vmem:[%s2880_s8 + $0x5d8] sm:$0xff] %v552_v59  ;;  %v556_v61 = vld [vmem:[%s2875_s7 + $0xbc8] sm:$0xff] }
  0x76   : > { %555 = vst [vmem:[%s2880_s8 + $0x5e0] sm:$0xff] %v554_v60  ;;  %v558_v62 = vld [vmem:[%s2875_s7 + $0xbe0] sm:$0xff]  ;;  %v560_v63 = vld [vmem:[%s2875_s7 + $0xbe8] sm:$0xff]  ;;  %557 = vst [vmem:[%s2880_s8 + $0x5e8] sm:$0xff] %v556_v61 }
  0x77   : > { %559 = vst [vmem:[%s2880_s8 + $0x5f0] sm:$0xff] %v558_v62  ;;  %561 = vst [vmem:[%s2880_s8 + $0x5f8] sm:$0xff] %v560_v63 }
  0x78 PF: > { %p2175_p7 = scmp.ge.s32.totalorder %s2791_s18, 1  ;;  %p566_p8 = scmp.lt.s32.totalorder %s2791_s18, 51 }
  0x7a   : > { %p567_p9 = pnand %p2175_p7, %p566_p8 }
  0x7b   : > { %s573_s9 = sand.u32 (!%p567_p9), 1, %s2767_s12   ;;  %s601_s10 = smul.u32 (!%p567_p9), 6, %s2775_s14 }
  0x7c   : > { %570 = sbr.rel (%p567_p9) target bundleno = 665 (0x299), region = 51  ;;  %s2177_s21 = sshll.u32 (!%p567_p9), %s2779_s15, 2 }
  0x7d   : > { %s2383_s11 = smul.u32 (!%p567_p9), 1536, %s573_s9  ;;  %p602_p10 = scmp.lt.s32.totalorder (!%p567_p9), %s601_s10, 149 }
  0x7e   : > { %p610_p11 = scmp.lt.s32.totalorder (!%p567_p9), %s2177_s21, 7  ;;  %p2179_p12 = scmp.ne.s32.totalorder (!%p567_p9), %s2775_s14, 0 }
  0x7f   : > { %s3278_s12 = scalar_lea.vmem (!%p567_p9), [#allocation3], %s2383_s11 }
  0x81   : > { %s3552_s10 = smov (!%p602_p10, %s601_s10), 149  ;;  %s3554_s21 = smov (!%p610_p11, %s2177_s21), 7 }
  0x82   : > { %s2176_s22 = sshll.u32 %s3552_s10, 2  ;;  %s2178_s27 = sshll.u32 %s3554_s21, 3 }
  0x83   : > { %s3271_s26 = scalar_lea.vmem %s3535_s0, %s2176_s22  ;;  %s3276_s30 = scalar_lea.vmem %s3538_s3, %s2178_s27 }
  0x84   : > { %618 = sbr.rel (%p2179_p12) target bundleno = 140 (0x8c), region = 59 }
  0x89   : > { %v2793_v0 = vmov 0.0  }
  0x8a   : > { %619 = vst [vmem:[#allocation2 + $0x10] sm:$0xff] %v2793_v0  ;;  %620 = vst [vmem:[#allocation2] sm:$0xff] %v2793_v0 }
  0x8b   : > { %621 = vst [vmem:[#allocation2 + $0x18] sm:$0xff] %v2793_v0  ;;  %622 = vst [vmem:[#allocation2 + $0x8] sm:$0xff] %v2793_v0 }
  0x8c PF: > { %v2442_v1 = vld [vmem:[%s3278_s12 + $0xe4] ss:$16 sps:$4 sm:$0xff]   ;;  %v2446_v3 = vld [vmem:[%s3278_s12 + $0xe0] ss:$16 sps:$4 sm:$0xff]   ;;  %v628_v49 = vld [vmem:[%s3271_s26 + $0x8] sm:$0xff]  ;;  %p2378_p13 = scmp.ne.s32.totalorder %s2775_s14, 24 }
  0x8d   : > { %v2444_v2 = vld [vmem:[%s3278_s12 + $0x2e4] ss:$16 sps:$4 sm:$0xff]   ;;  %1803 = vmatprep.subr.bf16.mxu0 %v2442_v1  ;;  %v2447_v4 = vld [vmem:[%s3278_s12 + $0x2e0] ss:$16 sps:$4 sm:$0xff]   ;;  %v3333_v52 = vcombine.high %v628_v49, %v628_v49 }
  0x8e   : > { %1844 = vmatprep.subr.bf16.mxu1 %v2444_v2  ;;  %v2448_v5 = vld [vmem:[%s3278_s12 + $0xc4] ss:$16 sps:$4 sm:$0xff]   ;;  %1804 = vmatpush1.bf16.msra.mxu0 %v2446_v3  ;;  %v2452_v7 = vld [vmem:[%s3278_s12 + $0xc0] ss:$16 sps:$4 sm:$0xff]  }
  0x8f   : > { %1845 = vmatpush1.bf16.msra.mxu1 %v2447_v4  ;;  %v2450_v6 = vld [vmem:[%s3278_s12 + $0x2c4] ss:$16 sps:$4 sm:$0xff]   ;;  %1805 = vmatprep.subr.bf16.mxu0 %v2448_v5  ;;  %v2453_v8 = vld [vmem:[%s3278_s12 + $0x2c0] ss:$16 sps:$4 sm:$0xff]  }
  0x90   : > { %1846 = vmatprep.subr.bf16.mxu1 %v2450_v6  ;;  %v2454_v9 = vld [vmem:[%s3278_s12 + $0xa4] ss:$16 sps:$4 sm:$0xff]   ;;  %v2458_v11 = vld [vmem:[%s3278_s12 + $0xa0] ss:$16 sps:$4 sm:$0xff]   ;;  %1876 = vmatprep.mubr.bf16.mxu1 %v3333_v52  ;;  %v2547_v6 = vld [vmem:[%s3278_s12 + $0xec] ss:$16 sps:$4 sm:$0xff]  }
  0x91   : > { %v2456_v10 = vld [vmem:[%s3278_s12 + $0x2a4] ss:$16 sps:$4 sm:$0xff]   ;;  %v2459_v12 = vld [vmem:[%s3278_s12 + $0x2a0] ss:$16 sps:$4 sm:$0xff]  }
  0x92   : > { %1806 = vmatpush1.bf16.msra.mxu0 %v2452_v7  ;;  %v2460_v13 = vld [vmem:[%s3278_s12 + $0x84] ss:$16 sps:$4 sm:$0xff]   ;;  %v2464_v15 = vld [vmem:[%s3278_s12 + $0x80] ss:$16 sps:$4 sm:$0xff]  }
  0x93   : > { %1847 = vmatpush1.bf16.msra.mxu1 %v2453_v8  ;;  %1807 = vmatprep.subr.bf16.mxu0 %v2454_v9  ;;  %v2462_v14 = vld [vmem:[%s3278_s12 + $0x284] ss:$16 sps:$4 sm:$0xff]   ;;  %v2465_v16 = vld [vmem:[%s3278_s12 + $0x280] ss:$16 sps:$4 sm:$0xff]   ;;  %v3357_v8 = vcombine.low %v628_v49, %v628_v49 }
  0x94   : > { %1848 = vmatprep.subr.bf16.mxu1 %v2456_v10  ;;  %v2466_v17 = vld [vmem:[%s3278_s12 + $0x64] ss:$16 sps:$4 sm:$0xff]   ;;  %v2470_v19 = vld [vmem:[%s3278_s12 + $0x60] ss:$16 sps:$4 sm:$0xff]   ;;  %v2545_v10 = vld [vmem:[%s3278_s12 + $0xe8] ss:$16 sps:$4 sm:$0xff]  }
  0x95   : > { %v2468_v18 = vld [vmem:[%s3278_s12 + $0x264] ss:$16 sps:$4 sm:$0xff]   ;;  %v2471_v20 = vld [vmem:[%s3278_s12 + $0x260] ss:$16 sps:$4 sm:$0xff]  }
  0x96   : > { %1808 = vmatpush1.bf16.msra.mxu0 %v2458_v11  ;;  %v2472_v21 = vld [vmem:[%s3278_s12 + $0x44] ss:$16 sps:$4 sm:$0xff]   ;;  %v2476_v23 = vld [vmem:[%s3278_s12 + $0x40] ss:$16 sps:$4 sm:$0xff]  }
  0x97   : > { %1849 = vmatpush1.bf16.msra.mxu1 %v2459_v12  ;;  %1809 = vmatprep.subr.bf16.mxu0 %v2460_v13  ;;  %v2474_v22 = vld [vmem:[%s3278_s12 + $0x244] ss:$16 sps:$4 sm:$0xff]   ;;  %v2477_v24 = vld [vmem:[%s3278_s12 + $0x240] ss:$16 sps:$4 sm:$0xff]   ;;  %v2553_v12 = vld [vmem:[%s3278_s12 + $0xcc] ss:$16 sps:$4 sm:$0xff]  }
  0x98   : > { %1850 = vmatprep.subr.bf16.mxu1 %v2462_v14  ;;  %v2478_v25 = vld [vmem:[%s3278_s12 + $0x24] ss:$16 sps:$4 sm:$0xff]   ;;  %v2482_v27 = vld [vmem:[%s3278_s12 + $0x20] ss:$16 sps:$4 sm:$0xff]   ;;  %v2551_v14 = vld [vmem:[%s3278_s12 + $0xc8] ss:$16 sps:$4 sm:$0xff]  }
  0x99   : > { %v2480_v26 = vld [vmem:[%s3278_s12 + $0x224] ss:$16 sps:$4 sm:$0xff]   ;;  %v2483_v28 = vld [vmem:[%s3278_s12 + $0x220] ss:$16 sps:$4 sm:$0xff]  }
  0x9a   : > { %1810 = vmatpush1.bf16.msra.mxu0 %v2464_v15  ;;  %v2484_v29 = vld [vmem:[%s3278_s12 + $0x4] ss:$16 sps:$4 sm:$0xff]   ;;  %v2488_v31 = vld [vmem:[%s3278_s12] ss:$16 sps:$4 sm:$0xff]  }
  0x9b   : > { %1851 = vmatpush1.bf16.msra.mxu1 %v2465_v16  ;;  %1811 = vmatprep.subr.bf16.mxu0 %v2466_v17  ;;  %v2486_v30 = vld [vmem:[%s3278_s12 + $0x204] ss:$16 sps:$4 sm:$0xff]   ;;  %v2489_v32 = vld [vmem:[%s3278_s12 + $0x200] ss:$16 sps:$4 sm:$0xff]   ;;  %v2559_v16 = vld [vmem:[%s3278_s12 + $0xac] ss:$16 sps:$4 sm:$0xff]  }
  0x9c   : > { %1852 = vmatprep.subr.bf16.mxu1 %v2468_v18  ;;  %v2490_v33 = vld [vmem:[%s3278_s12 + $0x1e4] ss:$16 sps:$4 sm:$0xff]   ;;  %v2494_v35 = vld [vmem:[%s3278_s12 + $0x1e0] ss:$16 sps:$4 sm:$0xff]   ;;  %v2557_v18 = vld [vmem:[%s3278_s12 + $0xa8] ss:$16 sps:$4 sm:$0xff]  }
  0x9d   : > { %v2492_v34 = vld [vmem:[%s3278_s12 + $0x3e4] ss:$16 sps:$4 sm:$0xff]   ;;  %v2495_v36 = vld [vmem:[%s3278_s12 + $0x3e0] ss:$16 sps:$4 sm:$0xff]  }
  0x9e   : > { %1812 = vmatpush1.bf16.msra.mxu0 %v2470_v19  ;;  %v2496_v37 = vld [vmem:[%s3278_s12 + $0x1c4] ss:$16 sps:$4 sm:$0xff]   ;;  %v2500_v39 = vld [vmem:[%s3278_s12 + $0x1c0] ss:$16 sps:$4 sm:$0xff]  }
  0x9f   : > { %1853 = vmatpush1.bf16.msra.mxu1 %v2471_v20  ;;  %1813 = vmatprep.subr.bf16.mxu0 %v2472_v21  ;;  %v2498_v38 = vld [vmem:[%s3278_s12 + $0x3c4] ss:$16 sps:$4 sm:$0xff]   ;;  %v2501_v40 = vld [vmem:[%s3278_s12 + $0x3c0] ss:$16 sps:$4 sm:$0xff]   ;;  %v2565_v20 = vld [vmem:[%s3278_s12 + $0x8c] ss:$16 sps:$4 sm:$0xff]  }
  0xa0   : > { %1854 = vmatprep.subr.bf16.mxu1 %v2474_v22  ;;  %v2502_v41 = vld [vmem:[%s3278_s12 + $0x1a4] ss:$16 sps:$4 sm:$0xff]   ;;  %v2506_v43 = vld [vmem:[%s3278_s12 + $0x1a0] ss:$16 sps:$4 sm:$0xff]   ;;  %v2563_v22 = vld [vmem:[%s3278_s12 + $0x88] ss:$16 sps:$4 sm:$0xff]  }
  0xa1   : > { %v2504_v42 = vld [vmem:[%s3278_s12 + $0x3a4] ss:$16 sps:$4 sm:$0xff]   ;;  %v2507_v44 = vld [vmem:[%s3278_s12 + $0x3a0] ss:$16 sps:$4 sm:$0xff]  }
  0xa2   : > { %1814 = vmatpush1.bf16.msra.mxu0 %v2476_v23  ;;  %v2508_v45 = vld [vmem:[%s3278_s12 + $0x184] ss:$16 sps:$4 sm:$0xff]   ;;  %v2512_v50 = vld [vmem:[%s3278_s12 + $0x180] ss:$16 sps:$4 sm:$0xff]  }
  0xa3   : > { %1855 = vmatpush1.bf16.msra.mxu1 %v2477_v24  ;;  %1815 = vmatprep.subr.bf16.mxu0 %v2478_v25  ;;  %v2510_v46 = vld [vmem:[%s3278_s12 + $0x384] ss:$16 sps:$4 sm:$0xff]   ;;  %v2513_v51 = vld [vmem:[%s3278_s12 + $0x380] ss:$16 sps:$4 sm:$0xff]   ;;  %v2571_v24 = vld [vmem:[%s3278_s12 + $0x6c] ss:$16 sps:$4 sm:$0xff]  }
  0xa4   : > { %1856 = vmatprep.subr.bf16.mxu1 %v2480_v26  ;;  %v627_v47 = vld [vmem:[%s3271_s26] sm:$0xff]  ;;  %v2569_v26 = vld [vmem:[%s3278_s12 + $0x68] ss:$16 sps:$4 sm:$0xff]  }
  0xa5   : > { %v3328_v48 = vcombine.high %v627_v47, %v627_v47  ;;  %v2514_v53 = vld [vmem:[%s3278_s12 + $0x164] ss:$16 sps:$4 sm:$0xff]   ;;  %v2518_v55 = vld [vmem:[%s3278_s12 + $0x160] ss:$16 sps:$4 sm:$0xff]   ;;  %v3355_v7 = vcombine.low %v627_v47, %v627_v47 }
  0xa6   : > { %1816 = vmatpush1.bf16.msra.mxu0 %v2482_v27  ;;  %v2516_v54 = vld [vmem:[%s3278_s12 + $0x364] ss:$16 sps:$4 sm:$0xff]   ;;  %v2519_v56 = vld [vmem:[%s3278_s12 + $0x360] ss:$16 sps:$4 sm:$0xff]  }
  0xa7   : > { %1857 = vmatpush1.bf16.msra.mxu1 %v2483_v28  ;;  %1817 = vmatprep.subr.bf16.mxu0 %v2484_v29  ;;  %v2520_v57 = vld [vmem:[%s3278_s12 + $0x144] ss:$16 sps:$4 sm:$0xff]   ;;  %v2524_v59 = vld [vmem:[%s3278_s12 + $0x140] ss:$16 sps:$4 sm:$0xff]   ;;  %v2577_v28 = vld [vmem:[%s3278_s12 + $0x4c] ss:$16 sps:$4 sm:$0xff]  }
  0xa8   : > { %1858 = vmatprep.subr.bf16.mxu1 %v2486_v30  ;;  %1835 = vmatprep.mubr.bf16.mxu0 %v3328_v48  ;;  %v2522_v58 = vld [vmem:[%s3278_s12 + $0x344] ss:$16 sps:$4 sm:$0xff]   ;;  %v2525_v60 = vld [vmem:[%s3278_s12 + $0x340] ss:$16 sps:$4 sm:$0xff]   ;;  %v2575_v30 = vld [vmem:[%s3278_s12 + $0x48] ss:$16 sps:$4 sm:$0xff]  }
  0xa9   : > { %v2526_v61 = vld [vmem:[%s3278_s12 + $0x124] ss:$16 sps:$4 sm:$0xff]   ;;  %v2530_v63 = vld [vmem:[%s3278_s12 + $0x120] ss:$16 sps:$4 sm:$0xff]  }
  0xaa   : > { %1818 = vmatpush1.bf16.msra.mxu0 %v2488_v31  ;;  %v2528_v62 = vld [vmem:[%s3278_s12 + $0x324] ss:$16 sps:$4 sm:$0xff]   ;;  %v2531_v0 = vld [vmem:[%s3278_s12 + $0x320] ss:$16 sps:$4 sm:$0xff]  }
  0xab   : > { %1859 = vmatpush1.bf16.msra.mxu1 %v2489_v32  ;;  %1819 = vmatprep.subr.bf16.mxu0 %v2490_v33  ;;  %v2532_v1 = vld [vmem:[%s3278_s12 + $0x104] ss:$16 sps:$4 sm:$0xff]   ;;  %v2536_v3 = vld [vmem:[%s3278_s12 + $0x100] ss:$16 sps:$4 sm:$0xff]   ;;  %v2583_v32 = vld [vmem:[%s3278_s12 + $0x2c] ss:$16 sps:$4 sm:$0xff]  }
  0xac   : > { %1860 = vmatprep.subr.bf16.mxu1 %v2492_v34  ;;  %v2534_v2 = vld [vmem:[%s3278_s12 + $0x304] ss:$16 sps:$4 sm:$0xff]   ;;  %v2537_v4 = vld [vmem:[%s3278_s12 + $0x300] ss:$16 sps:$4 sm:$0xff]  }
  0xad   : > { %v2544_v5 = vld [vmem:[%s3278_s12 + $0x4e4] ss:$16 sps:$4 sm:$0xff]   ;;  %v2542_v9 = vld [vmem:[%s3278_s12 + $0x4e0] ss:$16 sps:$4 sm:$0xff]  }
  0xae   : > { %1820 = vmatpush2.bf16.msra.mxu0 %v2494_v35  ;;  %v2550_v11 = vld [vmem:[%s3278_s12 + $0x4c4] ss:$16 sps:$4 sm:$0xff]   ;;  %v2548_v13 = vld [vmem:[%s3278_s12 + $0x4c0] ss:$16 sps:$4 sm:$0xff]  }
  0xaf   : > { %1861 = vmatpush2.bf16.msra.mxu1 %v2495_v36  ;;  %1821 = vmatprep.subr.bf16.mxu0 %v2496_v37  ;;  %v2556_v15 = vld [vmem:[%s3278_s12 + $0x4a4] ss:$16 sps:$4 sm:$0xff]   ;;  %v2554_v17 = vld [vmem:[%s3278_s12 + $0x4a0] ss:$16 sps:$4 sm:$0xff]   ;;  %v2581_v36 = vld [vmem:[%s3278_s12 + $0x28] ss:$16 sps:$4 sm:$0xff]  }
  0xb0   : > { %1862 = vmatprep.subr.bf16.mxu1 %v2498_v38  ;;  %v2562_v19 = vld [vmem:[%s3278_s12 + $0x484] ss:$16 sps:$4 sm:$0xff]   ;;  %v2560_v21 = vld [vmem:[%s3278_s12 + $0x480] ss:$16 sps:$4 sm:$0xff]   ;;  %v2589_v38 = vld [vmem:[%s3278_s12 + $0xc] ss:$16 sps:$4 sm:$0xff]  }
  0xb1   : > { %v2568_v23 = vld [vmem:[%s3278_s12 + $0x464] ss:$16 sps:$4 sm:$0xff]   ;;  %v2566_v25 = vld [vmem:[%s3278_s12 + $0x460] ss:$16 sps:$4 sm:$0xff]  }
  0xb2   : > { %1822 = vmatpush2.bf16.msra.mxu0 %v2500_v39  ;;  %v2574_v27 = vld [vmem:[%s3278_s12 + $0x444] ss:$16 sps:$4 sm:$0xff]   ;;  %v2572_v29 = vld [vmem:[%s3278_s12 + $0x440] ss:$16 sps:$4 sm:$0xff]  }
  0xb3   : > { %1863 = vmatpush2.bf16.msra.mxu1 %v2501_v40  ;;  %1823 = vmatprep.subr.bf16.mxu0 %v2502_v41  ;;  %v2580_v31 = vld [vmem:[%s3278_s12 + $0x424] ss:$16 sps:$4 sm:$0xff]   ;;  %v2578_v34 = vld [vmem:[%s3278_s12 + $0x420] ss:$16 sps:$4 sm:$0xff]   ;;  %v2587_v40 = vld [vmem:[%s3278_s12 + $0x8] ss:$16 sps:$4 sm:$0xff]  }
  0xb4   : > { %1864 = vmatprep.subr.bf16.mxu1 %v2504_v42  ;;  %v3387_v33 = vld [vmem:[%s3271_s26 + $0x10] sm:$0xff]  ;;  %v2595_v42 = vld [vmem:[%s3278_s12 + $0x1ec] ss:$16 sps:$4 sm:$0xff]  }
  0xb5   : > { %v3392_v35 = vcombine.high %v3387_v33, %v3387_v33  ;;  %v2586_v37 = vld [vmem:[%s3278_s12 + $0x404] ss:$16 sps:$4 sm:$0xff]   ;;  %v2584_v39 = vld [vmem:[%s3278_s12 + $0x400] ss:$16 sps:$4 sm:$0xff]  }
  0xb6   : > { %1824 = vmatpush2.bf16.msra.mxu0 %v2506_v43  ;;  %v2592_v41 = vld [vmem:[%s3278_s12 + $0x5e4] ss:$16 sps:$4 sm:$0xff]   ;;  %v2590_v43 = vld [vmem:[%s3278_s12 + $0x5e0] ss:$16 sps:$4 sm:$0xff]  }
  0xb7   : > { %1865 = vmatpush2.bf16.msra.mxu1 %v2507_v44  ;;  %1825 = vmatprep.subr.bf16.mxu0 %v2508_v45  ;;  %v2593_v44 = vld [vmem:[%s3278_s12 + $0x1e8] ss:$16 sps:$4 sm:$0xff]   ;;  %v2598_v45 = vld [vmem:[%s3278_s12 + $0x5c4] ss:$16 sps:$4 sm:$0xff]   ;;  %v2596_v47 = vld [vmem:[%s3278_s12 + $0x5c0] ss:$16 sps:$4 sm:$0xff]  }
  0xb8   : > { %1866 = vmatprep.subr.bf16.mxu1 %v2510_v46  ;;  %v2601_v46 = vld [vmem:[%s3278_s12 + $0x1cc] ss:$16 sps:$4 sm:$0xff]   ;;  %v2604_v49 = vld [vmem:[%s3278_s12 + $0x5a4] ss:$16 sps:$4 sm:$0xff]  }
  0xba   : > { %1826 = vmatpush2.bf16.msra.mxu0 %v2512_v50  ;;  %v2607_v50 = vld [vmem:[%s3278_s12 + $0x1ac] ss:$16 sps:$4 sm:$0xff]  }
  0xbb   : > { %1867 = vmatpush2.bf16.msra.mxu1 %v2513_v51  ;;  %1827 = vmatprep.subr.bf16.mxu0 %v2514_v53  ;;  %v2602_v51 = vld [vmem:[%s3278_s12 + $0x5a0] ss:$16 sps:$4 sm:$0xff]   ;;  %v2605_v53 = vld [vmem:[%s3278_s12 + $0x1a8] ss:$16 sps:$4 sm:$0xff]  }
  0xbc   : > { %1868 = vmatprep.subr.bf16.mxu1 %v2516_v54  ;;  %v2610_v54 = vld [vmem:[%s3278_s12 + $0x584] ss:$16 sps:$4 sm:$0xff]  }
  0xbe   : > { %1828 = vmatpush2.bf16.msra.mxu0 %v2518_v55  ;;  %v2613_v55 = vld [vmem:[%s3278_s12 + $0x18c] ss:$16 sps:$4 sm:$0xff]  }
  0xbf   : > { %1869 = vmatpush2.bf16.msra.mxu1 %v2519_v56  ;;  %1829 = vmatprep.subr.bf16.mxu0 %v2520_v57  ;;  %v2608_v56 = vld [vmem:[%s3278_s12 + $0x580] ss:$16 sps:$4 sm:$0xff]   ;;  %v2611_v57 = vld [vmem:[%s3278_s12 + $0x188] ss:$16 sps:$4 sm:$0xff]  }
  0xc0   : > { %1870 = vmatprep.subr.bf16.mxu1 %v2522_v58  ;;  %v2616_v58 = vld [vmem:[%s3278_s12 + $0x564] ss:$16 sps:$4 sm:$0xff]  }
  0xc2   : > { %1830 = vmatpush2.bf16.msra.mxu0 %v2524_v59  ;;  %v2619_v59 = vld [vmem:[%s3278_s12 + $0x16c] ss:$16 sps:$4 sm:$0xff]  }
  0xc3   : > { %1871 = vmatpush2.bf16.msra.mxu1 %v2525_v60  ;;  %1831 = vmatprep.subr.bf16.mxu0 %v2526_v61  ;;  %v2614_v60 = vld [vmem:[%s3278_s12 + $0x560] ss:$16 sps:$4 sm:$0xff]   ;;  %v2617_v61 = vld [vmem:[%s3278_s12 + $0x168] ss:$16 sps:$4 sm:$0xff]  }
  0xc4   : > { %1872 = vmatprep.subr.bf16.mxu1 %v2528_v62  ;;  %v2622_v62 = vld [vmem:[%s3278_s12 + $0x544] ss:$16 sps:$4 sm:$0xff]  }
  0xc6   : > { %1832 = vmatpush2.bf16.msra.mxu0 %v2530_v63  ;;  %v2625_v63 = vld [vmem:[%s3278_s12 + $0x14c] ss:$16 sps:$4 sm:$0xff]  }
  0xc7   : > { %1873 = vmatpush2.bf16.msra.mxu1 %v2531_v0  ;;  %1833 = vmatprep.subr.bf16.mxu0 %v2532_v1  ;;  %v2620_v0 = vld [vmem:[%s3278_s12 + $0x540] ss:$16 sps:$4 sm:$0xff]   ;;  %v2623_v1 = vld [vmem:[%s3278_s12 + $0x148] ss:$16 sps:$4 sm:$0xff]  }
  0xc8   : > { %1874 = vmatprep.subr.bf16.mxu1 %v2534_v2  ;;  %v2628_v2 = vld [vmem:[%s3278_s12 + $0x524] ss:$16 sps:$4 sm:$0xff]  }
  0xca   : > { %1834 = vmatpush2.bf16.msra.mxu0 %v2536_v3  ;;  %v2631_v3 = vld [vmem:[%s3278_s12 + $0x12c] ss:$16 sps:$4 sm:$0xff]  }
  0xcb   : > { %1875 = vmatpush2.bf16.msra.mxu1 %v2537_v4  ;;  %1885 = vmatprep.subr.bf16.mxu0 %v2544_v5  ;;  %v2626_v4 = vld [vmem:[%s3278_s12 + $0x520] ss:$16 sps:$4 sm:$0xff]   ;;  %v2629_v5 = vld [vmem:[%s3278_s12 + $0x128] ss:$16 sps:$4 sm:$0xff]  }
  0xcc   : > { %1926 = vmatprep.subr.bf16.mxu1 %v2547_v6  ;;  %v2634_v6 = vld [vmem:[%s3278_s12 + $0x504] ss:$16 sps:$4 sm:$0xff]  }
  0xcd   : > { %1836 = vmatmul.mubr.bf16.vlgmr.msra.gmra.mxu0 %v3355_v7 }
  0xce   : > { %1877 = vmatmul.mubr.bf16.vlgmr.msra.gmra.mxu1 %v3357_v8  ;;  %1886 = vmatpush1.bf16.msra.mxu0 %v2542_v9  ;;  %v2637_v9 = vld [vmem:[%s3278_s12 + $0x10c] ss:$16 sps:$4 sm:$0xff]  }
  0xcf   : > { %1927 = vmatpush1.bf16.msra.mxu1 %v2545_v10  ;;  %1887 = vmatprep.subr.bf16.mxu0 %v2550_v11  ;;  %v2632_v10 = vld [vmem:[%s3278_s12 + $0x500] ss:$16 sps:$4 sm:$0xff]   ;;  %v2635_v11 = vld [vmem:[%s3278_s12 + $0x108] ss:$16 sps:$4 sm:$0xff]  }
  0xd0   : > { %1928 = vmatprep.subr.bf16.mxu1 %v2553_v12  ;;  %1958 = vmatprep.mubr.bf16.mxu1 %v3328_v48  ;;  %v2599_v48 = vld [vmem:[%s3278_s12 + $0x1c8] ss:$16 sps:$4 sm:$0xff]   ;;  %v2642_v12 = vld [vmem:[%s3278_s12 + $0x2ec] ss:$16 sps:$4 sm:$0xff]  }
  0xd1   : > { %1917 = vmatprep.mubr.bf16.mxu0 %v3392_v35 }
  0xd2   : > { %1888 = vmatpush1.bf16.msra.mxu0 %v2548_v13  ;;  %v2645_v13 = vld [vmem:[%s3278_s12 + $0x4ec] ss:$16 sps:$4 sm:$0xff]  }
  0xd3   : > { %1929 = vmatpush1.bf16.msra.mxu1 %v2551_v14  ;;  %1889 = vmatprep.subr.bf16.mxu0 %v2556_v15  ;;  %v3436_v14 = vcombine.low %v3387_v33, %v3387_v33  ;;  %v2640_v15 = vld [vmem:[%s3278_s12 + $0x2e8] ss:$16 sps:$4 sm:$0xff]  }
  0xd4   : > { %1930 = vmatprep.subr.bf16.mxu1 %v2559_v16  ;;  %v2643_v16 = vld [vmem:[%s3278_s12 + $0x4e8] ss:$16 sps:$4 sm:$0xff]  }
  0xd5   : > { %v2670_v33 = vld [vmem:[%s3278_s12 + $0x248] ss:$16 sps:$4 sm:$0xff]  }
  0xd6   : > { %1890 = vmatpush1.bf16.msra.mxu0 %v2554_v17  ;;  %v2648_v17 = vld [vmem:[%s3278_s12 + $0x2cc] ss:$16 sps:$4 sm:$0xff]  }
  0xd7   : > { %1931 = vmatpush1.bf16.msra.mxu1 %v2557_v18  ;;  %1891 = vmatprep.subr.bf16.mxu0 %v2562_v19  ;;  %v2651_v18 = vld [vmem:[%s3278_s12 + $0x4cc] ss:$16 sps:$4 sm:$0xff]   ;;  %v2646_v19 = vld [vmem:[%s3278_s12 + $0x2c8] ss:$16 sps:$4 sm:$0xff]  }
  0xd8   : > { %1932 = vmatprep.subr.bf16.mxu1 %v2565_v20  ;;  %v2649_v20 = vld [vmem:[%s3278_s12 + $0x4c8] ss:$16 sps:$4 sm:$0xff]  }
  0xda   : > { %1892 = vmatpush1.bf16.msra.mxu0 %v2560_v21  ;;  %v2654_v21 = vld [vmem:[%s3278_s12 + $0x2ac] ss:$16 sps:$4 sm:$0xff]  }
  0xdb   : > { %1933 = vmatpush1.bf16.msra.mxu1 %v2563_v22  ;;  %1893 = vmatprep.subr.bf16.mxu0 %v2568_v23  ;;  %v2657_v22 = vld [vmem:[%s3278_s12 + $0x4ac] ss:$16 sps:$4 sm:$0xff]   ;;  %v2655_v23 = vld [vmem:[%s3278_s12 + $0x4a8] ss:$16 sps:$4 sm:$0xff]  }
  0xdc   : > { %1934 = vmatprep.subr.bf16.mxu1 %v2571_v24  ;;  %v2660_v24 = vld [vmem:[%s3278_s12 + $0x28c] ss:$16 sps:$4 sm:$0xff]  }
  0xde   : > { %1894 = vmatpush1.bf16.msra.mxu0 %v2566_v25  ;;  %v2663_v25 = vld [vmem:[%s3278_s12 + $0x48c] ss:$16 sps:$4 sm:$0xff]  }
  0xdf   : > { %1935 = vmatpush1.bf16.msra.mxu1 %v2569_v26  ;;  %1895 = vmatprep.subr.bf16.mxu0 %v2574_v27  ;;  %v2658_v26 = vld [vmem:[%s3278_s12 + $0x288] ss:$16 sps:$4 sm:$0xff]   ;;  %v2666_v27 = vld [vmem:[%s3278_s12 + $0x26c] ss:$16 sps:$4 sm:$0xff]  }
  0xe0   : > { %1936 = vmatprep.subr.bf16.mxu1 %v2577_v28  ;;  %v2669_v28 = vld [vmem:[%s3278_s12 + $0x46c] ss:$16 sps:$4 sm:$0xff]  }
  0xe2   : > { %1896 = vmatpush1.bf16.msra.mxu0 %v2572_v29  ;;  %v2664_v29 = vld [vmem:[%s3278_s12 + $0x268] ss:$16 sps:$4 sm:$0xff]  }
  0xe3   : > { %1937 = vmatpush1.bf16.msra.mxu1 %v2575_v30  ;;  %1897 = vmatprep.subr.bf16.mxu0 %v2580_v31  ;;  %v2667_v30 = vld [vmem:[%s3278_s12 + $0x468] ss:$16 sps:$4 sm:$0xff]   ;;  %v2672_v31 = vld [vmem:[%s3278_s12 + $0x24c] ss:$16 sps:$4 sm:$0xff]  }
  0xe4   : > { %1938 = vmatprep.subr.bf16.mxu1 %v2583_v32  ;;  %v2675_v32 = vld [vmem:[%s3278_s12 + $0x44c] ss:$16 sps:$4 sm:$0xff]  }
  0xe6   : > { %1898 = vmatpush1.bf16.msra.mxu0 %v2578_v34  ;;  %v2673_v34 = vld [vmem:[%s3278_s12 + $0x448] ss:$16 sps:$4 sm:$0xff]  }
  0xe7   : > { %1939 = vmatpush1.bf16.msra.mxu1 %v2581_v36  ;;  %1899 = vmatprep.subr.bf16.mxu0 %v2586_v37  ;;  %v2681_v36 = vld [vmem:[%s3278_s12 + $0x42c] ss:$16 sps:$4 sm:$0xff]   ;;  %v2676_v37 = vld [vmem:[%s3278_s12 + $0x228] ss:$16 sps:$4 sm:$0xff]  }
  0xe8   : > { %1940 = vmatprep.subr.bf16.mxu1 %v2589_v38  ;;  %v2679_v38 = vld [vmem:[%s3278_s12 + $0x428] ss:$16 sps:$4 sm:$0xff]  }
  0xea   : > { %1900 = vmatpush1.bf16.msra.mxu0 %v2584_v39  ;;  %v2684_v39 = vld [vmem:[%s3278_s12 + $0x20c] ss:$16 sps:$4 sm:$0xff]  }
  0xeb   : > { %1941 = vmatpush1.bf16.msra.mxu1 %v2587_v40  ;;  %1901 = vmatprep.subr.bf16.mxu0 %v2592_v41  ;;  %v2687_v40 = vld [vmem:[%s3278_s12 + $0x40c] ss:$16 sps:$4 sm:$0xff]   ;;  %v2682_v41 = vld [vmem:[%s3278_s12 + $0x208] ss:$16 sps:$4 sm:$0xff]  }
  0xec   : > { %1942 = vmatprep.subr.bf16.mxu1 %v2595_v42  ;;  %v2685_v42 = vld [vmem:[%s3278_s12 + $0x408] ss:$16 sps:$4 sm:$0xff]  }
  0xee   : > { %1902 = vmatpush2.bf16.msra.mxu0 %v2590_v43  ;;  %v2690_v43 = vld [vmem:[%s3278_s12 + $0x3ec] ss:$16 sps:$4 sm:$0xff]  }
  0xef   : > { %1943 = vmatpush2.bf16.msra.mxu1 %v2593_v44  ;;  %1903 = vmatprep.subr.bf16.mxu0 %v2598_v45  ;;  %v2693_v44 = vld [vmem:[%s3278_s12 + $0x5ec] ss:$16 sps:$4 sm:$0xff]   ;;  %v2688_v45 = vld [vmem:[%s3278_s12 + $0x3e8] ss:$16 sps:$4 sm:$0xff]  }
  0xf0   : > { %1944 = vmatprep.subr.bf16.mxu1 %v2601_v46  ;;  %v2691_v46 = vld [vmem:[%s3278_s12 + $0x5e8] ss:$16 sps:$4 sm:$0xff]  }
  0xf2   : > { %1904 = vmatpush2.bf16.msra.mxu0 %v2596_v47  ;;  %v2696_v47 = vld [vmem:[%s3278_s12 + $0x3cc] ss:$16 sps:$4 sm:$0xff]  }
  0xf3   : > { %1945 = vmatpush2.bf16.msra.mxu1 %v2599_v48  ;;  %1905 = vmatprep.subr.bf16.mxu0 %v2604_v49  ;;  %v2699_v48 = vld [vmem:[%s3278_s12 + $0x5cc] ss:$16 sps:$4 sm:$0xff]   ;;  %v2694_v49 = vld [vmem:[%s3278_s12 + $0x3c8] ss:$16 sps:$4 sm:$0xff]  }
  0xf4   : > { %1946 = vmatprep.subr.bf16.mxu1 %v2607_v50  ;;  %v2697_v50 = vld [vmem:[%s3278_s12 + $0x5c8] ss:$16 sps:$4 sm:$0xff]  }
  0xf6   : > { %1906 = vmatpush2.bf16.msra.mxu0 %v2602_v51  ;;  %v2702_v51 = vld [vmem:[%s3278_s12 + $0x3ac] ss:$16 sps:$4 sm:$0xff]  }
  0xf7   : > { %1947 = vmatpush2.bf16.msra.mxu1 %v2605_v53  ;;  %1907 = vmatprep.subr.bf16.mxu0 %v2610_v54  ;;  %v2705_v53 = vld [vmem:[%s3278_s12 + $0x5ac] ss:$16 sps:$4 sm:$0xff]   ;;  %v2700_v54 = vld [vmem:[%s3278_s12 + $0x3a8] ss:$16 sps:$4 sm:$0xff]  }
  0xf8   : > { %1948 = vmatprep.subr.bf16.mxu1 %v2613_v55  ;;  %v2703_v55 = vld [vmem:[%s3278_s12 + $0x5a8] ss:$16 sps:$4 sm:$0xff]  }
  0xfa   : > { %1908 = vmatpush2.bf16.msra.mxu0 %v2608_v56  ;;  %v2708_v56 = vld [vmem:[%s3278_s12 + $0x38c] ss:$16 sps:$4 sm:$0xff]  }
  0xfb   : > { %1949 = vmatpush2.bf16.msra.mxu1 %v2611_v57  ;;  %1909 = vmatprep.subr.bf16.mxu0 %v2616_v58  ;;  %v2711_v57 = vld [vmem:[%s3278_s12 + $0x58c] ss:$16 sps:$4 sm:$0xff]   ;;  %v2706_v58 = vld [vmem:[%s3278_s12 + $0x388] ss:$16 sps:$4 sm:$0xff]  }
  0xfc   : > { %1950 = vmatprep.subr.bf16.mxu1 %v2619_v59  ;;  %v2709_v59 = vld [vmem:[%s3278_s12 + $0x588] ss:$16 sps:$4 sm:$0xff]  }
  0xfe   : > { %1910 = vmatpush2.bf16.msra.mxu0 %v2614_v60  ;;  %v2714_v60 = vld [vmem:[%s3278_s12 + $0x36c] ss:$16 sps:$4 sm:$0xff]  }
  0xff   : > { %1951 = vmatpush2.bf16.msra.mxu1 %v2617_v61  ;;  %1911 = vmatprep.subr.bf16.mxu0 %v2622_v62  ;;  %v2717_v61 = vld [vmem:[%s3278_s12 + $0x56c] ss:$16 sps:$4 sm:$0xff]   ;;  %v2712_v62 = vld [vmem:[%s3278_s12 + $0x368] ss:$16 sps:$4 sm:$0xff]  }
 0x100   : > { %1952 = vmatprep.subr.bf16.mxu1 %v2625_v63  ;;  %v2715_v63 = vld [vmem:[%s3278_s12 + $0x568] ss:$16 sps:$4 sm:$0xff]  }
 0x102   : > { %1912 = vmatpush2.bf16.msra.mxu0 %v2620_v0  ;;  %v2720_v0 = vld [vmem:[%s3278_s12 + $0x34c] ss:$16 sps:$4 sm:$0xff]  }
 0x103   : > { %1953 = vmatpush2.bf16.msra.mxu1 %v2623_v1  ;;  %1913 = vmatprep.subr.bf16.mxu0 %v2628_v2  ;;  %v2723_v1 = vld [vmem:[%s3278_s12 + $0x54c] ss:$16 sps:$4 sm:$0xff]   ;;  %v2718_v2 = vld [vmem:[%s3278_s12 + $0x348] ss:$16 sps:$4 sm:$0xff]  }
 0x104   : > { %1954 = vmatprep.subr.bf16.mxu1 %v2631_v3  ;;  %v2721_v3 = vld [vmem:[%s3278_s12 + $0x548] ss:$16 sps:$4 sm:$0xff]  }
 0x106   : > { %1914 = vmatpush2.bf16.msra.mxu0 %v2626_v4  ;;  %v2726_v4 = vld [vmem:[%s3278_s12 + $0x32c] ss:$16 sps:$4 sm:$0xff]  }
 0x107   : > { %1955 = vmatpush2.bf16.msra.mxu1 %v2629_v5  ;;  %1915 = vmatprep.subr.bf16.mxu0 %v2634_v6  ;;  %v2729_v5 = vld [vmem:[%s3278_s12 + $0x52c] ss:$16 sps:$4 sm:$0xff]   ;;  %v2724_v6 = vld [vmem:[%s3278_s12 + $0x328] ss:$16 sps:$4 sm:$0xff]  }
 0x108   : > { %1956 = vmatprep.subr.bf16.mxu1 %v2637_v9  ;;  %v2727_v9 = vld [vmem:[%s3278_s12 + $0x528] ss:$16 sps:$4 sm:$0xff]  }
 0x10a   : > { %1916 = vmatpush2.bf16.msra.mxu0 %v2632_v10  ;;  %v2732_v10 = vld [vmem:[%s3278_s12 + $0x30c] ss:$16 sps:$4 sm:$0xff]  }
 0x10b   : > { %1957 = vmatpush2.bf16.msra.mxu1 %v2635_v11  ;;  %1967 = vmatprep.subr.bf16.mxu0 %v2642_v12  ;;  %v2735_v11 = vld [vmem:[%s3278_s12 + $0x50c] ss:$16 sps:$4 sm:$0xff]   ;;  %v2730_v12 = vld [vmem:[%s3278_s12 + $0x308] ss:$16 sps:$4 sm:$0xff]  }
 0x10c   : > { %2008 = vmatprep.subr.bf16.mxu1 %v2645_v13  ;;  %v2733_v13 = vld [vmem:[%s3278_s12 + $0x508] ss:$16 sps:$4 sm:$0xff]  }
 0x10d   : > { %1918 = vmatmul.mubr.bf16.vlgmr.msra.gmra.mxu0 %v3436_v14 }
 0x10e   : > { %1959 = vmatmul.mubr.bf16.vlgmr.msra.gmra.mxu1 %v3355_v7  ;;  %1968 = vmatpush1.bf16.msra.mxu0 %v2640_v15  ;;  %v2652_v7 = vld [vmem:[%s3278_s12 + $0x2a8] ss:$16 sps:$4 sm:$0xff]  }
 0x10f   : > { %2009 = vmatpush1.bf16.msra.mxu1 %v2643_v16  ;;  %1969 = vmatprep.subr.bf16.mxu0 %v2648_v17 }
 0x110   : > { %2010 = vmatprep.subr.bf16.mxu1 %v2651_v18  ;;  %1999 = vmatprep.mubr.bf16.mxu0 %v3333_v52  ;;  %v2661_v52 = vld [vmem:[%s3278_s12 + $0x488] ss:$16 sps:$4 sm:$0xff]  }
 0x111   : > { %2040 = vmatprep.mubr.bf16.mxu1 %v3392_v35  ;;  %v2678_v35 = vld [vmem:[%s3278_s12 + $0x22c] ss:$16 sps:$4 sm:$0xff]  }
 0x112   : > { %1970 = vmatpush1.bf16.msra.mxu0 %v2646_v19 }
 0x113   : > { %2011 = vmatpush1.bf16.msra.mxu1 %v2649_v20  ;;  %1971 = vmatprep.subr.bf16.mxu0 %v2654_v21 }
 0x114   : > { %2012 = vmatprep.subr.bf16.mxu1 %v2657_v22 }
 0x116   : > { %1972 = vmatpush1.bf16.msra.mxu0 %v2652_v7 }
 0x117   : > { %2013 = vmatpush1.bf16.msra.mxu1 %v2655_v23  ;;  %1973 = vmatprep.subr.bf16.mxu0 %v2660_v24  ;;  %v623_v23 = vld [vmem:[#allocation2 + $0x10] sm:$0xff] }
 0x118   : > { %2014 = vmatprep.subr.bf16.mxu1 %v2663_v25 }
 0x11a   : > { %1974 = vmatpush1.bf16.msra.mxu0 %v2658_v26 }
 0x11b   : > { %2015 = vmatpush1.bf16.msra.mxu1 %v2661_v52  ;;  %1975 = vmatprep.subr.bf16.mxu0 %v2666_v27  ;;  %v624_v27 = vld [vmem:[#allocation2] sm:$0xff] }
 0x11c   : > { %2016 = vmatprep.subr.bf16.mxu1 %v2669_v28 }
 0x11e   : > { %1976 = vmatpush1.bf16.msra.mxu0 %v2664_v29 }
 0x11f   : > { %2017 = vmatpush1.bf16.msra.mxu1 %v2667_v30  ;;  %1977 = vmatprep.subr.bf16.mxu0 %v2672_v31 }
 0x120   : > { %2018 = vmatprep.subr.bf16.mxu1 %v2675_v32 }
 0x122   : > { %1978 = vmatpush1.bf16.msra.mxu0 %v2670_v33 }
 0x123   : > { %2019 = vmatpush1.bf16.msra.mxu1 %v2673_v34  ;;  %1979 = vmatprep.subr.bf16.mxu0 %v2678_v35 }
 0x124   : > { %2020 = vmatprep.subr.bf16.mxu1 %v2681_v36 }
 0x126   : > { %1980 = vmatpush1.bf16.msra.mxu0 %v2676_v37 }
 0x127   : > { %2021 = vmatpush1.bf16.msra.mxu1 %v2679_v38  ;;  %1981 = vmatprep.subr.bf16.mxu0 %v2684_v39  ;;  %v625_v38 = vld [vmem:[#allocation2 + $0x18] sm:$0xff] }
 0x128   : > { %2022 = vmatprep.subr.bf16.mxu1 %v2687_v40 }
 0x12a   : > { %1982 = vmatpush1.bf16.msra.mxu0 %v2682_v41 }
 0x12b   : > { %2023 = vmatpush1.bf16.msra.mxu1 %v2685_v42  ;;  %1983 = vmatprep.subr.bf16.mxu0 %v2690_v43  ;;  %v626_v43 = vld [vmem:[#allocation2 + $0x8] sm:$0xff] }
 0x12c   : > { %2024 = vmatprep.subr.bf16.mxu1 %v2693_v44 }
 0x12e   : > { %1984 = vmatpush2.bf16.msra.mxu0 %v2688_v45 }
 0x12f   : > { %2025 = vmatpush2.bf16.msra.mxu1 %v2691_v46  ;;  %1985 = vmatprep.subr.bf16.mxu0 %v2696_v47 }
 0x130   : > { %2026 = vmatprep.subr.bf16.mxu1 %v2699_v48 }
 0x132   : > { %1986 = vmatpush2.bf16.msra.mxu0 %v2694_v49 }
 0x133   : > { %2027 = vmatpush2.bf16.msra.mxu1 %v2697_v50  ;;  %1987 = vmatprep.subr.bf16.mxu0 %v2702_v51 }
 0x134   : > { %2028 = vmatprep.subr.bf16.mxu1 %v2705_v53 }
 0x136   : > { %1988 = vmatpush2.bf16.msra.mxu0 %v2700_v54 }
 0x137   : > { %2029 = vmatpush2.bf16.msra.mxu1 %v2703_v55  ;;  %1989 = vmatprep.subr.bf16.mxu0 %v2708_v56 }
 0x138   : > { %2030 = vmatprep.subr.bf16.mxu1 %v2711_v57 }
 0x13a   : > { %1990 = vmatpush2.bf16.msra.mxu0 %v2706_v58 }
 0x13b   : > { %2031 = vmatpush2.bf16.msra.mxu1 %v2709_v59  ;;  %1991 = vmatprep.subr.bf16.mxu0 %v2714_v60 }
 0x13c   : > { %2032 = vmatprep.subr.bf16.mxu1 %v2717_v61 }
 0x13e   : > { %1992 = vmatpush2.bf16.msra.mxu0 %v2712_v62 }
 0x13f   : > { %2033 = vmatpush2.bf16.msra.mxu1 %v2715_v63  ;;  %1993 = vmatprep.subr.bf16.mxu0 %v2720_v0 }
 0x140   : > { %2034 = vmatprep.subr.bf16.mxu1 %v2723_v1 }
 0x142   : > { %1994 = vmatpush2.bf16.msra.mxu0 %v2718_v2 }
 0x143   : > { %2035 = vmatpush2.bf16.msra.mxu1 %v2721_v3  ;;  %1995 = vmatprep.subr.bf16.mxu0 %v2726_v4 }
 0x144   : > { %2036 = vmatprep.subr.bf16.mxu1 %v2729_v5 }
 0x146   : > { %1996 = vmatpush2.bf16.msra.mxu0 %v2724_v6 }
 0x147   : > { %2037 = vmatpush2.bf16.msra.mxu1 %v2727_v9  ;;  %1997 = vmatprep.subr.bf16.mxu0 %v2732_v10 }
 0x148   : > { %2038 = vmatprep.subr.bf16.mxu1 %v2735_v11 }
 0x14a   : > { %1998 = vmatpush2.bf16.msra.mxu0 %v2730_v12 }
 0x14b   : > { %2039 = vmatpush2.bf16.msra.mxu1 %v2733_v13 }
 0x14d   : > { %2000 = vmatmul.mubr.bf16.vlgmr.msra.gmra.mxu0 %v3357_v8 }
 0x14e   : > { %2041 = vmatmul.mubr.bf16.vlgmr.msra.gmra.mxu1 %v3436_v14 }
 0x18d   : > { %v1837_v15 = vpop.f32.mrf.mxu0 }
 0x18e   : > { %v1878_v16 = vpop.f32.mrf.mxu1 }
 0x18f   : > { %v1839_v17 = vpop.f32.mrf.mxu0  ;;  %v1879_v7 = vadd.f32 %v1878_v16, %v1837_v15 }
 0x190   : > { %v1880_v18 = vpop.f32.mrf.mxu1 }
 0x191   : > { %v1841_v19 = vpop.f32.mrf.mxu0  ;;  %v1881_v26 = vadd.f32 %v1880_v18, %v1839_v17 }
 0x192   : > { %v1882_v20 = vpop.f32.mrf.mxu1 }
 0x193   : > { %v1842_v21 = vpop.f32.mrf.mxu0 }
 0x194   : > { %v1883_v22 = vpop.f32.mrf.mxu1 }
 0x1cd   : > { %v1919_v24 = vpop.f32.mrf.mxu0 }
 0x1ce   : > { %v1960_v25 = vpop.f32.mrf.mxu1  ;;  %v1920_v52 = vadd.f32 %v1919_v24, %v1879_v7 }
 0x1cf   : > { %v1921_v28 = vpop.f32.mrf.mxu0 }
 0x1d0   : > { %v1962_v29 = vpop.f32.mrf.mxu1  ;;  %v2049_v8 = vadd.f32 %v1920_v52, %v623_v23  ;;  %v1922_v30 = vadd.f32 %v1921_v28, %v1881_v26 }
 0x1d1   : > { %v1923_v14 = vpop.f32.mrf.mxu0 }
 0x1d2   : > { %v1964_v31 = vpop.f32.mrf.mxu1  ;;  %2053 = vst [vmem:[#allocation2 + $0x10] sm:$0xff] %v2049_v8  ;;  %v2050_v32 = vadd.f32 %v1922_v30, %v624_v27 }
 0x1d3   : > { %v1924_v33 = vpop.f32.mrf.mxu0 }
 0x1d4   : > { %v1965_v34 = vpop.f32.mrf.mxu1  ;;  %2054 = vst [vmem:[#allocation2] sm:$0xff] %v2050_v32 }
 0x20d   : > { %v2001_v35 = vpop.f32.mrf.mxu0 }
 0x20e   : > { %v2042_v36 = vpop.f32.mrf.mxu1  ;;  %v2002_v37 = vadd.f32 %v2001_v35, %v1960_v25 }
 0x20f   : > { %v2003_v39 = vpop.f32.mrf.mxu0 }
 0x210   : > { %v2044_v40 = vpop.f32.mrf.mxu1  ;;  %v2043_v41 = vadd.f32 %v2042_v36, %v2002_v37  ;;  %v2004_v42 = vadd.f32 %v2003_v39, %v1962_v29 }
 0x211   : > { %v2005_v44 = vpop.f32.mrf.mxu0 }
 0x212   : > { %v2046_v45 = vpop.f32.mrf.mxu1  ;;  %v2051_v46 = vadd.f32 %v2043_v41, %v625_v38  ;;  %v2045_v47 = vadd.f32 %v2044_v40, %v2004_v42  ;;  %2060 = sbr.rel (%p2378_p13) target bundleno = 665 (0x299), region = 63 }
 0x213   : > { %v2006_v48 = vpop.f32.mrf.mxu0 }
 0x214   : > { %v2047_v49 = vpop.f32.mrf.mxu1  ;;  %2055 = vst [vmem:[#allocation2 + $0x18] sm:$0xff] %v2051_v46  ;;  %v2052_v50 = vadd.f32 %v2045_v47, %v626_v43 }
 0x216   : > { %2056 = vst [vmem:[#allocation2 + $0x8] sm:$0xff] %v2052_v50 }
 0x217   : > { %v2065_v51 = vld [vmem:[%s3537_s2] sm:$0xff]  ;;  %v2794_v53 = vmov 0   ;;  %v2061_v54 = vld [vmem:[#allocation2 + $0x10] sm:$0xff] }
 0x218   : > { %2736 = vset.pattern.permute.xlu0 %v2794_v53  ;;  %v2062_v55 = vld [vmem:[#allocation2] sm:$0xff] }
 0x219   : > { %2068 = vperm.xlu0 %2736, %v2065_v51  }
 0x21b   : > { %v2063_v57 = vld [vmem:[#allocation2 + $0x18] sm:$0xff] }
 0x21d   : > { %v2064_v58 = vld [vmem:[#allocation2 + $0x8] sm:$0xff] }
 0x294   : > { %v2069_v56 = vpop.permute.xlu0 %2068 }
 0x295   : > { %v2071_v59 = vadd.f32 %v2069_v56, %v2061_v54  ;;  %v2072_v60 = vadd.f32 %v2069_v56, %v2062_v55  ;;  %v2073_v61 = vadd.f32 %v2069_v56, %v2063_v57  ;;  %v2074_v62 = vadd.f32 %v2069_v56, %v2064_v58 }
 0x297   : > { %2075 = vst [vmem:[%s3276_s30] sm:$0xff] %v2071_v59  ;;  %2076 = vst [vmem:[%s3276_s30 + $0x8] sm:$0xff] %v2072_v60 }
 0x298   : > { %2077 = vst [vmem:[%s3276_s30 + $0x10] sm:$0xff] %v2073_v61  ;;  %2078 = vst [vmem:[%s3276_s30 + $0x18] sm:$0xff] %v2074_v62 }
 0x299 PF: > { %s13_s18 = sadd.s32 1, %s2791_s18   ;;  %s3539_s12 = smov %s2771_s13 }
 0x29a   : > { %p10_p0 = scmp.ge.s32.totalorder %s13_s18, 52   ;;  %s3540_s13 = smov %s2866_s25 }
 0x29b   : > { %s3541_s14 = smov %s2783_s16  ;;  %s3542_s15 = smov %s2787_s17 }
 0x29c   : > { %s3543_s16 = smov %s3546_s19  ;;  %s3544_s17 = smov %s3550_s20 }
 0x29d   :  { %12 = sbr.rel (!%p10_p0) target bundleno = 4 (0x4), region = 101 }

// kernel: csnet_forward.13
= control target key start
LH: loop header
LB: loop body
LE: loop exit
PB: predicated region body
PF: predicated region fallthrough
CT: control target
= control target key end

     0   :  { %s2239_s12 = smov 0   ;;  %s2241_s13 = smov 0   ;;  %s2863_s0 = inlined_call_operand.vmem [shape: bf16[64,384], index: 0, kind: input, shape index: {}]   ;;  %s2864_s1 = inlined_call_operand.vmem [shape: bf16[384,1024], index: 1, kind: input, shape index: {}]   ;;  %s2865_s2 = inlined_call_operand.vmem [shape: f32[64,1], index: 2, kind: input, shape index: {}]   ;;  %s2866_s3 = inlined_call_operand.vmem [shape: f32[64,1024], index: 3, kind: output, shape index: {}]  }
   0x1   :  { %s2243_s14 = smov 0   ;;  %s2245_s15 = smov 0  }
   0x2   :  { %s2247_s16 = smov 0  }
   0x3 LB: > { %s25_s17 = sadd.s32 1, %s2212_s15  ;;  %s1849_s18 = sadd.s32 4294967295, %s2216_s16   ;;  %s2216_s16 = sphi %s2247_s16, %s13_s16   ;;  %s2212_s15 = sphi %s2245_s15, %s2871_s15   ;;  %s2208_s14 = sphi %s2243_s14, %s2870_s14   ;;  %s2204_s13 = sphi %s2241_s13, %s2869_s13   ;;  %s2200_s12 = sphi %s2239_s12, %s2868_s12  }
   0x4   : > { %p27_p0 = scmp.ge.s32.totalorder %s25_s17, 2  ;;  %p67_p1 = scmp.ne.s32.totalorder %s2204_s13, %s2200_s12 }
   0x5   : > { %p68_p2 = scmp.eq.s32.totalorder %s2216_s16, 0  ;;  %p118_p4 = scmp.eq.s32.totalorder %s1849_s18, 1 }
   0x6   : > { %s2873_s17 = smov (%p27_p0, %s25_s17), 0  ;;  %s60_s20 = sadd.s32 1, %s2204_s13 }
   0x7   : > { %p69_p3 = por %p68_p2, %p67_p1  ;;  %s56_s19 = ssub.s32 %s2212_s15, %s2873_s17 }
   0x8   : > { %p58_p5 = scmp.eq.s32.totalorder %s56_s19, 0  ;;  %p2274_p6 = por %p118_p4, %p67_p1 }
   0x9   : > { %p1853_p7 = scmp.ge.s32.totalorder %s2216_s16, 2 }
   0xa   : > { %s2279_s22 = scalar_select %p58_p5, %s2204_s13, %s60_s20  }
   0xb   : > { %152 = sbr.rel (%p1853_p7) target bundleno = 68 (0x44), region = 24 }
  0x10   : > { %155 = sbr.rel (!%p69_p3) target bundleno = 68 (0x44), region = 28  ;;  %s157_s23 = sand.u32 (%p69_p3), 1, %s2204_s13  }
  0x11   : > { %s1971_s24 = sshll.u32 (%p69_p3), %s2212_s15, 4  ;;  %s1973_s25 = smul.u32 (%p69_p3), 768, %s157_s23 }
  0x12   : > { %s2287_s28 = scalar_lea.vmem (%p69_p3), %s2864_s1, %s1971_s24 }
  0x13   : > { %v178_v0 = vld [vmem:[%s2287_s28] sm:$0xff] (%p69_p3)  ;;  %v180_v1 = vld [vmem:[%s2287_s28 + $0x8] sm:$0xff] (%p69_p3)  ;;  %s2295_s29 = scalar_lea.vmem (%p69_p3), [#allocation3], %s1973_s25 }
  0x14   : > { %v182_v2 = vld [vmem:[%s2287_s28 + $0x20] sm:$0xff] (%p69_p3)  ;;  %v184_v3 = vld [vmem:[%s2287_s28 + $0x28] sm:$0xff] (%p69_p3)  ;;  %179 = vst [vmem:[%s2295_s29] sm:$0xff] (%p69_p3), %v178_v0  ;;  %181 = vst [vmem:[%s2295_s29 + $0x8] sm:$0xff] (%p69_p3), %v180_v1 }
  0x15   : > { %v186_v4 = vld [vmem:[%s2287_s28 + $0x40] sm:$0xff]  ;;  %v188_v5 = vld [vmem:[%s2287_s28 + $0x48] sm:$0xff]  ;;  %183 = vst [vmem:[%s2295_s29 + $0x10] sm:$0xff] %v182_v2  ;;  %185 = vst [vmem:[%s2295_s29 + $0x18] sm:$0xff] %v184_v3 }
  0x16   : > { %187 = vst [vmem:[%s2295_s29 + $0x20] sm:$0xff] %v186_v4  ;;  %189 = vst [vmem:[%s2295_s29 + $0x28] sm:$0xff] %v188_v5  ;;  %v190_v6 = vld [vmem:[%s2287_s28 + $0x60] sm:$0xff]  ;;  %v192_v7 = vld [vmem:[%s2287_s28 + $0x68] sm:$0xff] }
  0x17   : > { %v194_v8 = vld [vmem:[%s2287_s28 + $0x80] sm:$0xff]  ;;  %191 = vst [vmem:[%s2295_s29 + $0x30] sm:$0xff] %v190_v6  ;;  %193 = vst [vmem:[%s2295_s29 + $0x38] sm:$0xff] %v192_v7  ;;  %v196_v9 = vld [vmem:[%s2287_s28 + $0x88] sm:$0xff] }
  0x18   : > { %195 = vst [vmem:[%s2295_s29 + $0x40] sm:$0xff] %v194_v8  ;;  %v198_v10 = vld [vmem:[%s2287_s28 + $0xa0] sm:$0xff]  ;;  %v200_v11 = vld [vmem:[%s2287_s28 + $0xa8] sm:$0xff]  ;;  %197 = vst [vmem:[%s2295_s29 + $0x48] sm:$0xff] %v196_v9 }
  0x19   : > { %199 = vst [vmem:[%s2295_s29 + $0x50] sm:$0xff] %v198_v10  ;;  %201 = vst [vmem:[%s2295_s29 + $0x58] sm:$0xff] %v200_v11  ;;  %v202_v12 = vld [vmem:[%s2287_s28 + $0xc0] sm:$0xff]  ;;  %v204_v13 = vld [vmem:[%s2287_s28 + $0xc8] sm:$0xff] }
  0x1a   : > { %v206_v14 = vld [vmem:[%s2287_s28 + $0xe0] sm:$0xff]  ;;  %203 = vst [vmem:[%s2295_s29 + $0x60] sm:$0xff] %v202_v12  ;;  %205 = vst [vmem:[%s2295_s29 + $0x68] sm:$0xff] %v204_v13  ;;  %v208_v15 = vld [vmem:[%s2287_s28 + $0xe8] sm:$0xff] }
  0x1b   : > { %207 = vst [vmem:[%s2295_s29 + $0x70] sm:$0xff] %v206_v14  ;;  %v210_v16 = vld [vmem:[%s2287_s28 + $0x100] sm:$0xff]  ;;  %v212_v17 = vld [vmem:[%s2287_s28 + $0x108] sm:$0xff]  ;;  %209 = vst [vmem:[%s2295_s29 + $0x78] sm:$0xff] %v208_v15 }
  0x1c   : > { %211 = vst [vmem:[%s2295_s29 + $0x80] sm:$0xff] %v210_v16  ;;  %213 = vst [vmem:[%s2295_s29 + $0x88] sm:$0xff] %v212_v17  ;;  %v214_v18 = vld [vmem:[%s2287_s28 + $0x120] sm:$0xff]  ;;  %v216_v19 = vld [vmem:[%s2287_s28 + $0x128] sm:$0xff] }
  0x1d   : > { %v218_v20 = vld [vmem:[%s2287_s28 + $0x140] sm:$0xff]  ;;  %215 = vst [vmem:[%s2295_s29 + $0x90] sm:$0xff] %v214_v18  ;;  %217 = vst [vmem:[%s2295_s29 + $0x98] sm:$0xff] %v216_v19  ;;  %v220_v21 = vld [vmem:[%s2287_s28 + $0x148] sm:$0xff] }
  0x1e   : > { %219 = vst [vmem:[%s2295_s29 + $0xa0] sm:$0xff] %v218_v20  ;;  %v222_v22 = vld [vmem:[%s2287_s28 + $0x160] sm:$0xff]  ;;  %v224_v23 = vld [vmem:[%s2287_s28 + $0x168] sm:$0xff]  ;;  %221 = vst [vmem:[%s2295_s29 + $0xa8] sm:$0xff] %v220_v21 }
  0x1f   : > { %223 = vst [vmem:[%s2295_s29 + $0xb0] sm:$0xff] %v222_v22  ;;  %225 = vst [vmem:[%s2295_s29 + $0xb8] sm:$0xff] %v224_v23  ;;  %v226_v24 = vld [vmem:[%s2287_s28 + $0x180] sm:$0xff]  ;;  %v228_v25 = vld [vmem:[%s2287_s28 + $0x188] sm:$0xff] }
  0x20   : > { %v230_v26 = vld [vmem:[%s2287_s28 + $0x1a0] sm:$0xff]  ;;  %227 = vst [vmem:[%s2295_s29 + $0xc0] sm:$0xff] %v226_v24  ;;  %229 = vst [vmem:[%s2295_s29 + $0xc8] sm:$0xff] %v228_v25  ;;  %v232_v27 = vld [vmem:[%s2287_s28 + $0x1a8] sm:$0xff] }
  0x21   : > { %231 = vst [vmem:[%s2295_s29 + $0xd0] sm:$0xff] %v230_v26  ;;  %v234_v28 = vld [vmem:[%s2287_s28 + $0x1c0] sm:$0xff]  ;;  %v236_v29 = vld [vmem:[%s2287_s28 + $0x1c8] sm:$0xff]  ;;  %233 = vst [vmem:[%s2295_s29 + $0xd8] sm:$0xff] %v232_v27 }
  0x22   : > { %235 = vst [vmem:[%s2295_s29 + $0xe0] sm:$0xff] %v234_v28  ;;  %237 = vst [vmem:[%s2295_s29 + $0xe8] sm:$0xff] %v236_v29  ;;  %v238_v30 = vld [vmem:[%s2287_s28 + $0x1e0] sm:$0xff]  ;;  %v240_v31 = vld [vmem:[%s2287_s28 + $0x1e8] sm:$0xff] }
  0x23   : > { %v242_v32 = vld [vmem:[%s2287_s28 + $0x200] sm:$0xff]  ;;  %239 = vst [vmem:[%s2295_s29 + $0xf0] sm:$0xff] %v238_v30  ;;  %241 = vst [vmem:[%s2295_s29 + $0xf8] sm:$0xff] %v240_v31  ;;  %v244_v33 = vld [vmem:[%s2287_s28 + $0x208] sm:$0xff] }
  0x24   : > { %243 = vst [vmem:[%s2295_s29 + $0x100] sm:$0xff] %v242_v32  ;;  %v246_v34 = vld [vmem:[%s2287_s28 + $0x220] sm:$0xff]  ;;  %v248_v35 = vld [vmem:[%s2287_s28 + $0x228] sm:$0xff]  ;;  %245 = vst [vmem:[%s2295_s29 + $0x108] sm:$0xff] %v244_v33 }
  0x25   : > { %247 = vst [vmem:[%s2295_s29 + $0x110] sm:$0xff] %v246_v34  ;;  %249 = vst [vmem:[%s2295_s29 + $0x118] sm:$0xff] %v248_v35  ;;  %v250_v36 = vld [vmem:[%s2287_s28 + $0x240] sm:$0xff]  ;;  %v252_v37 = vld [vmem:[%s2287_s28 + $0x248] sm:$0xff] }
  0x26   : > { %v254_v38 = vld [vmem:[%s2287_s28 + $0x260] sm:$0xff]  ;;  %251 = vst [vmem:[%s2295_s29 + $0x120] sm:$0xff] %v250_v36  ;;  %253 = vst [vmem:[%s2295_s29 + $0x128] sm:$0xff] %v252_v37  ;;  %v256_v39 = vld [vmem:[%s2287_s28 + $0x268] sm:$0xff] }
  0x27   : > { %255 = vst [vmem:[%s2295_s29 + $0x130] sm:$0xff] %v254_v38  ;;  %v258_v40 = vld [vmem:[%s2287_s28 + $0x280] sm:$0xff]  ;;  %v260_v41 = vld [vmem:[%s2287_s28 + $0x288] sm:$0xff]  ;;  %257 = vst [vmem:[%s2295_s29 + $0x138] sm:$0xff] %v256_v39 }
  0x28   : > { %259 = vst [vmem:[%s2295_s29 + $0x140] sm:$0xff] %v258_v40  ;;  %261 = vst [vmem:[%s2295_s29 + $0x148] sm:$0xff] %v260_v41  ;;  %v262_v42 = vld [vmem:[%s2287_s28 + $0x2a0] sm:$0xff]  ;;  %v264_v43 = vld [vmem:[%s2287_s28 + $0x2a8] sm:$0xff] }
  0x29   : > { %v266_v44 = vld [vmem:[%s2287_s28 + $0x2c0] sm:$0xff]  ;;  %263 = vst [vmem:[%s2295_s29 + $0x150] sm:$0xff] %v262_v42  ;;  %265 = vst [vmem:[%s2295_s29 + $0x158] sm:$0xff] %v264_v43  ;;  %v268_v45 = vld [vmem:[%s2287_s28 + $0x2c8] sm:$0xff] }
  0x2a   : > { %267 = vst [vmem:[%s2295_s29 + $0x160] sm:$0xff] %v266_v44  ;;  %v270_v46 = vld [vmem:[%s2287_s28 + $0x2e0] sm:$0xff]  ;;  %v272_v47 = vld [vmem:[%s2287_s28 + $0x2e8] sm:$0xff]  ;;  %269 = vst [vmem:[%s2295_s29 + $0x168] sm:$0xff] %v268_v45 }
  0x2b   : > { %271 = vst [vmem:[%s2295_s29 + $0x170] sm:$0xff] %v270_v46  ;;  %273 = vst [vmem:[%s2295_s29 + $0x178] sm:$0xff] %v272_v47  ;;  %v274_v48 = vld [vmem:[%s2287_s28 + $0x300] sm:$0xff]  ;;  %v276_v49 = vld [vmem:[%s2287_s28 + $0x308] sm:$0xff] }
  0x2c   : > { %v278_v50 = vld [vmem:[%s2287_s28 + $0x320] sm:$0xff]  ;;  %275 = vst [vmem:[%s2295_s29 + $0x180] sm:$0xff] %v274_v48  ;;  %277 = vst [vmem:[%s2295_s29 + $0x188] sm:$0xff] %v276_v49  ;;  %v280_v51 = vld [vmem:[%s2287_s28 + $0x328] sm:$0xff] }
  0x2d   : > { %279 = vst [vmem:[%s2295_s29 + $0x190] sm:$0xff] %v278_v50  ;;  %v282_v52 = vld [vmem:[%s2287_s28 + $0x340] sm:$0xff]  ;;  %v284_v53 = vld [vmem:[%s2287_s28 + $0x348] sm:$0xff]  ;;  %281 = vst [vmem:[%s2295_s29 + $0x198] sm:$0xff] %v280_v51 }
  0x2e   : > { %283 = vst [vmem:[%s2295_s29 + $0x1a0] sm:$0xff] %v282_v52  ;;  %285 = vst [vmem:[%s2295_s29 + $0x1a8] sm:$0xff] %v284_v53  ;;  %v286_v54 = vld [vmem:[%s2287_s28 + $0x360] sm:$0xff]  ;;  %v288_v55 = vld [vmem:[%s2287_s28 + $0x368] sm:$0xff] }
  0x2f   : > { %v290_v56 = vld [vmem:[%s2287_s28 + $0x380] sm:$0xff]  ;;  %287 = vst [vmem:[%s2295_s29 + $0x1b0] sm:$0xff] %v286_v54  ;;  %289 = vst [vmem:[%s2295_s29 + $0x1b8] sm:$0xff] %v288_v55  ;;  %v292_v57 = vld [vmem:[%s2287_s28 + $0x388] sm:$0xff] }
  0x30   : > { %291 = vst [vmem:[%s2295_s29 + $0x1c0] sm:$0xff] %v290_v56  ;;  %v294_v58 = vld [vmem:[%s2287_s28 + $0x3a0] sm:$0xff]  ;;  %v296_v59 = vld [vmem:[%s2287_s28 + $0x3a8] sm:$0xff]  ;;  %293 = vst [vmem:[%s2295_s29 + $0x1c8] sm:$0xff] %v292_v57 }
  0x31   : > { %295 = vst [vmem:[%s2295_s29 + $0x1d0] sm:$0xff] %v294_v58  ;;  %297 = vst [vmem:[%s2295_s29 + $0x1d8] sm:$0xff] %v296_v59  ;;  %v298_v60 = vld [vmem:[%s2287_s28 + $0x3c0] sm:$0xff]  ;;  %v300_v61 = vld [vmem:[%s2287_s28 + $0x3c8] sm:$0xff] }
  0x32   : > { %v302_v62 = vld [vmem:[%s2287_s28 + $0x3e0] sm:$0xff]  ;;  %299 = vst [vmem:[%s2295_s29 + $0x1e0] sm:$0xff] %v298_v60  ;;  %301 = vst [vmem:[%s2295_s29 + $0x1e8] sm:$0xff] %v300_v61  ;;  %v304_v63 = vld [vmem:[%s2287_s28 + $0x3e8] sm:$0xff] }
  0x33   : > { %303 = vst [vmem:[%s2295_s29 + $0x1f0] sm:$0xff] %v302_v62  ;;  %v306_v0 = vld [vmem:[%s2287_s28 + $0x400] sm:$0xff]  ;;  %v308_v1 = vld [vmem:[%s2287_s28 + $0x408] sm:$0xff]  ;;  %305 = vst [vmem:[%s2295_s29 + $0x1f8] sm:$0xff] %v304_v63 }
  0x34   : > { %307 = vst [vmem:[%s2295_s29 + $0x200] sm:$0xff] %v306_v0  ;;  %309 = vst [vmem:[%s2295_s29 + $0x208] sm:$0xff] %v308_v1  ;;  %v310_v2 = vld [vmem:[%s2287_s28 + $0x420] sm:$0xff]  ;;  %v312_v3 = vld [vmem:[%s2287_s28 + $0x428] sm:$0xff] }
  0x35   : > { %v314_v4 = vld [vmem:[%s2287_s28 + $0x440] sm:$0xff]  ;;  %311 = vst [vmem:[%s2295_s29 + $0x210] sm:$0xff] %v310_v2  ;;  %313 = vst [vmem:[%s2295_s29 + $0x218] sm:$0xff] %v312_v3  ;;  %v316_v5 = vld [vmem:[%s2287_s28 + $0x448] sm:$0xff] }
  0x36   : > { %315 = vst [vmem:[%s2295_s29 + $0x220] sm:$0xff] %v314_v4  ;;  %v318_v6 = vld [vmem:[%s2287_s28 + $0x460] sm:$0xff]  ;;  %v320_v7 = vld [vmem:[%s2287_s28 + $0x468] sm:$0xff]  ;;  %317 = vst [vmem:[%s2295_s29 + $0x228] sm:$0xff] %v316_v5 }
  0x37   : > { %319 = vst [vmem:[%s2295_s29 + $0x230] sm:$0xff] %v318_v6  ;;  %321 = vst [vmem:[%s2295_s29 + $0x238] sm:$0xff] %v320_v7  ;;  %v322_v8 = vld [vmem:[%s2287_s28 + $0x480] sm:$0xff]  ;;  %v324_v9 = vld [vmem:[%s2287_s28 + $0x488] sm:$0xff] }
  0x38   : > { %v326_v10 = vld [vmem:[%s2287_s28 + $0x4a0] sm:$0xff]  ;;  %323 = vst [vmem:[%s2295_s29 + $0x240] sm:$0xff] %v322_v8  ;;  %325 = vst [vmem:[%s2295_s29 + $0x248] sm:$0xff] %v324_v9  ;;  %v328_v11 = vld [vmem:[%s2287_s28 + $0x4a8] sm:$0xff] }
  0x39   : > { %327 = vst [vmem:[%s2295_s29 + $0x250] sm:$0xff] %v326_v10  ;;  %v330_v12 = vld [vmem:[%s2287_s28 + $0x4c0] sm:$0xff]  ;;  %v332_v13 = vld [vmem:[%s2287_s28 + $0x4c8] sm:$0xff]  ;;  %329 = vst [vmem:[%s2295_s29 + $0x258] sm:$0xff] %v328_v11 }
  0x3a   : > { %331 = vst [vmem:[%s2295_s29 + $0x260] sm:$0xff] %v330_v12  ;;  %333 = vst [vmem:[%s2295_s29 + $0x268] sm:$0xff] %v332_v13  ;;  %v334_v14 = vld [vmem:[%s2287_s28 + $0x4e0] sm:$0xff]  ;;  %v336_v15 = vld [vmem:[%s2287_s28 + $0x4e8] sm:$0xff] }
  0x3b   : > { %v338_v16 = vld [vmem:[%s2287_s28 + $0x500] sm:$0xff]  ;;  %335 = vst [vmem:[%s2295_s29 + $0x270] sm:$0xff] %v334_v14  ;;  %337 = vst [vmem:[%s2295_s29 + $0x278] sm:$0xff] %v336_v15  ;;  %v340_v17 = vld [vmem:[%s2287_s28 + $0x508] sm:$0xff] }
  0x3c   : > { %339 = vst [vmem:[%s2295_s29 + $0x280] sm:$0xff] %v338_v16  ;;  %v342_v18 = vld [vmem:[%s2287_s28 + $0x520] sm:$0xff]  ;;  %v344_v19 = vld [vmem:[%s2287_s28 + $0x528] sm:$0xff]  ;;  %341 = vst [vmem:[%s2295_s29 + $0x288] sm:$0xff] %v340_v17 }
  0x3d   : > { %343 = vst [vmem:[%s2295_s29 + $0x290] sm:$0xff] %v342_v18  ;;  %345 = vst [vmem:[%s2295_s29 + $0x298] sm:$0xff] %v344_v19  ;;  %v346_v20 = vld [vmem:[%s2287_s28 + $0x540] sm:$0xff]  ;;  %v348_v21 = vld [vmem:[%s2287_s28 + $0x548] sm:$0xff] }
  0x3e   : > { %v350_v22 = vld [vmem:[%s2287_s28 + $0x560] sm:$0xff]  ;;  %347 = vst [vmem:[%s2295_s29 + $0x2a0] sm:$0xff] %v346_v20  ;;  %349 = vst [vmem:[%s2295_s29 + $0x2a8] sm:$0xff] %v348_v21  ;;  %v352_v23 = vld [vmem:[%s2287_s28 + $0x568] sm:$0xff] }
  0x3f   : > { %351 = vst [vmem:[%s2295_s29 + $0x2b0] sm:$0xff] %v350_v22  ;;  %v354_v24 = vld [vmem:[%s2287_s28 + $0x580] sm:$0xff]  ;;  %v356_v25 = vld [vmem:[%s2287_s28 + $0x588] sm:$0xff]  ;;  %353 = vst [vmem:[%s2295_s29 + $0x2b8] sm:$0xff] %v352_v23 }
  0x40   : > { %355 = vst [vmem:[%s2295_s29 + $0x2c0] sm:$0xff] %v354_v24  ;;  %357 = vst [vmem:[%s2295_s29 + $0x2c8] sm:$0xff] %v356_v25  ;;  %v358_v26 = vld [vmem:[%s2287_s28 + $0x5a0] sm:$0xff]  ;;  %v360_v27 = vld [vmem:[%s2287_s28 + $0x5a8] sm:$0xff] }
  0x41   : > { %v362_v28 = vld [vmem:[%s2287_s28 + $0x5c0] sm:$0xff]  ;;  %359 = vst [vmem:[%s2295_s29 + $0x2d0] sm:$0xff] %v358_v26  ;;  %361 = vst [vmem:[%s2295_s29 + $0x2d8] sm:$0xff] %v360_v27  ;;  %v364_v29 = vld [vmem:[%s2287_s28 + $0x5c8] sm:$0xff] }
  0x42   : > { %363 = vst [vmem:[%s2295_s29 + $0x2e0] sm:$0xff] %v362_v28  ;;  %v366_v30 = vld [vmem:[%s2287_s28 + $0x5e0] sm:$0xff]  ;;  %v368_v31 = vld [vmem:[%s2287_s28 + $0x5e8] sm:$0xff]  ;;  %365 = vst [vmem:[%s2295_s29 + $0x2e8] sm:$0xff] %v364_v29 }
  0x43   : > { %367 = vst [vmem:[%s2295_s29 + $0x2f0] sm:$0xff] %v366_v30  ;;  %369 = vst [vmem:[%s2295_s29 + $0x2f8] sm:$0xff] %v368_v31 }
  0x44 PF: > { %p1856_p8 = scmp.ge.s32.totalorder %s2216_s16, 1  ;;  %p374_p9 = scmp.lt.s32.totalorder %s2216_s16, 3 }
  0x46   : > { %p375_p10 = pnand %p1856_p8, %p374_p9 }
  0x47   : > { %s381_s30 = sand.u32 (!%p375_p10), 1, %s2200_s12  }
  0x48   : > { %378 = sbr.rel (%p375_p10) target bundleno = 414 (0x19e), region = 51 }
  0x49   : > { %s1974_s4 = smul.u32 (!%p375_p10), 768, %s381_s30 }
  0x4b   : > { %s2496_s7 = scalar_lea.vmem (!%p375_p10), [#allocation3], %s1974_s4 }
  0x4d   : > { %v2218_v32 = vmov 0   ;;  %v2493_v33 = vld [vmem:[%s2863_s0 + $0x4] ss:$12 sps:$4 sm:$0xff]   ;;  %v2071_v3 = vld [vmem:[%s2496_s7 + $0xec] ss:$16 sps:$4 sm:$0xff]   ;;  %s1972_s12 = sshll.u32 (%p2274_p6), %s2208_s14, 5 }
  0x4e   : > { %1247 = vmatprep.mubr.bf16.mxu1 %v2218_v32  ;;  %2016 = vset.pattern.permute.xlu0 %v2218_v32  ;;  %v2018_v34 = vld [vmem:[%s2496_s7 + $0xe4] ss:$16 sps:$4 sm:$0xff]   ;;  %v2022_v36 = vld [vmem:[%s2496_s7 + $0xe0] ss:$16 sps:$4 sm:$0xff]   ;;  %v2069_v5 = vld [vmem:[%s2496_s7 + $0xe8] ss:$16 sps:$4 sm:$0xff]   ;;  %s2785_s20 = scalar_lea.vmem (%p2274_p6), %s2866_s3, %s1972_s12 }
  0x4f   : > { %2017 = vset.pattern.permute.xlu1 %v2218_v32  ;;  %1174 = vmatprep.mubr.bf16.mxu0 %v2493_v33  ;;  %v2020_v35 = vld [vmem:[%s2496_s7 + $0x2e4] ss:$16 sps:$4 sm:$0xff]   ;;  %v2023_v37 = vld [vmem:[%s2496_s7 + $0x2e0] ss:$16 sps:$4 sm:$0xff]   ;;  %v2077_v8 = vld [vmem:[%s2496_s7 + $0xcc] ss:$16 sps:$4 sm:$0xff]  }
  0x50   : > { %1142 = vmatprep.subr.bf16.mxu0 %v2018_v34  ;;  %1215 = vmatprep.subr.bf16.mxu1 %v2020_v35  ;;  %v2024_v38 = vld [vmem:[%s2496_s7 + $0xc4] ss:$16 sps:$4 sm:$0xff]   ;;  %v2028_v40 = vld [vmem:[%s2496_s7 + $0xc0] ss:$16 sps:$4 sm:$0xff]   ;;  %v2075_v9 = vld [vmem:[%s2496_s7 + $0xc8] ss:$16 sps:$4 sm:$0xff]  }
  0x51   : > { %1143 = vmatpush1.bf16.msra.mxu0 %v2022_v36  ;;  %1216 = vmatpush1.bf16.msra.mxu1 %v2023_v37  ;;  %v2026_v39 = vld [vmem:[%s2496_s7 + $0x2c4] ss:$16 sps:$4 sm:$0xff]   ;;  %v2029_v41 = vld [vmem:[%s2496_s7 + $0x2c0] ss:$16 sps:$4 sm:$0xff]   ;;  %v2083_v12 = vld [vmem:[%s2496_s7 + $0xac] ss:$16 sps:$4 sm:$0xff]  }
  0x52   : > { %1144 = vmatprep.subr.bf16.mxu0 %v2024_v38  ;;  %1217 = vmatprep.subr.bf16.mxu1 %v2026_v39  ;;  %v2030_v42 = vld [vmem:[%s2496_s7 + $0xa4] ss:$16 sps:$4 sm:$0xff]   ;;  %v2034_v44 = vld [vmem:[%s2496_s7 + $0xa0] ss:$16 sps:$4 sm:$0xff]   ;;  %v2081_v13 = vld [vmem:[%s2496_s7 + $0xa8] ss:$16 sps:$4 sm:$0xff]  }
  0x53   : > { %v2032_v43 = vld [vmem:[%s2496_s7 + $0x2a4] ss:$16 sps:$4 sm:$0xff]   ;;  %v2035_v45 = vld [vmem:[%s2496_s7 + $0x2a0] ss:$16 sps:$4 sm:$0xff]   ;;  %v2089_v17 = vld [vmem:[%s2496_s7 + $0x8c] ss:$16 sps:$4 sm:$0xff]  }
  0x54   : > { %v2036_v46 = vld [vmem:[%s2496_s7 + $0x84] ss:$16 sps:$4 sm:$0xff]   ;;  %v2040_v48 = vld [vmem:[%s2496_s7 + $0x80] ss:$16 sps:$4 sm:$0xff]   ;;  %v2087_v18 = vld [vmem:[%s2496_s7 + $0x88] ss:$16 sps:$4 sm:$0xff]  }
  0x55   : > { %1145 = vmatpush1.bf16.msra.mxu0 %v2028_v40  ;;  %1218 = vmatpush1.bf16.msra.mxu1 %v2029_v41  ;;  %v2038_v47 = vld [vmem:[%s2496_s7 + $0x284] ss:$16 sps:$4 sm:$0xff]   ;;  %v2041_v49 = vld [vmem:[%s2496_s7 + $0x280] ss:$16 sps:$4 sm:$0xff]   ;;  %v2095_v21 = vld [vmem:[%s2496_s7 + $0x6c] ss:$16 sps:$4 sm:$0xff]  }
  0x56   : > { %1146 = vmatprep.subr.bf16.mxu0 %v2030_v42  ;;  %1219 = vmatprep.subr.bf16.mxu1 %v2032_v43  ;;  %v2042_v50 = vld [vmem:[%s2496_s7 + $0x64] ss:$16 sps:$4 sm:$0xff]   ;;  %v2046_v52 = vld [vmem:[%s2496_s7 + $0x60] ss:$16 sps:$4 sm:$0xff]   ;;  %v2093_v22 = vld [vmem:[%s2496_s7 + $0x68] ss:$16 sps:$4 sm:$0xff]  }
  0x57   : > { %v2044_v51 = vld [vmem:[%s2496_s7 + $0x264] ss:$16 sps:$4 sm:$0xff]   ;;  %v2047_v53 = vld [vmem:[%s2496_s7 + $0x260] ss:$16 sps:$4 sm:$0xff]   ;;  %v2101_v25 = vld [vmem:[%s2496_s7 + $0x4c] ss:$16 sps:$4 sm:$0xff]  }
  0x58   : > { %v2048_v54 = vld [vmem:[%s2496_s7 + $0x44] ss:$16 sps:$4 sm:$0xff]   ;;  %v2052_v56 = vld [vmem:[%s2496_s7 + $0x40] ss:$16 sps:$4 sm:$0xff]   ;;  %v2099_v26 = vld [vmem:[%s2496_s7 + $0x48] ss:$16 sps:$4 sm:$0xff]  }
  0x59   : > { %1147 = vmatpush1.bf16.msra.mxu0 %v2034_v44  ;;  %1220 = vmatpush1.bf16.msra.mxu1 %v2035_v45  ;;  %v2050_v55 = vld [vmem:[%s2496_s7 + $0x244] ss:$16 sps:$4 sm:$0xff]   ;;  %v2053_v57 = vld [vmem:[%s2496_s7 + $0x240] ss:$16 sps:$4 sm:$0xff]   ;;  %v2107_v30 = vld [vmem:[%s2496_s7 + $0x2c] ss:$16 sps:$4 sm:$0xff]  }
  0x5a   : > { %1148 = vmatprep.subr.bf16.mxu0 %v2036_v46  ;;  %1221 = vmatprep.subr.bf16.mxu1 %v2038_v47  ;;  %v2054_v58 = vld [vmem:[%s2496_s7 + $0x24] ss:$16 sps:$4 sm:$0xff]   ;;  %v2058_v60 = vld [vmem:[%s2496_s7 + $0x20] ss:$16 sps:$4 sm:$0xff]   ;;  %v2105_v31 = vld [vmem:[%s2496_s7 + $0x28] ss:$16 sps:$4 sm:$0xff]  }
  0x5b   : > { %v2056_v59 = vld [vmem:[%s2496_s7 + $0x224] ss:$16 sps:$4 sm:$0xff]   ;;  %v2059_v61 = vld [vmem:[%s2496_s7 + $0x220] ss:$16 sps:$4 sm:$0xff]   ;;  %v2113_v36 = vld [vmem:[%s2496_s7 + $0xc] ss:$16 sps:$4 sm:$0xff]  }
  0x5c   : > { %v2060_v62 = vld [vmem:[%s2496_s7 + $0x4] ss:$16 sps:$4 sm:$0xff]   ;;  %v2064_v0 = vld [vmem:[%s2496_s7] ss:$16 sps:$4 sm:$0xff]   ;;  %v2111_v37 = vld [vmem:[%s2496_s7 + $0x8] ss:$16 sps:$4 sm:$0xff]  }
  0x5d   : > { %1149 = vmatpush1.bf16.msra.mxu0 %v2040_v48  ;;  %1222 = vmatpush1.bf16.msra.mxu1 %v2041_v49  ;;  %v2062_v63 = vld [vmem:[%s2496_s7 + $0x204] ss:$16 sps:$4 sm:$0xff]   ;;  %v2065_v1 = vld [vmem:[%s2496_s7 + $0x200] ss:$16 sps:$4 sm:$0xff]   ;;  %v2120_v40 = vld [vmem:[%s2496_s7 + $0x1ec] ss:$16 sps:$4 sm:$0xff]  }
  0x5e   : > { %1150 = vmatprep.subr.bf16.mxu0 %v2042_v50  ;;  %1223 = vmatprep.subr.bf16.mxu1 %v2044_v51  ;;  %v2066_v2 = vld [vmem:[%s2496_s7 + $0x1e4] ss:$16 sps:$4 sm:$0xff]   ;;  %v2072_v6 = vld [vmem:[%s2496_s7 + $0x1e0] ss:$16 sps:$4 sm:$0xff]   ;;  %v2123_v41 = vld [vmem:[%s2496_s7 + $0x2ec] ss:$16 sps:$4 sm:$0xff]  }
  0x5f   : > { %v2536_v4 = vld [vmem:[%s2863_s0 + $0x8] ss:$12 sps:$4 sm:$0xff]   ;;  %v2078_v10 = vld [vmem:[%s2496_s7 + $0x1c0] ss:$16 sps:$4 sm:$0xff]   ;;  %v2572_v28 = vld [vmem:[%s2863_s0 + $0x38] ss:$12 sps:$4 sm:$0xff]  }
  0x60   : > { %v2073_v7 = vld [vmem:[%s2496_s7 + $0x1c4] ss:$16 sps:$4 sm:$0xff]   ;;  %v2084_v14 = vld [vmem:[%s2496_s7 + $0x1a0] ss:$16 sps:$4 sm:$0xff]   ;;  %v2118_v43 = vld [vmem:[%s2496_s7 + $0x1e8] ss:$16 sps:$4 sm:$0xff]  }
  0x61   : > { %1151 = vmatpush1.bf16.msra.mxu0 %v2046_v52  ;;  %1224 = vmatpush1.bf16.msra.mxu1 %v2047_v53  ;;  %v2079_v11 = vld [vmem:[%s2496_s7 + $0x1a4] ss:$16 sps:$4 sm:$0xff]   ;;  %v2553_v15 = vld [vmem:[%s2863_s0 + $0x20] ss:$12 sps:$4 sm:$0xff]   ;;  %v2587_v39 = vld [vmem:[%s2863_s0 + $0x50] ss:$12 sps:$4 sm:$0xff]  }
  0x62   : > { %1152 = vmatprep.subr.bf16.mxu0 %v2048_v54  ;;  %1225 = vmatprep.subr.bf16.mxu1 %v2050_v55  ;;  %v2085_v16 = vld [vmem:[%s2496_s7 + $0x184] ss:$16 sps:$4 sm:$0xff]   ;;  %v2090_v19 = vld [vmem:[%s2496_s7 + $0x180] ss:$16 sps:$4 sm:$0xff]   ;;  %v2121_v44 = vld [vmem:[%s2496_s7 + $0x2e8] ss:$16 sps:$4 sm:$0xff]  }
  0x63   : > { %v2091_v20 = vld [vmem:[%s2496_s7 + $0x164] ss:$16 sps:$4 sm:$0xff]   ;;  %v2096_v23 = vld [vmem:[%s2496_s7 + $0x160] ss:$16 sps:$4 sm:$0xff]   ;;  %v2127_v45 = vld [vmem:[%s2496_s7 + $0x1cc] ss:$16 sps:$4 sm:$0xff]  }
  0x64   : > { %v2097_v24 = vld [vmem:[%s2496_s7 + $0x144] ss:$16 sps:$4 sm:$0xff]   ;;  %v2102_v27 = vld [vmem:[%s2496_s7 + $0x140] ss:$16 sps:$4 sm:$0xff]   ;;  %v2130_v46 = vld [vmem:[%s2496_s7 + $0x2cc] ss:$16 sps:$4 sm:$0xff]  }
  0x65   : > { %1153 = vmatpush1.bf16.msra.mxu0 %v2052_v56  ;;  %1226 = vmatpush1.bf16.msra.mxu1 %v2053_v57  ;;  %v2103_v29 = vld [vmem:[%s2496_s7 + $0x124] ss:$16 sps:$4 sm:$0xff]   ;;  %v2108_v34 = vld [vmem:[%s2496_s7 + $0x120] ss:$16 sps:$4 sm:$0xff]   ;;  %v2605_v47 = vld [vmem:[%s2863_s0 + $0x1c] ss:$12 sps:$4 sm:$0xff]  }
  0x66   : > { %1154 = vmatprep.subr.bf16.mxu0 %v2054_v58  ;;  %1227 = vmatprep.subr.bf16.mxu1 %v2056_v59  ;;  %v2109_v35 = vld [vmem:[%s2496_s7 + $0x104] ss:$16 sps:$4 sm:$0xff]   ;;  %v2114_v38 = vld [vmem:[%s2496_s7 + $0x100] ss:$16 sps:$4 sm:$0xff]   ;;  %v2125_v48 = vld [vmem:[%s2496_s7 + $0x1c8] ss:$16 sps:$4 sm:$0xff]  }
  0x67   : > { %v2594_v42 = vld [vmem:[%s2863_s0] ss:$12 sps:$4 sm:$0xff]   ;;  %v1535_v52 = vld [vmem:[%s2865_s2 + $0x10] sm:$0xff]  ;;  %v2622_v53 = vld [vmem:[%s2863_s0 + $0x18] ss:$12 sps:$4 sm:$0xff]  }
  0x68   : > { %v2136_v49 = vld [vmem:[%s2496_s7 + $0x1ac] ss:$16 sps:$4 sm:$0xff]   ;;  %v1533_v51 = vld [vmem:[%s2865_s2] sm:$0xff]  ;;  %1553 = vperm.xlu1 %2017, %v1535_v52   ;;  %v2134_v55 = vld [vmem:[%s2496_s7 + $0x1a8] ss:$16 sps:$4 sm:$0xff]  }
  0x69   : > { %1155 = vmatpush1.bf16.msra.mxu0 %v2058_v60  ;;  %1228 = vmatpush1.bf16.msra.mxu1 %v2059_v61  ;;  %v2139_v50 = vld [vmem:[%s2496_s7 + $0x2ac] ss:$16 sps:$4 sm:$0xff]   ;;  %v2137_v56 = vld [vmem:[%s2496_s7 + $0x2a8] ss:$16 sps:$4 sm:$0xff]   ;;  %v2637_v60 = vld [vmem:[%s2863_s0 + $0x34] ss:$12 sps:$4 sm:$0xff]  }
  0x6a   : > { %1156 = vmatprep.subr.bf16.mxu0 %v2060_v62  ;;  %1229 = vmatprep.subr.bf16.mxu1 %v2062_v63  ;;  %v1534_v54 = vld [vmem:[%s2865_s2 + $0x8] sm:$0xff]  ;;  %v1536_v57 = vld [vmem:[%s2865_s2 + $0x18] sm:$0xff]  ;;  %v1537_v61 = vld [vmem:[%s2865_s2 + $0x20] sm:$0xff] }
  0x6b   : > { %1543 = vperm.xlu0 %2016, %v1533_v51   ;;  %v2143_v58 = vld [vmem:[%s2496_s7 + $0x18c] ss:$16 sps:$4 sm:$0xff]   ;;  %v2141_v62 = vld [vmem:[%s2496_s7 + $0x188] ss:$16 sps:$4 sm:$0xff]  }
  0x6c   : > { %v2146_v59 = vld [vmem:[%s2496_s7 + $0x28c] ss:$16 sps:$4 sm:$0xff]   ;;  %1558 = vperm.xlu1 %2017, %v1536_v57   ;;  %v2144_v63 = vld [vmem:[%s2496_s7 + $0x288] ss:$16 sps:$4 sm:$0xff]  }
  0x6d   : > { %1157 = vmatpush1.bf16.msra.mxu0 %v2064_v0  ;;  %1230 = vmatpush1.bf16.msra.mxu1 %v2065_v1  ;;  %v1538_v0 = vld [vmem:[%s2865_s2 + $0x28] sm:$0xff] }
  0x6e   : > { %1158 = vmatprep.subr.bf16.mxu0 %v2066_v2  ;;  %1288 = vmatprep.subr.bf16.mxu1 %v2071_v3  ;;  %v2152_v1 = vld [vmem:[%s2496_s7 + $0x16c] ss:$16 sps:$4 sm:$0xff]  }
  0x6f   : > { %1548 = vperm.xlu0 %2016, %v1534_v54   ;;  %v2155_v2 = vld [vmem:[%s2496_s7 + $0x26c] ss:$16 sps:$4 sm:$0xff]  }
  0x70   : > { %1248 = vmatmul.mubr.bf16.vlgmr.msra.gmra.mxu1 %v2536_v4  ;;  %v2149_v3 = vld [vmem:[%s2863_s0 + $0x30] ss:$12 sps:$4 sm:$0xff]   ;;  %1568 = vperm.xlu1 %2017, %v1538_v0  }
  0x71   : > { %1159 = vmatpush2.bf16.msra.mxu0 %v2072_v6  ;;  %1289 = vmatpush1.bf16.msra.mxu1 %v2069_v5  ;;  %v1539_v5 = vld [vmem:[%s2865_s2 + $0x30] sm:$0xff]  ;;  %v2150_v6 = vld [vmem:[%s2496_s7 + $0x168] ss:$16 sps:$4 sm:$0xff]  }
  0x72   : > { %1160 = vmatprep.subr.bf16.mxu0 %v2073_v7  ;;  %1290 = vmatprep.subr.bf16.mxu1 %v2077_v8  ;;  %v2153_v7 = vld [vmem:[%s2496_s7 + $0x268] ss:$16 sps:$4 sm:$0xff]  }
  0x73   : > { %1257 = vmatprep.mubr.bf16.mxu1 %v2218_v32  ;;  %1563 = vperm.xlu0 %2016, %v1537_v61   ;;  %v1540_v8 = vld [vmem:[%s2865_s2 + $0x38] sm:$0xff] }
  0x74   : > { %1578 = vperm.xlu1 %2017, %v1540_v8  }
  0x75   : > { %1161 = vmatpush2.bf16.msra.mxu0 %v2078_v10  ;;  %1291 = vmatpush1.bf16.msra.mxu1 %v2075_v9  ;;  %v2159_v9 = vld [vmem:[%s2496_s7 + $0x14c] ss:$16 sps:$4 sm:$0xff]  }
  0x76   : > { %1162 = vmatprep.subr.bf16.mxu0 %v2079_v11  ;;  %1292 = vmatprep.subr.bf16.mxu1 %v2083_v12  ;;  %v2162_v10 = vld [vmem:[%s2496_s7 + $0x24c] ss:$16 sps:$4 sm:$0xff]   ;;  %v2157_v12 = vld [vmem:[%s2496_s7 + $0x148] ss:$16 sps:$4 sm:$0xff]  }
  0x77   : > { %v2163_v11 = vld [vmem:[%s2863_s0 + $0x4c] ss:$12 sps:$4 sm:$0xff]   ;;  %1573 = vperm.xlu0 %2016, %v1539_v5  }
  0x78   : > { %1258 = vmatmul.mubr.bf16.gmra.mxu1 %v2553_v15 }
  0x79   : > { %1163 = vmatpush2.bf16.msra.mxu0 %v2084_v14  ;;  %1293 = vmatpush1.bf16.msra.mxu1 %v2081_v13  ;;  %v2160_v13 = vld [vmem:[%s2496_s7 + $0x248] ss:$16 sps:$4 sm:$0xff]   ;;  %v2168_v14 = vld [vmem:[%s2496_s7 + $0x12c] ss:$16 sps:$4 sm:$0xff]  }
  0x7a   : > { %1164 = vmatprep.subr.bf16.mxu0 %v2085_v16  ;;  %1294 = vmatprep.subr.bf16.mxu1 %v2089_v17  ;;  %v2171_v16 = vld [vmem:[%s2496_s7 + $0x22c] ss:$16 sps:$4 sm:$0xff]   ;;  %v2165_v17 = vld [vmem:[%s2863_s0 + $0x48] ss:$12 sps:$4 sm:$0xff]  }
  0x7b   : > { %1267 = vmatprep.mubr.bf16.mxu1 %v2218_v32 }
  0x7d   : > { %1165 = vmatpush2.bf16.msra.mxu0 %v2090_v19  ;;  %1295 = vmatpush1.bf16.msra.mxu1 %v2087_v18  ;;  %v2166_v18 = vld [vmem:[%s2496_s7 + $0x128] ss:$16 sps:$4 sm:$0xff]  }
  0x7e   : > { %1166 = vmatprep.subr.bf16.mxu0 %v2091_v20  ;;  %1296 = vmatprep.subr.bf16.mxu1 %v2095_v21  ;;  %v2169_v19 = vld [vmem:[%s2496_s7 + $0x228] ss:$16 sps:$4 sm:$0xff]   ;;  %v2174_v20 = vld [vmem:[%s2496_s7 + $0x10c] ss:$16 sps:$4 sm:$0xff]  }
  0x7f   : > { %v2177_v21 = vld [vmem:[%s2496_s7 + $0x20c] ss:$16 sps:$4 sm:$0xff]  }
  0x80   : > { %1268 = vmatmul.mubr.bf16.gmra.mxu1 %v2572_v28 }
  0x81   : > { %1167 = vmatpush2.bf16.msra.mxu0 %v2096_v23  ;;  %1297 = vmatpush1.bf16.msra.mxu1 %v2093_v22  ;;  %v2172_v22 = vld [vmem:[%s2496_s7 + $0x108] ss:$16 sps:$4 sm:$0xff]  }
  0x82   : > { %1168 = vmatprep.subr.bf16.mxu0 %v2097_v24  ;;  %1298 = vmatprep.subr.bf16.mxu1 %v2101_v25  ;;  %v2175_v23 = vld [vmem:[%s2496_s7 + $0x208] ss:$16 sps:$4 sm:$0xff]  }
  0x83   : > { %1277 = vmatprep.mubr.bf16.mxu1 %v2218_v32 }
  0x85   : > { %1169 = vmatpush2.bf16.msra.mxu0 %v2102_v27  ;;  %1299 = vmatpush1.bf16.msra.mxu1 %v2099_v26 }
  0x86   : > { %1170 = vmatprep.subr.bf16.mxu0 %v2103_v29  ;;  %1300 = vmatprep.subr.bf16.mxu1 %v2107_v30 }
  0x88   : > { %1278 = vmatmul.mubr.bf16.gmra.mxu1 %v2587_v39 }
  0x89   : > { %1171 = vmatpush2.bf16.msra.mxu0 %v2108_v34  ;;  %1301 = vmatpush1.bf16.msra.mxu1 %v2105_v31 }
  0x8a   : > { %1172 = vmatprep.subr.bf16.mxu0 %v2109_v35  ;;  %1302 = vmatprep.subr.bf16.mxu1 %v2113_v36 }
  0x8b   : > { %1320 = vmatprep.mubr.bf16.mxu1 %v2493_v33  ;;  %v2128_v33 = vld [vmem:[%s2496_s7 + $0x2c8] ss:$16 sps:$4 sm:$0xff]   ;;  %s1857_s7 = sshll.u32 %s381_s30, 8 }
  0x8c   : > { %s2702_s18 = scalar_lea.vmem [#allocation4], %s1857_s7 }
  0x8d   : > { %1173 = vmatpush2.bf16.msra.mxu0 %v2114_v38  ;;  %1303 = vmatpush1.bf16.msra.mxu1 %v2111_v37 }
  0x8e   : > { %1304 = vmatprep.subr.bf16.mxu1 %v2120_v40  ;;  %1361 = vmatprep.subr.bf16.mxu0 %v2123_v41 }
  0x90   : > { %1175 = vmatmul.mubr.bf16.vlgmr.msra.gmra.mxu0 %v2594_v42 }
  0x91   : > { %1305 = vmatpush2.bf16.msra.mxu1 %v2118_v43  ;;  %1362 = vmatpush1.bf16.msra.mxu0 %v2121_v44 }
  0x92   : > { %1306 = vmatprep.subr.bf16.mxu1 %v2127_v45  ;;  %1363 = vmatprep.subr.bf16.mxu0 %v2130_v46 }
  0x93   : > { %1184 = vmatprep.mubr.bf16.mxu0 %v2605_v47 }
  0x95   : > { %1307 = vmatpush2.bf16.msra.mxu1 %v2125_v48  ;;  %1364 = vmatpush1.bf16.msra.mxu0 %v2128_v33 }
  0x96   : > { %1308 = vmatprep.subr.bf16.mxu1 %v2136_v49  ;;  %1365 = vmatprep.subr.bf16.mxu0 %v2139_v50 }
  0x98   : > { %1185 = vmatmul.mubr.bf16.gmra.mxu0 %v2622_v53 }
  0x99   : > { %1309 = vmatpush2.bf16.msra.mxu1 %v2134_v55  ;;  %1366 = vmatpush1.bf16.msra.mxu0 %v2137_v56 }
  0x9a   : > { %1310 = vmatprep.subr.bf16.mxu1 %v2143_v58  ;;  %1367 = vmatprep.subr.bf16.mxu0 %v2146_v59 }
  0x9b   : > { %1194 = vmatprep.mubr.bf16.mxu0 %v2637_v60 }
  0x9d   : > { %1311 = vmatpush2.bf16.msra.mxu1 %v2141_v62  ;;  %1368 = vmatpush1.bf16.msra.mxu0 %v2144_v63 }
  0x9e   : > { %1312 = vmatprep.subr.bf16.mxu1 %v2152_v1  ;;  %1369 = vmatprep.subr.bf16.mxu0 %v2155_v2 }
  0xa0   : > { %1195 = vmatmul.mubr.bf16.gmra.mxu0 %v2149_v3 }
  0xa1   : > { %1313 = vmatpush2.bf16.msra.mxu1 %v2150_v6  ;;  %1370 = vmatpush1.bf16.msra.mxu0 %v2153_v7 }
  0xa2   : > { %1314 = vmatprep.subr.bf16.mxu1 %v2159_v9  ;;  %1371 = vmatprep.subr.bf16.mxu0 %v2162_v10 }
  0xa3   : > { %1204 = vmatprep.mubr.bf16.mxu0 %v2163_v11 }
  0xa5   : > { %1315 = vmatpush2.bf16.msra.mxu1 %v2157_v12  ;;  %1372 = vmatpush1.bf16.msra.mxu0 %v2160_v13 }
  0xa6   : > { %1316 = vmatprep.subr.bf16.mxu1 %v2168_v14  ;;  %1373 = vmatprep.subr.bf16.mxu0 %v2171_v16 }
  0xa8   : > { %1205 = vmatmul.mubr.bf16.gmra.mxu0 %v2165_v17 }
  0xa9   : > { %1317 = vmatpush2.bf16.msra.mxu1 %v2166_v18  ;;  %1374 = vmatpush1.bf16.msra.mxu0 %v2169_v19 }
  0xaa   : > { %1318 = vmatprep.subr.bf16.mxu1 %v2174_v20  ;;  %1375 = vmatprep.subr.bf16.mxu0 %v2177_v21 }
  0xab   : > { %1393 = vmatprep.mubr.bf16.mxu0 %v2218_v32 }
  0xad   : > { %1319 = vmatpush2.bf16.msra.mxu1 %v2172_v22  ;;  %1376 = vmatpush1.bf16.msra.mxu0 %v2175_v23 }
  0xb0   : > { %1321 = vmatmul.mubr.bf16.vlgmr.msra.gmra.mxu1 %v2594_v42  ;;  %1394 = vmatmul.mubr.bf16.vlgmr.msra.gmra.mxu0 %v2536_v4 }
  0xb1   : > { %1330 = vmatprep.mubr.bf16.mxu1 %v2605_v47  ;;  %1403 = vmatprep.mubr.bf16.mxu0 %v2218_v32 }
  0xb8   : > { %1331 = vmatmul.mubr.bf16.gmra.mxu1 %v2622_v53  ;;  %1404 = vmatmul.mubr.bf16.gmra.mxu0 %v2553_v15 }
  0xb9   : > { %1340 = vmatprep.mubr.bf16.mxu1 %v2637_v60  ;;  %1413 = vmatprep.mubr.bf16.mxu0 %v2218_v32 }
  0xc0   : > { %1341 = vmatmul.mubr.bf16.gmra.mxu1 %v2149_v3  ;;  %1414 = vmatmul.mubr.bf16.gmra.mxu0 %v2572_v28 }
  0xc1   : > { %1350 = vmatprep.mubr.bf16.mxu1 %v2163_v11  ;;  %1423 = vmatprep.mubr.bf16.mxu0 %v2218_v32 }
  0xc8   : > { %1351 = vmatmul.mubr.bf16.gmra.mxu1 %v2165_v17  ;;  %1424 = vmatmul.mubr.bf16.gmra.mxu0 %v2587_v39 }
  0xe3   : > { %v2700_v43 = vpop.permute.xlu1 %1553 }
  0xe6   : > { %v2692_v30 = vpop.permute.xlu0 %1543 }
  0xe7   : > { %v2710_v58 = vpop.permute.xlu1 %1558 }
  0xea   : > { %v2697_v39 = vpop.permute.xlu0 %1548 }
  0xeb   : > { %v2722_v16 = vpop.permute.xlu1 %1568 }
  0xee   : > { %v2716_v5 = vpop.permute.xlu0 %1563 }
 0x130   : > { %v1249_v4 = vpop.f32.mrf.mxu1 }
 0x132   : > { %v1251_v24 = vpop.f32.mrf.mxu1 }
 0x134   : > { %v1253_v25 = vpop.f32.mrf.mxu1 }
 0x136   : > { %v1255_v26 = vpop.f32.mrf.mxu1 }
 0x138   : > { %v1259_v27 = vpop.f32.mrf.mxu1 }
 0x13a   : > { %v1261_v15 = vpop.f32.mrf.mxu1 }
 0x13c   : > { %v1263_v29 = vpop.f32.mrf.mxu1 }
 0x13e   : > { %v1265_v31 = vpop.f32.mrf.mxu1 }
 0x140   : > { %v1269_v36 = vpop.f32.mrf.mxu1 }
 0x142   : > { %v1271_v45 = vpop.f32.mrf.mxu1 }
 0x144   : > { %v1273_v53 = vpop.f32.mrf.mxu1 }
 0x146   : > { %v1275_v63 = vpop.f32.mrf.mxu1 }
 0x148   : > { %v1279_v10 = vpop.f32.mrf.mxu1 }
 0x14a   : > { %v1281_v20 = vpop.f32.mrf.mxu1 }
 0x150   : > { %v1176_v34 = vpop.f32.mrf.mxu0 }
 0x151   : > { %v1250_v35 = vadd.f32 %v1249_v4, %v1176_v34 }
 0x152   : > { %v1178_v28 = vpop.f32.mrf.mxu0 }
 0x153   : > { %v1581_v32 = vadd.f32 %v2692_v30, %v1250_v35  ;;  %v1252_v37 = vadd.f32 %v1251_v24, %v1178_v28 }
 0x154   : > { %v1180_v38 = vpop.f32.mrf.mxu0 }
 0x155   : > { %v1613_v40 = vmax.f32 %v1581_v32, 0.0  ;;  %v1582_v41 = vadd.f32 %v2692_v30, %v1252_v37  ;;  %v1254_v42 = vadd.f32 %v1253_v25, %v1180_v38  ;;  %v2728_v25 = vpop.permute.xlu0 %1573  ;;  %v2734_v32 = vpop.permute.xlu1 %1578 }
 0x156   : > { %v1182_v44 = vpop.f32.mrf.mxu0 }
 0x157   : > { %1645 = vst [vmem:[%s2702_s18] sm:$0xff] %v1613_v40  ;;  %v1614_v46 = vmax.f32 %v1582_v41, 0.0  ;;  %v1585_v47 = vadd.f32 %v2697_v39, %v1254_v42  ;;  %v1256_v48 = vadd.f32 %v1255_v26, %v1182_v44 }
 0x158   : > { %v1186_v33 = vpop.f32.mrf.mxu0 }
 0x159   : > { %1646 = vst [vmem:[%s2702_s18 + $0x8] sm:$0xff] %v1614_v46  ;;  %v1617_v49 = vmax.f32 %v1585_v47, 0.0  ;;  %v1586_v50 = vadd.f32 %v2697_v39, %v1256_v48  ;;  %v1260_v51 = vadd.f32 %v1259_v27, %v1186_v33 }
 0x15a   : > { %v1188_v52 = vpop.f32.mrf.mxu0 }
 0x15b   : > { %1649 = vst [vmem:[%s2702_s18 + $0x20] sm:$0xff] %v1617_v49  ;;  %v1618_v54 = vmax.f32 %v1586_v50, 0.0  ;;  %v1589_v55 = vadd.f32 %v2700_v43, %v1260_v51  ;;  %v1262_v56 = vadd.f32 %v1261_v15, %v1188_v52 }
 0x15c   : > { %v1190_v57 = vpop.f32.mrf.mxu0 }
 0x15d   : > { %1650 = vst [vmem:[%s2702_s18 + $0x28] sm:$0xff] %v1618_v54  ;;  %v1621_v59 = vmax.f32 %v1589_v55, 0.0  ;;  %v1590_v60 = vadd.f32 %v2700_v43, %v1262_v56  ;;  %v1264_v61 = vadd.f32 %v1263_v29, %v1190_v57  ;;  %v1283_v29 = vpop.f32.mrf.mxu1 }
 0x15e   : > { %v1192_v62 = vpop.f32.mrf.mxu0 }
 0x15f   : > { %1653 = vst [vmem:[%s2702_s18 + $0x40] sm:$0xff] %v1621_v59  ;;  %v1622_v0 = vmax.f32 %v1590_v60, 0.0  ;;  %v1593_v1 = vadd.f32 %v2710_v58, %v1264_v61  ;;  %v1266_v2 = vadd.f32 %v1265_v31, %v1192_v62  ;;  %v1285_v41 = vpop.f32.mrf.mxu1 }
 0x160   : > { %v1196_v3 = vpop.f32.mrf.mxu0 }
 0x161   : > { %1654 = vst [vmem:[%s2702_s18 + $0x48] sm:$0xff] %v1622_v0  ;;  %v1625_v6 = vmax.f32 %v1593_v1, 0.0  ;;  %v1594_v7 = vadd.f32 %v2710_v58, %v1266_v2  ;;  %v1270_v8 = vadd.f32 %v1269_v36, %v1196_v3 }
 0x162   : > { %v1198_v9 = vpop.f32.mrf.mxu0 }
 0x163   : > { %1657 = vst [vmem:[%s2702_s18 + $0x60] sm:$0xff] %v1625_v6  ;;  %v1626_v11 = vmax.f32 %v1594_v7, 0.0  ;;  %v1272_v12 = vadd.f32 %v1271_v45, %v1198_v9  ;;  %v1597_v13 = vadd.f32 %v2716_v5, %v1270_v8 }
 0x164   : > { %v1200_v14 = vpop.f32.mrf.mxu0 }
 0x165   : > { %1658 = vst [vmem:[%s2702_s18 + $0x68] sm:$0xff] %v1626_v11  ;;  %v1598_v17 = vadd.f32 %v2716_v5, %v1272_v12  ;;  %v1629_v18 = vmax.f32 %v1597_v13, 0.0  ;;  %v1274_v19 = vadd.f32 %v1273_v53, %v1200_v14 }
 0x166   : > { %v1202_v21 = vpop.f32.mrf.mxu0 }
 0x167   : > { %v1630_v22 = vmax.f32 %v1598_v17, 0.0  ;;  %1661 = vst [vmem:[%s2702_s18 + $0x80] sm:$0xff] %v1629_v18  ;;  %v1601_v23 = vadd.f32 %v2722_v16, %v1274_v19  ;;  %v1276_v4 = vadd.f32 %v1275_v63, %v1202_v21 }
 0x168   : > { %v1206_v24 = vpop.f32.mrf.mxu0 }
 0x169   : > { %1662 = vst [vmem:[%s2702_s18 + $0x88] sm:$0xff] %v1630_v22  ;;  %v1633_v26 = vmax.f32 %v1601_v23, 0.0  ;;  %v1602_v27 = vadd.f32 %v2722_v16, %v1276_v4  ;;  %v1280_v15 = vadd.f32 %v1279_v10, %v1206_v24 }
 0x16a   : > { %v1208_v31 = vpop.f32.mrf.mxu0 }
 0x16b   : > { %1665 = vst [vmem:[%s2702_s18 + $0xa0] sm:$0xff] %v1633_v26  ;;  %v1634_v34 = vmax.f32 %v1602_v27, 0.0  ;;  %v1282_v35 = vadd.f32 %v1281_v20, %v1208_v31  ;;  %v1605_v28 = vadd.f32 %v2728_v25, %v1280_v15 }
 0x16c   : > { %v1210_v36 = vpop.f32.mrf.mxu0 }
 0x16d   : > { %1666 = vst [vmem:[%s2702_s18 + $0xa8] sm:$0xff] %v1634_v34  ;;  %v1606_v37 = vadd.f32 %v2728_v25, %v1282_v35  ;;  %v1637_v38 = vmax.f32 %v1605_v28, 0.0  ;;  %v1284_v40 = vadd.f32 %v1283_v29, %v1210_v36 }
 0x16e   : > { %v1212_v42 = vpop.f32.mrf.mxu0 }
 0x16f   : > { %v1638_v44 = vmax.f32 %v1606_v37, 0.0  ;;  %1669 = vst [vmem:[%s2702_s18 + $0xc0] sm:$0xff] %v1637_v38  ;;  %v1609_v45 = vadd.f32 %v2734_v32, %v1284_v40  ;;  %v1286_v46 = vadd.f32 %v1285_v41, %v1212_v42 }
 0x170   : > { %v1322_v47 = vpop.f32.mrf.mxu1  ;;  %v1395_v48 = vpop.f32.mrf.mxu0 }
 0x171   : > { %1670 = vst [vmem:[%s2702_s18 + $0xc8] sm:$0xff] %v1638_v44  ;;  %v1641_v33 = vmax.f32 %v1609_v45, 0.0  ;;  %v1610_v49 = vadd.f32 %v2734_v32, %v1286_v46  ;;  %v1396_v50 = vadd.f32 %v1395_v48, %v1322_v47 }
 0x172   : > { %v1324_v51 = vpop.f32.mrf.mxu1  ;;  %v1397_v52 = vpop.f32.mrf.mxu0 }
 0x173   : > { %1673 = vst [vmem:[%s2702_s18 + $0xe0] sm:$0xff] %v1641_v33  ;;  %v1642_v53 = vmax.f32 %v1610_v49, 0.0  ;;  %v1583_v54 = vadd.f32 %v2692_v30, %v1396_v50  ;;  %v1398_v55 = vadd.f32 %v1397_v52, %v1324_v51 }
 0x174   : > { %v1326_v56 = vpop.f32.mrf.mxu1  ;;  %v1399_v57 = vpop.f32.mrf.mxu0 }
 0x175   : > { %1674 = vst [vmem:[%s2702_s18 + $0xe8] sm:$0xff] %v1642_v53  ;;  %v1615_v59 = vmax.f32 %v1583_v54, 0.0  ;;  %v1584_v60 = vadd.f32 %v2692_v30, %v1398_v55  ;;  %v1400_v61 = vadd.f32 %v1399_v57, %v1326_v56 }
 0x176   : > { %v1328_v62 = vpop.f32.mrf.mxu1  ;;  %v1401_v63 = vpop.f32.mrf.mxu0 }
 0x177   : > { %1647 = vst [vmem:[%s2702_s18 + $0x10] sm:$0xff] %v1615_v59  ;;  %v1616_v0 = vmax.f32 %v1584_v60, 0.0  ;;  %v1587_v1 = vadd.f32 %v2697_v39, %v1400_v61  ;;  %v1402_v2 = vadd.f32 %v1401_v63, %v1328_v62 }
 0x178   : > { %v1332_v3 = vpop.f32.mrf.mxu1  ;;  %v1405_v6 = vpop.f32.mrf.mxu0 }
 0x179   : > { %1648 = vst [vmem:[%s2702_s18 + $0x18] sm:$0xff] %v1616_v0  ;;  %v1619_v7 = vmax.f32 %v1587_v1, 0.0  ;;  %v1588_v8 = vadd.f32 %v2697_v39, %v1402_v2  ;;  %v1406_v9 = vadd.f32 %v1405_v6, %v1332_v3  ;;  %v1701_v6 = vld [vmem:[%s2702_s18 + $0x8] sm:$0xff] (%p2274_p6) }
 0x17a   : > { %v1334_v10 = vpop.f32.mrf.mxu1  ;;  %v1407_v30 = vpop.f32.mrf.mxu0  ;;  %1702 = vst [vmem:[%s2785_s20 + $0x8] sm:$0xff] (%p2274_p6), %v1701_v6 }
 0x17b   : > { %1651 = vst [vmem:[%s2702_s18 + $0x30] sm:$0xff] %v1619_v7  ;;  %v1620_v11 = vmax.f32 %v1588_v8, 0.0  ;;  %v1591_v12 = vadd.f32 %v2700_v43, %v1406_v9  ;;  %v1408_v13 = vadd.f32 %v1407_v30, %v1334_v10  ;;  %v1707_v8 = vld [vmem:[%s2702_s18 + $0x20] sm:$0xff] (%p2274_p6)  ;;  %v1709_v9 = vld [vmem:[%s2702_s18 + $0x28] sm:$0xff] (%p2274_p6) }
 0x17c   : > { %v1336_v14 = vpop.f32.mrf.mxu1  ;;  %v1409_v17 = vpop.f32.mrf.mxu0  ;;  %1708 = vst [vmem:[%s2785_s20 + $0x40] sm:$0xff] (%p2274_p6), %v1707_v8  ;;  %1710 = vst [vmem:[%s2785_s20 + $0x48] sm:$0xff] (%p2274_p6), %v1709_v9 }
 0x17d   : > { %1652 = vst [vmem:[%s2702_s18 + $0x38] sm:$0xff] %v1620_v11  ;;  %v1623_v18 = vmax.f32 %v1591_v12, 0.0  ;;  %v1592_v19 = vadd.f32 %v2700_v43, %v1408_v13  ;;  %v1410_v20 = vadd.f32 %v1409_v17, %v1336_v14  ;;  %v1715_v11 = vld [vmem:[%s2702_s18 + $0x40] sm:$0xff] (%p2274_p6)  ;;  %v1717_v12 = vld [vmem:[%s2702_s18 + $0x48] sm:$0xff] (%p2274_p6) }
 0x17e   : > { %v1338_v21 = vpop.f32.mrf.mxu1  ;;  %v1411_v39 = vpop.f32.mrf.mxu0  ;;  %1716 = vst [vmem:[%s2785_s20 + $0x80] sm:$0xff] (%p2274_p6), %v1715_v11  ;;  %1718 = vst [vmem:[%s2785_s20 + $0x88] sm:$0xff] (%p2274_p6), %v1717_v12  ;;  %v1723_v17 = vld [vmem:[%s2702_s18 + $0x60] sm:$0xff] (%p2274_p6) }
 0x17f   : > { %1655 = vst [vmem:[%s2702_s18 + $0x50] sm:$0xff] %v1623_v18  ;;  %v1624_v22 = vmax.f32 %v1592_v19, 0.0  ;;  %v1595_v23 = vadd.f32 %v2710_v58, %v1410_v20  ;;  %v1412_v4 = vadd.f32 %v1411_v39, %v1338_v21  ;;  %v1725_v18 = vld [vmem:[%s2702_s18 + $0x68] sm:$0xff] (%p2274_p6)  ;;  %1724 = vst [vmem:[%s2785_s20 + $0xc0] sm:$0xff] (%p2274_p6), %v1723_v17  ;;  %v1731_v21 = vld [vmem:[%s2702_s18 + $0x80] sm:$0xff] (%p2274_p6) }
 0x180   : > { %v1342_v24 = vpop.f32.mrf.mxu1  ;;  %v1415_v26 = vpop.f32.mrf.mxu0  ;;  %v1705_v7 = vld [vmem:[%s2702_s18 + $0x18] sm:$0xff] (%p2274_p6)  ;;  %1726 = vst [vmem:[%s2785_s20 + $0xc8] sm:$0xff] (%p2274_p6), %v1725_v18  ;;  %v1733_v39 = vld [vmem:[%s2702_s18 + $0x88] sm:$0xff] (%p2274_p6)  ;;  %1732 = vst [vmem:[%s2785_s20 + $0x100] sm:$0xff] (%p2274_p6), %v1731_v21 }
 0x181   : > { %1656 = vst [vmem:[%s2702_s18 + $0x58] sm:$0xff] %v1624_v22  ;;  %v1627_v27 = vmax.f32 %v1595_v23, 0.0  ;;  %v1596_v15 = vadd.f32 %v2710_v58, %v1412_v4  ;;  %v1416_v29 = vadd.f32 %v1415_v26, %v1342_v24  ;;  %1706 = vst [vmem:[%s2785_s20 + $0x18] sm:$0xff] (%p2274_p6), %v1705_v7  ;;  %v1739_v4 = vld [vmem:[%s2702_s18 + $0xa0] sm:$0xff] (%p2274_p6)  ;;  %v1741_v24 = vld [vmem:[%s2702_s18 + $0xa8] sm:$0xff] (%p2274_p6) }
 0x182   : > { %v1344_v31 = vpop.f32.mrf.mxu1  ;;  %v1417_v43 = vpop.f32.mrf.mxu0  ;;  %v1711_v10 = vld [vmem:[%s2702_s18 + $0x30] sm:$0xff] (%p2274_p6)  ;;  %1734 = vst [vmem:[%s2785_s20 + $0x108] sm:$0xff] (%p2274_p6), %v1733_v39  ;;  %1740 = vst [vmem:[%s2785_s20 + $0x140] sm:$0xff] (%p2274_p6), %v1739_v4 }
 0x183   : > { %1659 = vst [vmem:[%s2702_s18 + $0x70] sm:$0xff] %v1627_v27  ;;  %v1628_v34 = vmax.f32 %v1596_v15, 0.0  ;;  %v1599_v35 = vadd.f32 %v2716_v5, %v1416_v29  ;;  %v1418_v28 = vadd.f32 %v1417_v43, %v1344_v31  ;;  %1712 = vst [vmem:[%s2785_s20 + $0x50] sm:$0xff] (%p2274_p6), %v1711_v10  ;;  %v1747_v15 = vld [vmem:[%s2702_s18 + $0xc0] sm:$0xff] (%p2274_p6)  ;;  %v1749_v29 = vld [vmem:[%s2702_s18 + $0xc8] sm:$0xff] (%p2274_p6) }
 0x184   : > { %v1346_v36 = vpop.f32.mrf.mxu1  ;;  %v1419_v37 = vpop.f32.mrf.mxu0  ;;  %v1713_v30 = vld [vmem:[%s2702_s18 + $0x38] sm:$0xff] (%p2274_p6)  ;;  %1742 = vst [vmem:[%s2785_s20 + $0x148] sm:$0xff] (%p2274_p6), %v1741_v24  ;;  %1748 = vst [vmem:[%s2785_s20 + $0x180] sm:$0xff] (%p2274_p6), %v1747_v15 }
 0x185   : > { %1660 = vst [vmem:[%s2702_s18 + $0x78] sm:$0xff] %v1628_v34  ;;  %v1631_v38 = vmax.f32 %v1599_v35, 0.0  ;;  %v1600_v40 = vadd.f32 %v2716_v5, %v1418_v28  ;;  %v1420_v41 = vadd.f32 %v1419_v37, %v1346_v36  ;;  %1714 = vst [vmem:[%s2785_s20 + $0x58] sm:$0xff] (%p2274_p6), %v1713_v30  ;;  %v1755_v34 = vld [vmem:[%s2702_s18 + $0xe0] sm:$0xff] (%p2274_p6)  ;;  %v1757_v35 = vld [vmem:[%s2702_s18 + $0xe8] sm:$0xff] (%p2274_p6) }
 0x186   : > { %v1348_v42 = vpop.f32.mrf.mxu1  ;;  %v1421_v58 = vpop.f32.mrf.mxu0  ;;  %v1719_v13 = vld [vmem:[%s2702_s18 + $0x50] sm:$0xff] (%p2274_p6)  ;;  %1750 = vst [vmem:[%s2785_s20 + $0x188] sm:$0xff] (%p2274_p6), %v1749_v29  ;;  %1756 = vst [vmem:[%s2785_s20 + $0x1c0] sm:$0xff] (%p2274_p6), %v1755_v34 }
 0x187   : > { %1663 = vst [vmem:[%s2702_s18 + $0x90] sm:$0xff] %v1631_v38  ;;  %v1632_v44 = vmax.f32 %v1600_v40, 0.0  ;;  %v1603_v45 = vadd.f32 %v2722_v16, %v1420_v41  ;;  %v1422_v46 = vadd.f32 %v1421_v58, %v1348_v42  ;;  %1720 = vst [vmem:[%s2785_s20 + $0x90] sm:$0xff] (%p2274_p6), %v1719_v13 }
 0x188   : > { %v1352_v47 = vpop.f32.mrf.mxu1  ;;  %v1425_v48 = vpop.f32.mrf.mxu0  ;;  %v1721_v14 = vld [vmem:[%s2702_s18 + $0x58] sm:$0xff] (%p2274_p6)  ;;  %1758 = vst [vmem:[%s2785_s20 + $0x1c8] sm:$0xff] (%p2274_p6), %v1757_v35 }
 0x189   : > { %1664 = vst [vmem:[%s2702_s18 + $0x98] sm:$0xff] %v1632_v44  ;;  %v1635_v33 = vmax.f32 %v1603_v45, 0.0  ;;  %v1604_v49 = vadd.f32 %v2722_v16, %v1422_v46  ;;  %v1426_v50 = vadd.f32 %v1425_v48, %v1352_v47  ;;  %1722 = vst [vmem:[%s2785_s20 + $0x98] sm:$0xff] (%p2274_p6), %v1721_v14 }
 0x18a   : > { %v1354_v51 = vpop.f32.mrf.mxu1  ;;  %v1427_v5 = vpop.f32.mrf.mxu0  ;;  %v1727_v19 = vld [vmem:[%s2702_s18 + $0x70] sm:$0xff] (%p2274_p6) }
 0x18b   : > { %1667 = vst [vmem:[%s2702_s18 + $0xb0] sm:$0xff] %v1635_v33  ;;  %v1636_v52 = vmax.f32 %v1604_v49, 0.0  ;;  %v1607_v53 = vadd.f32 %v2728_v25, %v1426_v50  ;;  %v1428_v54 = vadd.f32 %v1427_v5, %v1354_v51  ;;  %1728 = vst [vmem:[%s2785_s20 + $0xd0] sm:$0xff] (%p2274_p6), %v1727_v19 }
 0x18c   : > { %v1356_v55 = vpop.f32.mrf.mxu1  ;;  %v1429_v56 = vpop.f32.mrf.mxu0  ;;  %v1729_v20 = vld [vmem:[%s2702_s18 + $0x78] sm:$0xff] (%p2274_p6) }
 0x18d   : > { %1668 = vst [vmem:[%s2702_s18 + $0xb8] sm:$0xff] %v1636_v52  ;;  %v1639_v57 = vmax.f32 %v1607_v53, 0.0  ;;  %v1608_v59 = vadd.f32 %v2728_v25, %v1428_v54  ;;  %v1430_v60 = vadd.f32 %v1429_v56, %v1356_v55  ;;  %v1699_v25 = vld [vmem:[%s2702_s18] sm:$0xff] (%p2274_p6)  ;;  %1730 = vst [vmem:[%s2785_s20 + $0xd8] sm:$0xff] (%p2274_p6), %v1729_v20 }
 0x18e   : > { %v1358_v16 = vpop.f32.mrf.mxu1  ;;  %v1431_v61 = vpop.f32.mrf.mxu0  ;;  %1700 = vst [vmem:[%s2785_s20] sm:$0xff] (%p2274_p6), %v1699_v25  ;;  %v1735_v22 = vld [vmem:[%s2702_s18 + $0x90] sm:$0xff] (%p2274_p6) }
 0x18f   : > { %1671 = vst [vmem:[%s2702_s18 + $0xd0] sm:$0xff] %v1639_v57  ;;  %v1640_v62 = vmax.f32 %v1608_v59, 0.0  ;;  %v1611_v63 = vadd.f32 %v2734_v32, %v1430_v60  ;;  %v1432_v0 = vadd.f32 %v1431_v61, %v1358_v16  ;;  %1736 = vst [vmem:[%s2785_s20 + $0x110] sm:$0xff] (%p2274_p6), %v1735_v22 }
 0x190   : > { %v1737_v23 = vld [vmem:[%s2702_s18 + $0x98] sm:$0xff] (%p2274_p6) }
 0x191   : > { %1672 = vst [vmem:[%s2702_s18 + $0xd8] sm:$0xff] %v1640_v62  ;;  %v1643_v1 = vmax.f32 %v1611_v63, 0.0  ;;  %v1612_v2 = vadd.f32 %v2734_v32, %v1432_v0  ;;  %1683 = sbr.rel (!%p2274_p6) target bundleno = 414 (0x19e), region = 67  ;;  %v1703_v32 = vld [vmem:[%s2702_s18 + $0x10] sm:$0xff] (%p2274_p6)  ;;  %1738 = vst [vmem:[%s2785_s20 + $0x118] sm:$0xff] (%p2274_p6), %v1737_v23 }
 0x192   : > { %1704 = vst [vmem:[%s2785_s20 + $0x10] sm:$0xff] (%p2274_p6), %v1703_v32  ;;  %v1743_v26 = vld [vmem:[%s2702_s18 + $0xb0] sm:$0xff] (%p2274_p6) }
 0x193   : > { %1675 = vst [vmem:[%s2702_s18 + $0xf0] sm:$0xff] %v1643_v1  ;;  %v1644_v3 = vmax.f32 %v1612_v2, 0.0  ;;  %1744 = vst [vmem:[%s2785_s20 + $0x150] sm:$0xff] (%p2274_p6), %v1743_v26 }
 0x194   : > { %v1745_v27 = vld [vmem:[%s2702_s18 + $0xb8] sm:$0xff] (%p2274_p6) }
 0x195   : > { %1676 = vst [vmem:[%s2702_s18 + $0xf8] sm:$0xff] %v1644_v3  ;;  %1746 = vst [vmem:[%s2785_s20 + $0x158] sm:$0xff] (%p2274_p6), %v1745_v27 }
 0x196   : > { %v1751_v31 = vld [vmem:[%s2702_s18 + $0xd0] sm:$0xff] }
 0x197   : > { %1752 = vst [vmem:[%s2785_s20 + $0x190] sm:$0xff] %v1751_v31 }
 0x198   : > { %v1753_v43 = vld [vmem:[%s2702_s18 + $0xd8] sm:$0xff] }
 0x199   : > { %1754 = vst [vmem:[%s2785_s20 + $0x198] sm:$0xff] %v1753_v43 }
 0x19a   : > { %v1759_v28 = vld [vmem:[%s2702_s18 + $0xf0] sm:$0xff] }
 0x19b   : > { %1760 = vst [vmem:[%s2785_s20 + $0x1d0] sm:$0xff] %v1759_v28 }
 0x19c   : > { %v1761_v36 = vld [vmem:[%s2702_s18 + $0xf8] sm:$0xff] }
 0x19d   : > { %1762 = vst [vmem:[%s2785_s20 + $0x1d8] sm:$0xff] %v1761_v36 }
 0x19e PF: > { %s13_s16 = sadd.s32 1, %s2216_s16   ;;  %s2868_s12 = smov %s2204_s13 }
 0x19f   : > { %p10_p11 = scmp.ge.s32.totalorder %s13_s16, 4   ;;  %s2869_s13 = smov %s2279_s22 }
 0x1a0   : > { %s2870_s14 = smov %s2212_s15  ;;  %s2871_s15 = smov %s2873_s17 }
 0x1a1   :  { %12 = sbr.rel (!%p10_p11) target bundleno = 3 (0x3), region = 124 }

// kernel: csnet_forward.14
= control target key start
LH: loop header
LB: loop body
LE: loop exit
PB: predicated region body
PF: predicated region fallthrough
CT: control target
= control target key end

     0   :  { %s1104_s12 = smov 0   ;;  %s1106_s13 = smov 0   ;;  %s1340_s0 = inlined_call_operand.vmem [shape: bf16[32,128], index: 0, kind: input, shape index: {}]   ;;  %s1341_s1 = inlined_call_operand.vmem [shape: bf16[128,1024], index: 1, kind: input, shape index: {}]   ;;  %s1342_s2 = inlined_call_operand.vmem [shape: f32[32,1], index: 2, kind: input, shape index: {}]   ;;  %s1343_s3 = inlined_call_operand.vmem [shape: f32[32,1024], index: 3, kind: output, shape index: {}]  }
   0x1   :  { %s1108_s14 = smov 0   ;;  %s1110_s15 = smov 0  }
   0x2   :  { %s1112_s16 = smov 0  }
   0x3 LB: > { %s25_s17 = sadd.s32 1, %s1077_s15  ;;  %s898_s18 = sadd.s32 4294967295, %s1081_s16   ;;  %s1081_s16 = sphi %s1112_s16, %s13_s16   ;;  %s1077_s15 = sphi %s1110_s15, %s1348_s15   ;;  %s1073_s14 = sphi %s1108_s14, %s1347_s14   ;;  %s1069_s13 = sphi %s1106_s13, %s1346_s13   ;;  %s1065_s12 = sphi %s1104_s12, %s1345_s12  }
   0x4   : > { %p27_p0 = scmp.ge.s32.totalorder %s25_s17, 2  ;;  %p67_p1 = scmp.ne.s32.totalorder %s1069_s13, %s1065_s12 }
   0x5   : > { %p68_p2 = scmp.eq.s32.totalorder %s1081_s16, 0  ;;  %p118_p4 = scmp.eq.s32.totalorder %s898_s18, 1 }
   0x6   : > { %s1350_s17 = smov (%p27_p0, %s25_s17), 0  ;;  %s60_s20 = sadd.s32 1, %s1069_s13 }
   0x7   : > { %p69_p3 = por %p68_p2, %p67_p1  ;;  %s56_s19 = ssub.s32 %s1077_s15, %s1350_s17 }
   0x8   : > { %p58_p5 = scmp.eq.s32.totalorder %s56_s19, 0  ;;  %p1139_p6 = por %p118_p4, %p67_p1 }
   0x9   : > { %p902_p7 = scmp.ge.s32.totalorder %s1081_s16, 2 }
   0xa   : > { %s1144_s22 = scalar_select %p58_p5, %s1069_s13, %s60_s20  }
   0xb   : > { %150 = sbr.rel (%p902_p7) target bundleno = 36 (0x24), region = 24 }
  0x10   : > { %153 = sbr.rel (!%p69_p3) target bundleno = 36 (0x24), region = 28  ;;  %s155_s23 = sand.u32 (%p69_p3), 1, %s1069_s13  }
  0x11   : > { %s948_s24 = sshll.u32 (%p69_p3), %s1077_s15, 4  ;;  %s903_s25 = sshll.u32 (%p69_p3), %s155_s23, 8 }
  0x12   : > { %s1152_s28 = scalar_lea.vmem (%p69_p3), %s1341_s1, %s948_s24  ;;  %s1157_s29 = scalar_lea.vmem (%p69_p3), [#allocation3], %s903_s25 }
  0x13   : > { %v176_v0 = vld [vmem:[%s1152_s28] sm:$0xff] (%p69_p3)  ;;  %v178_v1 = vld [vmem:[%s1152_s28 + $0x8] sm:$0xff] (%p69_p3) }
  0x14   : > { %v180_v2 = vld [vmem:[%s1152_s28 + $0x20] sm:$0xff] (%p69_p3)  ;;  %177 = vst [vmem:[%s1157_s29] sm:$0xff] (%p69_p3), %v176_v0  ;;  %179 = vst [vmem:[%s1157_s29 + $0x8] sm:$0xff] (%p69_p3), %v178_v1  ;;  %v182_v3 = vld [vmem:[%s1152_s28 + $0x28] sm:$0xff] (%p69_p3) }
  0x15   : > { %181 = vst [vmem:[%s1157_s29 + $0x10] sm:$0xff] %v180_v2  ;;  %v184_v4 = vld [vmem:[%s1152_s28 + $0x40] sm:$0xff]  ;;  %v186_v5 = vld [vmem:[%s1152_s28 + $0x48] sm:$0xff]  ;;  %183 = vst [vmem:[%s1157_s29 + $0x18] sm:$0xff] %v182_v3 }
  0x16   : > { %185 = vst [vmem:[%s1157_s29 + $0x20] sm:$0xff] %v184_v4  ;;  %187 = vst [vmem:[%s1157_s29 + $0x28] sm:$0xff] %v186_v5  ;;  %v188_v6 = vld [vmem:[%s1152_s28 + $0x60] sm:$0xff]  ;;  %v190_v7 = vld [vmem:[%s1152_s28 + $0x68] sm:$0xff] }
  0x17   : > { %v192_v8 = vld [vmem:[%s1152_s28 + $0x80] sm:$0xff]  ;;  %189 = vst [vmem:[%s1157_s29 + $0x30] sm:$0xff] %v188_v6  ;;  %191 = vst [vmem:[%s1157_s29 + $0x38] sm:$0xff] %v190_v7  ;;  %v194_v9 = vld [vmem:[%s1152_s28 + $0x88] sm:$0xff] }
  0x18   : > { %193 = vst [vmem:[%s1157_s29 + $0x40] sm:$0xff] %v192_v8  ;;  %v196_v10 = vld [vmem:[%s1152_s28 + $0xa0] sm:$0xff]  ;;  %v198_v11 = vld [vmem:[%s1152_s28 + $0xa8] sm:$0xff]  ;;  %195 = vst [vmem:[%s1157_s29 + $0x48] sm:$0xff] %v194_v9 }
  0x19   : > { %197 = vst [vmem:[%s1157_s29 + $0x50] sm:$0xff] %v196_v10  ;;  %199 = vst [vmem:[%s1157_s29 + $0x58] sm:$0xff] %v198_v11  ;;  %v200_v12 = vld [vmem:[%s1152_s28 + $0xc0] sm:$0xff]  ;;  %v202_v13 = vld [vmem:[%s1152_s28 + $0xc8] sm:$0xff] }
  0x1a   : > { %v204_v14 = vld [vmem:[%s1152_s28 + $0xe0] sm:$0xff]  ;;  %201 = vst [vmem:[%s1157_s29 + $0x60] sm:$0xff] %v200_v12  ;;  %203 = vst [vmem:[%s1157_s29 + $0x68] sm:$0xff] %v202_v13  ;;  %v206_v15 = vld [vmem:[%s1152_s28 + $0xe8] sm:$0xff] }
  0x1b   : > { %205 = vst [vmem:[%s1157_s29 + $0x70] sm:$0xff] %v204_v14  ;;  %v208_v16 = vld [vmem:[%s1152_s28 + $0x100] sm:$0xff]  ;;  %v210_v17 = vld [vmem:[%s1152_s28 + $0x108] sm:$0xff]  ;;  %207 = vst [vmem:[%s1157_s29 + $0x78] sm:$0xff] %v206_v15 }
  0x1c   : > { %209 = vst [vmem:[%s1157_s29 + $0x80] sm:$0xff] %v208_v16  ;;  %211 = vst [vmem:[%s1157_s29 + $0x88] sm:$0xff] %v210_v17  ;;  %v212_v18 = vld [vmem:[%s1152_s28 + $0x120] sm:$0xff]  ;;  %v214_v19 = vld [vmem:[%s1152_s28 + $0x128] sm:$0xff] }
  0x1d   : > { %v216_v20 = vld [vmem:[%s1152_s28 + $0x140] sm:$0xff]  ;;  %213 = vst [vmem:[%s1157_s29 + $0x90] sm:$0xff] %v212_v18  ;;  %215 = vst [vmem:[%s1157_s29 + $0x98] sm:$0xff] %v214_v19  ;;  %v218_v21 = vld [vmem:[%s1152_s28 + $0x148] sm:$0xff] }
  0x1e   : > { %217 = vst [vmem:[%s1157_s29 + $0xa0] sm:$0xff] %v216_v20  ;;  %v220_v22 = vld [vmem:[%s1152_s28 + $0x160] sm:$0xff]  ;;  %v222_v23 = vld [vmem:[%s1152_s28 + $0x168] sm:$0xff]  ;;  %219 = vst [vmem:[%s1157_s29 + $0xa8] sm:$0xff] %v218_v21 }
  0x1f   : > { %221 = vst [vmem:[%s1157_s29 + $0xb0] sm:$0xff] %v220_v22  ;;  %223 = vst [vmem:[%s1157_s29 + $0xb8] sm:$0xff] %v222_v23  ;;  %v224_v24 = vld [vmem:[%s1152_s28 + $0x180] sm:$0xff]  ;;  %v226_v25 = vld [vmem:[%s1152_s28 + $0x188] sm:$0xff] }
  0x20   : > { %v228_v26 = vld [vmem:[%s1152_s28 + $0x1a0] sm:$0xff]  ;;  %225 = vst [vmem:[%s1157_s29 + $0xc0] sm:$0xff] %v224_v24  ;;  %227 = vst [vmem:[%s1157_s29 + $0xc8] sm:$0xff] %v226_v25  ;;  %v230_v27 = vld [vmem:[%s1152_s28 + $0x1a8] sm:$0xff] }
  0x21   : > { %229 = vst [vmem:[%s1157_s29 + $0xd0] sm:$0xff] %v228_v26  ;;  %v232_v28 = vld [vmem:[%s1152_s28 + $0x1c0] sm:$0xff]  ;;  %v234_v29 = vld [vmem:[%s1152_s28 + $0x1c8] sm:$0xff]  ;;  %231 = vst [vmem:[%s1157_s29 + $0xd8] sm:$0xff] %v230_v27 }
  0x22   : > { %233 = vst [vmem:[%s1157_s29 + $0xe0] sm:$0xff] %v232_v28  ;;  %235 = vst [vmem:[%s1157_s29 + $0xe8] sm:$0xff] %v234_v29  ;;  %v236_v30 = vld [vmem:[%s1152_s28 + $0x1e0] sm:$0xff]  ;;  %v238_v31 = vld [vmem:[%s1152_s28 + $0x1e8] sm:$0xff] }
  0x23   : > { %237 = vst [vmem:[%s1157_s29 + $0xf0] sm:$0xff] %v236_v30  ;;  %239 = vst [vmem:[%s1157_s29 + $0xf8] sm:$0xff] %v238_v31 }
  0x24 PF: > { %p906_p8 = scmp.ge.s32.totalorder %s1081_s16, 1  ;;  %p244_p9 = scmp.lt.s32.totalorder %s1081_s16, 3 }
  0x26   : > { %p245_p10 = pnand %p906_p8, %p244_p9 }
  0x27   : > { %s251_s30 = sand.u32 (!%p245_p10), 1, %s1065_s12  }
  0x28   : > { %248 = sbr.rel (%p245_p10) target bundleno = 301 (0x12d), region = 51  ;;  %s907_s4 = sshll.u32 (!%p245_p10), %s251_s30, 8 }
  0x29   : > { %s1232_s7 = scalar_lea.vmem (!%p245_p10), [#allocation3], %s907_s4  ;;  %s908_s26 = sshll.u32 (!%p245_p10), %s251_s30, 7 }
  0x2a   : > { %s1285_s27 = scalar_lea.vmem (!%p245_p10), [#allocation4], %s908_s26 }
  0x2d   : > { %v1083_v32 = vmov 0   ;;  %v686_v33 = vld [vmem:[%s1342_s2] sm:$0xff]  ;;  %v687_v35 = vld [vmem:[%s1342_s2 + $0x8] sm:$0xff]  ;;  %v688_v61 = vld [vmem:[%s1342_s2 + $0x10] sm:$0xff]  ;;  %s949_s12 = sshll.u32 (%p1139_p6), %s1073_s14, 5 }
  0x2e   : > { %561 = vmatprep.mubr.bf16.mxu0 %v1083_v32  ;;  %614 = vmatprep.mubr.bf16.mxu1 %v1083_v32  ;;  %v993_v34 = vld [vmem:[%s1232_s7 + $0xe4] ss:$16 sps:$4 sm:$0xff]   ;;  %v995_v36 = vld [vmem:[%s1232_s7 + $0xec] ss:$16 sps:$4 sm:$0xff]   ;;  %v997_v37 = vld [vmem:[%s1232_s7 + $0xe0] ss:$16 sps:$4 sm:$0xff]   ;;  %s767_s30 = scalar_lea.vmem (%p1139_p6), %s1343_s3, %s949_s12 }
  0x2f   : > { %991 = vset.pattern.permute.xlu0 %v1083_v32  ;;  %992 = vset.pattern.permute.xlu1 %v1083_v32  ;;  %v998_v38 = vld [vmem:[%s1232_s7 + $0xe8] ss:$16 sps:$4 sm:$0xff]   ;;  %v999_v39 = vld [vmem:[%s1232_s7 + $0xc4] ss:$16 sps:$4 sm:$0xff]   ;;  %v1001_v40 = vld [vmem:[%s1232_s7 + $0xcc] ss:$16 sps:$4 sm:$0xff]  }
  0x30   : > { %692 = vperm.xlu0 %991, %v686_v33   ;;  %529 = vmatprep.subr.bf16.mxu0 %v993_v34  ;;  %v1003_v41 = vld [vmem:[%s1232_s7 + $0xc0] ss:$16 sps:$4 sm:$0xff]   ;;  %v1004_v42 = vld [vmem:[%s1232_s7 + $0xc8] ss:$16 sps:$4 sm:$0xff]   ;;  %v1005_v43 = vld [vmem:[%s1232_s7 + $0xa4] ss:$16 sps:$4 sm:$0xff]  }
  0x31   : > { %582 = vmatprep.subr.bf16.mxu1 %v995_v36  ;;  %530 = vmatpush1.bf16.msra.mxu0 %v997_v37  ;;  %v1007_v44 = vld [vmem:[%s1232_s7 + $0xac] ss:$16 sps:$4 sm:$0xff]   ;;  %v1009_v45 = vld [vmem:[%s1232_s7 + $0xa0] ss:$16 sps:$4 sm:$0xff]   ;;  %v1010_v46 = vld [vmem:[%s1232_s7 + $0xa8] ss:$16 sps:$4 sm:$0xff]  }
  0x32   : > { %583 = vmatpush1.bf16.msra.mxu1 %v998_v38  ;;  %531 = vmatprep.subr.bf16.mxu0 %v999_v39  ;;  %v1011_v47 = vld [vmem:[%s1232_s7 + $0x84] ss:$16 sps:$4 sm:$0xff]   ;;  %v1013_v48 = vld [vmem:[%s1232_s7 + $0x8c] ss:$16 sps:$4 sm:$0xff]   ;;  %v1015_v49 = vld [vmem:[%s1232_s7 + $0x80] ss:$16 sps:$4 sm:$0xff]  }
  0x33   : > { %584 = vmatprep.subr.bf16.mxu1 %v1001_v40  ;;  %v1016_v50 = vld [vmem:[%s1232_s7 + $0x88] ss:$16 sps:$4 sm:$0xff]   ;;  %v1017_v51 = vld [vmem:[%s1232_s7 + $0x64] ss:$16 sps:$4 sm:$0xff]   ;;  %v1019_v52 = vld [vmem:[%s1232_s7 + $0x6c] ss:$16 sps:$4 sm:$0xff]   ;;  %702 = vperm.xlu1 %992, %v688_v61  }
  0x34   : > { %697 = vperm.xlu0 %991, %v687_v35   ;;  %v1021_v53 = vld [vmem:[%s1232_s7 + $0x60] ss:$16 sps:$4 sm:$0xff]   ;;  %v1022_v54 = vld [vmem:[%s1232_s7 + $0x68] ss:$16 sps:$4 sm:$0xff]   ;;  %v1023_v55 = vld [vmem:[%s1232_s7 + $0x44] ss:$16 sps:$4 sm:$0xff]  }
  0x35   : > { %532 = vmatpush1.bf16.msra.mxu0 %v1003_v41  ;;  %v1025_v56 = vld [vmem:[%s1232_s7 + $0x4c] ss:$16 sps:$4 sm:$0xff]   ;;  %v1027_v57 = vld [vmem:[%s1232_s7 + $0x40] ss:$16 sps:$4 sm:$0xff]   ;;  %v1028_v58 = vld [vmem:[%s1232_s7 + $0x48] ss:$16 sps:$4 sm:$0xff]  }
  0x36   : > { %585 = vmatpush1.bf16.msra.mxu1 %v1004_v42  ;;  %533 = vmatprep.subr.bf16.mxu0 %v1005_v43  ;;  %v1029_v59 = vld [vmem:[%s1232_s7 + $0x24] ss:$16 sps:$4 sm:$0xff]   ;;  %v1031_v60 = vld [vmem:[%s1232_s7 + $0x2c] ss:$16 sps:$4 sm:$0xff]   ;;  %v1033_v63 = vld [vmem:[%s1232_s7 + $0x20] ss:$16 sps:$4 sm:$0xff]  }
  0x37   : > { %586 = vmatprep.subr.bf16.mxu1 %v1007_v44  ;;  %v689_v62 = vld [vmem:[%s1342_s2 + $0x18] sm:$0xff]  ;;  %v1035_v1 = vld [vmem:[%s1232_s7 + $0x4] ss:$16 sps:$4 sm:$0xff]   ;;  %v1039_v3 = vld [vmem:[%s1232_s7] ss:$16 sps:$4 sm:$0xff]  }
  0x38   : > { %v1034_v0 = vld [vmem:[%s1232_s7 + $0x28] ss:$16 sps:$4 sm:$0xff]   ;;  %v1037_v2 = vld [vmem:[%s1232_s7 + $0xc] ss:$16 sps:$4 sm:$0xff]   ;;  %707 = vperm.xlu1 %992, %v689_v62   ;;  %v1041_v5 = vld [vmem:[%s1340_s0] sm:$0xff]  }
  0x39   : > { %534 = vmatpush1.bf16.msra.mxu0 %v1009_v45  ;;  %v1040_v4 = vld [vmem:[%s1232_s7 + $0x8] ss:$16 sps:$4 sm:$0xff]  }
  0x3a   : > { %587 = vmatpush1.bf16.msra.mxu1 %v1010_v46  ;;  %535 = vmatprep.subr.bf16.mxu0 %v1011_v47  ;;  %v1042_v6 = vld [vmem:[%s1340_s0 + $0x8] sm:$0xff]  }
  0x3b   : > { %588 = vmatprep.subr.bf16.mxu1 %v1013_v48 }
  0x3d   : > { %536 = vmatpush1.bf16.msra.mxu0 %v1015_v49 }
  0x3e   : > { %589 = vmatpush1.bf16.msra.mxu1 %v1016_v50  ;;  %537 = vmatprep.subr.bf16.mxu0 %v1017_v51 }
  0x3f   : > { %590 = vmatprep.subr.bf16.mxu1 %v1019_v52 }
  0x41   : > { %538 = vmatpush1.bf16.msra.mxu0 %v1021_v53 }
  0x42   : > { %591 = vmatpush1.bf16.msra.mxu1 %v1022_v54  ;;  %539 = vmatprep.subr.bf16.mxu0 %v1023_v55 }
  0x43   : > { %592 = vmatprep.subr.bf16.mxu1 %v1025_v56 }
  0x45   : > { %540 = vmatpush1.bf16.msra.mxu0 %v1027_v57 }
  0x46   : > { %593 = vmatpush1.bf16.msra.mxu1 %v1028_v58  ;;  %541 = vmatprep.subr.bf16.mxu0 %v1029_v59 }
  0x47   : > { %594 = vmatprep.subr.bf16.mxu1 %v1031_v60 }
  0x49   : > { %542 = vmatpush1.bf16.msra.mxu0 %v1033_v63 }
  0x4a   : > { %595 = vmatpush1.bf16.msra.mxu1 %v1034_v0  ;;  %543 = vmatprep.subr.bf16.mxu0 %v1035_v1 }
  0x4b   : > { %596 = vmatprep.subr.bf16.mxu1 %v1037_v2 }
  0x4d   : > { %544 = vmatpush1.bf16.msra.mxu0 %v1039_v3 }
  0x4e   : > { %597 = vmatpush1.bf16.msra.mxu1 %v1040_v4 }
  0x50   : > { %562 = vmatmul.mubr.bf16.vlgmr.msra.gmra.mxu0 %v1041_v5 }
  0x51   : > { %615 = vmatmul.mubr.bf16.vlgmr.msra.gmra.mxu1 %v1041_v5  ;;  %571 = vmatprep.mubr.bf16.mxu0 %v1083_v32 }
  0x52   : > { %624 = vmatprep.mubr.bf16.mxu1 %v1083_v32 }
  0x58   : > { %572 = vmatmul.mubr.bf16.gmra.mxu0 %v1042_v6 }
  0x59   : > { %625 = vmatmul.mubr.bf16.gmra.mxu1 %v1042_v6 }
  0xab   : > { %v693_v7 = vpop.permute.xlu0 %692 }
  0xae   : > { %v703_v25 = vpop.permute.xlu1 %702 }
  0xaf   : > { %v698_v12 = vpop.permute.xlu0 %697 }
  0xb3   : > { %v708_v42 = vpop.permute.xlu1 %707 }
 0x110   : > { %v563_v8 = vpop.f32.mrf.mxu0 }
 0x111   : > { %v616_v9 = vpop.f32.mrf.mxu1  ;;  %v710_v10 = vadd.f32 %v693_v7, %v563_v8 }
 0x112   : > { %v712_v11 = vadd.f32 %v693_v7, %v616_v9  ;;  %v565_v13 = vpop.f32.mrf.mxu0 }
 0x113   : > { %v618_v14 = vpop.f32.mrf.mxu1  ;;  %v726_v15 = vmax.f32 %v710_v10, 0.0  ;;  %v711_v17 = vadd.f32 %v693_v7, %v565_v13 }
 0x114   : > { %v728_v16 = vmax.f32 %v712_v11, 0.0  ;;  %v713_v18 = vadd.f32 %v693_v7, %v618_v14  ;;  %v567_v19 = vpop.f32.mrf.mxu0 }
 0x115   : > { %v620_v20 = vpop.f32.mrf.mxu1  ;;  %742 = vst [vmem:[%s1285_s27] sm:$0xff] %v726_v15  ;;  %v727_v21 = vmax.f32 %v711_v17, 0.0  ;;  %v714_v23 = vadd.f32 %v698_v12, %v567_v19 }
 0x116   : > { %744 = vst [vmem:[%s1285_s27 + $0x10] sm:$0xff] %v728_v16  ;;  %v729_v22 = vmax.f32 %v713_v18, 0.0  ;;  %v716_v24 = vadd.f32 %v698_v12, %v620_v20  ;;  %v569_v26 = vpop.f32.mrf.mxu0 }
 0x117   : > { %v622_v27 = vpop.f32.mrf.mxu1  ;;  %743 = vst [vmem:[%s1285_s27 + $0x8] sm:$0xff] %v727_v21  ;;  %v730_v28 = vmax.f32 %v714_v23, 0.0  ;;  %v715_v30 = vadd.f32 %v698_v12, %v569_v26 }
 0x118   : > { %745 = vst [vmem:[%s1285_s27 + $0x18] sm:$0xff] %v729_v22  ;;  %v732_v29 = vmax.f32 %v716_v24, 0.0  ;;  %v717_v31 = vadd.f32 %v698_v12, %v622_v27  ;;  %v573_v32 = vpop.f32.mrf.mxu0 }
 0x119   : > { %v626_v33 = vpop.f32.mrf.mxu1  ;;  %746 = vst [vmem:[%s1285_s27 + $0x20] sm:$0xff] %v730_v28  ;;  %v731_v34 = vmax.f32 %v715_v30, 0.0  ;;  %v718_v36 = vadd.f32 %v703_v25, %v573_v32 }
 0x11a   : > { %748 = vst [vmem:[%s1285_s27 + $0x30] sm:$0xff] %v732_v29  ;;  %v733_v35 = vmax.f32 %v717_v31, 0.0  ;;  %v720_v37 = vadd.f32 %v703_v25, %v626_v33  ;;  %v575_v38 = vpop.f32.mrf.mxu0 }
 0x11b   : > { %v628_v39 = vpop.f32.mrf.mxu1  ;;  %747 = vst [vmem:[%s1285_s27 + $0x28] sm:$0xff] %v731_v34  ;;  %v734_v40 = vmax.f32 %v718_v36, 0.0  ;;  %v719_v43 = vadd.f32 %v703_v25, %v575_v38 }
 0x11c   : > { %749 = vst [vmem:[%s1285_s27 + $0x38] sm:$0xff] %v733_v35  ;;  %v736_v41 = vmax.f32 %v720_v37, 0.0  ;;  %v721_v44 = vadd.f32 %v703_v25, %v628_v39  ;;  %v577_v45 = vpop.f32.mrf.mxu0  ;;  %v780_v59 = vld [vmem:[%s1285_s27] sm:$0xff] (%p1139_p6) }
 0x11d   : > { %v630_v46 = vpop.f32.mrf.mxu1  ;;  %750 = vst [vmem:[%s1285_s27 + $0x40] sm:$0xff] %v734_v40  ;;  %v735_v47 = vmax.f32 %v719_v43, 0.0  ;;  %v722_v49 = vadd.f32 %v708_v42, %v577_v45  ;;  %v784_v61 = vld [vmem:[%s1285_s27 + $0x10] sm:$0xff] (%p1139_p6)  ;;  %781 = vst [vmem:[%s767_s30] sm:$0xff] (%p1139_p6), %v780_v59 }
 0x11e   : > { %752 = vst [vmem:[%s1285_s27 + $0x50] sm:$0xff] %v736_v41  ;;  %v737_v48 = vmax.f32 %v721_v44, 0.0  ;;  %v724_v50 = vadd.f32 %v708_v42, %v630_v46  ;;  %v579_v51 = vpop.f32.mrf.mxu0  ;;  %v782_v60 = vld [vmem:[%s1285_s27 + $0x8] sm:$0xff] (%p1139_p6)  ;;  %785 = vst [vmem:[%s767_s30 + $0x10] sm:$0xff] (%p1139_p6), %v784_v61 }
 0x11f   : > { %v632_v52 = vpop.f32.mrf.mxu1  ;;  %751 = vst [vmem:[%s1285_s27 + $0x48] sm:$0xff] %v735_v47  ;;  %v738_v53 = vmax.f32 %v722_v49, 0.0  ;;  %v723_v55 = vadd.f32 %v708_v42, %v579_v51  ;;  %v786_v62 = vld [vmem:[%s1285_s27 + $0x18] sm:$0xff] (%p1139_p6)  ;;  %783 = vst [vmem:[%s767_s30 + $0x8] sm:$0xff] (%p1139_p6), %v782_v60 }
 0x120   : > { %753 = vst [vmem:[%s1285_s27 + $0x58] sm:$0xff] %v737_v48  ;;  %v740_v54 = vmax.f32 %v724_v50, 0.0  ;;  %v725_v56 = vadd.f32 %v708_v42, %v632_v52  ;;  %764 = sbr.rel (!%p1139_p6) target bundleno = 301 (0x12d), region = 67  ;;  %v788_v63 = vld [vmem:[%s1285_s27 + $0x20] sm:$0xff] (%p1139_p6)  ;;  %787 = vst [vmem:[%s767_s30 + $0x18] sm:$0xff] (%p1139_p6), %v786_v62 }
 0x121   : > { %754 = vst [vmem:[%s1285_s27 + $0x60] sm:$0xff] %v738_v53  ;;  %v739_v57 = vmax.f32 %v723_v55, 0.0  ;;  %789 = vst [vmem:[%s767_s30 + $0x40] sm:$0xff] (%p1139_p6), %v788_v63  ;;  %v792_v1 = vld [vmem:[%s1285_s27 + $0x30] sm:$0xff] (%p1139_p6) }
 0x122   : > { %756 = vst [vmem:[%s1285_s27 + $0x70] sm:$0xff] %v740_v54  ;;  %v741_v58 = vmax.f32 %v725_v56, 0.0  ;;  %v790_v0 = vld [vmem:[%s1285_s27 + $0x28] sm:$0xff] (%p1139_p6)  ;;  %793 = vst [vmem:[%s767_s30 + $0x50] sm:$0xff] (%p1139_p6), %v792_v1 }
 0x123   : > { %755 = vst [vmem:[%s1285_s27 + $0x68] sm:$0xff] %v739_v57  ;;  %791 = vst [vmem:[%s767_s30 + $0x48] sm:$0xff] (%p1139_p6), %v790_v0  ;;  %v794_v2 = vld [vmem:[%s1285_s27 + $0x38] sm:$0xff] (%p1139_p6) }
 0x124   : > { %757 = vst [vmem:[%s1285_s27 + $0x78] sm:$0xff] %v741_v58  ;;  %v796_v3 = vld [vmem:[%s1285_s27 + $0x40] sm:$0xff] (%p1139_p6)  ;;  %795 = vst [vmem:[%s767_s30 + $0x58] sm:$0xff] (%p1139_p6), %v794_v2 }
 0x125   : > { %797 = vst [vmem:[%s767_s30 + $0x80] sm:$0xff] %v796_v3  ;;  %v800_v5 = vld [vmem:[%s1285_s27 + $0x50] sm:$0xff] }
 0x126   : > { %v798_v4 = vld [vmem:[%s1285_s27 + $0x48] sm:$0xff]  ;;  %801 = vst [vmem:[%s767_s30 + $0x90] sm:$0xff] %v800_v5 }
 0x127   : > { %v802_v6 = vld [vmem:[%s1285_s27 + $0x58] sm:$0xff]  ;;  %799 = vst [vmem:[%s767_s30 + $0x88] sm:$0xff] %v798_v4 }
 0x128   : > { %803 = vst [vmem:[%s767_s30 + $0x98] sm:$0xff] %v802_v6  ;;  %v804_v7 = vld [vmem:[%s1285_s27 + $0x60] sm:$0xff] }
 0x129   : > { %v808_v9 = vld [vmem:[%s1285_s27 + $0x70] sm:$0xff]  ;;  %805 = vst [vmem:[%s767_s30 + $0xc0] sm:$0xff] %v804_v7 }
 0x12a   : > { %v806_v8 = vld [vmem:[%s1285_s27 + $0x68] sm:$0xff]  ;;  %809 = vst [vmem:[%s767_s30 + $0xd0] sm:$0xff] %v808_v9 }
 0x12b   : > { %807 = vst [vmem:[%s767_s30 + $0xc8] sm:$0xff] %v806_v8  ;;  %v810_v10 = vld [vmem:[%s1285_s27 + $0x78] sm:$0xff] }
 0x12c   : > { %811 = vst [vmem:[%s767_s30 + $0xd8] sm:$0xff] %v810_v10 }
 0x12d PF: > { %s13_s16 = sadd.s32 1, %s1081_s16   ;;  %s1345_s12 = smov %s1069_s13 }
 0x12e   : > { %p10_p11 = scmp.ge.s32.totalorder %s13_s16, 4   ;;  %s1346_s13 = smov %s1144_s22 }
 0x12f   : > { %s1347_s14 = smov %s1077_s15  ;;  %s1348_s15 = smov %s1350_s17 }
 0x130   :  { %12 = sbr.rel (!%p10_p11) target bundleno = 3 (0x3), region = 124 }

// kernel: csnet_forward.15
= control target key start
LH: loop header
LB: loop body
LE: loop exit
PB: predicated region body
PF: predicated region fallthrough
CT: control target
= control target key end

     0   :  { %s1011_s15 = smov 0   ;;  %s1013_s16 = smov 0   ;;  %s1229_s0 = inlined_call_operand.vmem [shape: bf16[8,1664], index: 0, kind: input, shape index: {}]   ;;  %s1230_s1 = inlined_call_operand.vmem [shape: bf16[1664,1024], index: 1, kind: input, shape index: {}]   ;;  %s1231_s2 = inlined_call_operand.vmem [shape: f32[8,1], index: 2, kind: input, shape index: {}]   ;;  %s1232_s3 = inlined_call_operand.vmem [shape: f32[8,1024], index: 3, kind: input, shape index: {}]   ;;  %s1233_s4 = inlined_call_operand.vmem [shape: f32[8,1024], index: 4, kind: output, shape index: {}]  }
   0x1   :  { %s1015_s17 = smov 0   ;;  %s1017_s18 = smov 0  }
   0x2   :  { %s1019_s19 = smov 0   ;;  %s1021_s20 = smov 0  }
   0x3   :  { %s1023_s21 = smov 0  }
   0x4 LB: > { %s23_s22 = sadd.s32 1, %s973_s19  ;;  %s26_s23 = sadd.s32 1, %s977_s20  ;;  %s981_s21 = sphi %s1023_s21, %s14_s21   ;;  %s977_s20 = sphi %s1021_s20, %s1239_s20   ;;  %s973_s19 = sphi %s1019_s19, %s1238_s19   ;;  %s969_s18 = sphi %s1017_s18, %s1237_s18   ;;  %s965_s17 = sphi %s1015_s17, %s1236_s17   ;;  %s961_s16 = sphi %s1013_s16, %s1235_s16   ;;  %s957_s15 = sphi %s1011_s15, %s1234_s15  }
   0x5   : > { %p24_p0 = scmp.ge.s32.totalorder %s23_s22, 13  ;;  %p68_p1 = scmp.ne.s32.totalorder %s961_s16, %s957_s15 }
   0x6   : > { %p69_p2 = scmp.eq.s32.totalorder %s981_s21, 0  ;;  %s61_s27 = sadd.s32 1, %s961_s16 }
   0x7   : > { %s1241_s22 = smov (%p24_p0, %s23_s22), 0  ;;  %s1243_s23 = smov (!%p24_p0, %s26_s23), %s977_s20 }
   0x8   : > { %p70_p3 = por %p69_p2, %p68_p1  ;;  %p28_p4 = scmp.ge.s32.totalorder %s1243_s23, 2 }
   0x9   : > { %s56_s24 = ssub.s32 %s973_s19, %s1241_s22  ;;  %p769_p6 = scmp.ge.s32.totalorder %s981_s21, 26 }
   0xa   : > { %s1245_s23 = smov (%p28_p4, %s1243_s23), 0 }
   0xb   : > { %s57_s25 = ssub.s32 %s977_s20, %s1245_s23  ;;  %170 = sbr.rel (%p769_p6) target bundleno = 39 (0x27), region = 20 }
   0xc   : > { %s58_s26 = sor.u32 %s57_s25, %s56_s24 }
   0xd   : > { %p59_p5 = scmp.eq.s32.totalorder %s58_s26, 0 }
   0xf   : > { %s1062_s28 = scalar_select %p59_p5, %s961_s16, %s61_s27  }
  0x10   : > { %180 = sbr.rel (!%p70_p3) target bundleno = 39 (0x27), region = 28  ;;  %s182_s29 = sand.u32 (%p70_p3), 1, %s961_s16  }
  0x11   : > { %s772_s30 = sshll.u32 (%p70_p3), %s977_s20, 2  ;;  %s770_s5 = sshll.u32 (%p70_p3), %s182_s29, 8 }
  0x12   : > { %s818_s6 = sshll.u32 (%p70_p3), %s973_s19, 7  ;;  %s1076_s12 = scalar_lea.vmem (%p70_p3), [#allocation3], %s770_s5 }
  0x13   : > { %s188_s7 = sadd.s32 (%p70_p3), %s818_s6, %s772_s30 }
  0x14   : > { %s774_s8 = sshll.u32 (%p70_p3), %s188_s7, 2 }
  0x15   : > { %s1071_s11 = scalar_lea.vmem %s1230_s1, %s774_s8 }
  0x16   : > { %v203_v0 = vld [vmem:[%s1071_s11] sm:$0xff]  ;;  %v205_v1 = vld [vmem:[%s1071_s11 + $0x8] sm:$0xff] }
  0x17   : > { %v207_v2 = vld [vmem:[%s1071_s11 + $0x20] sm:$0xff]  ;;  %204 = vst [vmem:[%s1076_s12] sm:$0xff] %v203_v0  ;;  %206 = vst [vmem:[%s1076_s12 + $0x8] sm:$0xff] %v205_v1  ;;  %v209_v3 = vld [vmem:[%s1071_s11 + $0x28] sm:$0xff] }
  0x18   : > { %208 = vst [vmem:[%s1076_s12 + $0x10] sm:$0xff] %v207_v2  ;;  %v211_v4 = vld [vmem:[%s1071_s11 + $0x40] sm:$0xff]  ;;  %v213_v5 = vld [vmem:[%s1071_s11 + $0x48] sm:$0xff]  ;;  %210 = vst [vmem:[%s1076_s12 + $0x18] sm:$0xff] %v209_v3 }
  0x19   : > { %212 = vst [vmem:[%s1076_s12 + $0x20] sm:$0xff] %v211_v4  ;;  %214 = vst [vmem:[%s1076_s12 + $0x28] sm:$0xff] %v213_v5  ;;  %v215_v6 = vld [vmem:[%s1071_s11 + $0x60] sm:$0xff]  ;;  %v217_v7 = vld [vmem:[%s1071_s11 + $0x68] sm:$0xff] }
  0x1a   : > { %v219_v8 = vld [vmem:[%s1071_s11 + $0x80] sm:$0xff]  ;;  %216 = vst [vmem:[%s1076_s12 + $0x30] sm:$0xff] %v215_v6  ;;  %218 = vst [vmem:[%s1076_s12 + $0x38] sm:$0xff] %v217_v7  ;;  %v221_v9 = vld [vmem:[%s1071_s11 + $0x88] sm:$0xff] }
  0x1b   : > { %220 = vst [vmem:[%s1076_s12 + $0x40] sm:$0xff] %v219_v8  ;;  %v223_v10 = vld [vmem:[%s1071_s11 + $0xa0] sm:$0xff]  ;;  %v225_v11 = vld [vmem:[%s1071_s11 + $0xa8] sm:$0xff]  ;;  %222 = vst [vmem:[%s1076_s12 + $0x48] sm:$0xff] %v221_v9 }
  0x1c   : > { %224 = vst [vmem:[%s1076_s12 + $0x50] sm:$0xff] %v223_v10  ;;  %226 = vst [vmem:[%s1076_s12 + $0x58] sm:$0xff] %v225_v11  ;;  %v227_v12 = vld [vmem:[%s1071_s11 + $0xc0] sm:$0xff]  ;;  %v229_v13 = vld [vmem:[%s1071_s11 + $0xc8] sm:$0xff] }
  0x1d   : > { %v231_v14 = vld [vmem:[%s1071_s11 + $0xe0] sm:$0xff]  ;;  %228 = vst [vmem:[%s1076_s12 + $0x60] sm:$0xff] %v227_v12  ;;  %230 = vst [vmem:[%s1076_s12 + $0x68] sm:$0xff] %v229_v13  ;;  %v233_v15 = vld [vmem:[%s1071_s11 + $0xe8] sm:$0xff] }
  0x1e   : > { %232 = vst [vmem:[%s1076_s12 + $0x70] sm:$0xff] %v231_v14  ;;  %v235_v16 = vld [vmem:[%s1071_s11 + $0x100] sm:$0xff]  ;;  %v237_v17 = vld [vmem:[%s1071_s11 + $0x108] sm:$0xff]  ;;  %234 = vst [vmem:[%s1076_s12 + $0x78] sm:$0xff] %v233_v15 }
  0x1f   : > { %236 = vst [vmem:[%s1076_s12 + $0x80] sm:$0xff] %v235_v16  ;;  %238 = vst [vmem:[%s1076_s12 + $0x88] sm:$0xff] %v237_v17  ;;  %v239_v18 = vld [vmem:[%s1071_s11 + $0x120] sm:$0xff]  ;;  %v241_v19 = vld [vmem:[%s1071_s11 + $0x128] sm:$0xff] }
  0x20   : > { %v243_v20 = vld [vmem:[%s1071_s11 + $0x140] sm:$0xff]  ;;  %240 = vst [vmem:[%s1076_s12 + $0x90] sm:$0xff] %v239_v18  ;;  %242 = vst [vmem:[%s1076_s12 + $0x98] sm:$0xff] %v241_v19  ;;  %v245_v21 = vld [vmem:[%s1071_s11 + $0x148] sm:$0xff] }
  0x21   : > { %244 = vst [vmem:[%s1076_s12 + $0xa0] sm:$0xff] %v243_v20  ;;  %v247_v22 = vld [vmem:[%s1071_s11 + $0x160] sm:$0xff]  ;;  %v249_v23 = vld [vmem:[%s1071_s11 + $0x168] sm:$0xff]  ;;  %246 = vst [vmem:[%s1076_s12 + $0xa8] sm:$0xff] %v245_v21 }
  0x22   : > { %248 = vst [vmem:[%s1076_s12 + $0xb0] sm:$0xff] %v247_v22  ;;  %250 = vst [vmem:[%s1076_s12 + $0xb8] sm:$0xff] %v249_v23  ;;  %v251_v24 = vld [vmem:[%s1071_s11 + $0x180] sm:$0xff]  ;;  %v253_v25 = vld [vmem:[%s1071_s11 + $0x188] sm:$0xff] }
  0x23   : > { %v255_v26 = vld [vmem:[%s1071_s11 + $0x1a0] sm:$0xff]  ;;  %252 = vst [vmem:[%s1076_s12 + $0xc0] sm:$0xff] %v251_v24  ;;  %254 = vst [vmem:[%s1076_s12 + $0xc8] sm:$0xff] %v253_v25  ;;  %v257_v27 = vld [vmem:[%s1071_s11 + $0x1a8] sm:$0xff] }
  0x24   : > { %256 = vst [vmem:[%s1076_s12 + $0xd0] sm:$0xff] %v255_v26  ;;  %v259_v28 = vld [vmem:[%s1071_s11 + $0x1c0] sm:$0xff]  ;;  %v261_v29 = vld [vmem:[%s1071_s11 + $0x1c8] sm:$0xff]  ;;  %258 = vst [vmem:[%s1076_s12 + $0xd8] sm:$0xff] %v257_v27 }
  0x25   : > { %260 = vst [vmem:[%s1076_s12 + $0xe0] sm:$0xff] %v259_v28  ;;  %262 = vst [vmem:[%s1076_s12 + $0xe8] sm:$0xff] %v261_v29  ;;  %v263_v30 = vld [vmem:[%s1071_s11 + $0x1e0] sm:$0xff]  ;;  %v265_v31 = vld [vmem:[%s1071_s11 + $0x1e8] sm:$0xff] }
  0x26   : > { %264 = vst [vmem:[%s1076_s12 + $0xf0] sm:$0xff] %v263_v30  ;;  %266 = vst [vmem:[%s1076_s12 + $0xf8] sm:$0xff] %v265_v31 }
  0x27 PF: > { %p775_p7 = scmp.ge.s32.totalorder %s981_s21, 1  ;;  %p280_p8 = scmp.lt.s32.totalorder %s981_s21, 27 }
  0x29   : > { %p281_p9 = pnand %p775_p7, %p280_p8 }
  0x2a   : > { %s287_s13 = sand.u32 (!%p281_p9), 1, %s957_s15   ;;  %p321_p10 = scmp.lt.s32.totalorder (!%p281_p9), %s965_s17, 12 }
  0x2b   : > { %284 = sbr.rel (%p281_p9) target bundleno = 422 (0x1a6), region = 55  ;;  %s776_s14 = sshll.u32 (!%p281_p9), %s287_s13, 8 }
  0x2c   : > { %s778_s24 = sshll.u32 (!%p281_p9), %s969_s18, 2  ;;  %s1160_s18 = scalar_lea.vmem (!%p281_p9), [#allocation3], %s776_s14 }
  0x2d   : > { %p328_p11 = scmp.lt.s32.totalorder (!%p281_p9), %s778_s24, 7  ;;  %p782_p12 = scmp.ne.s32.totalorder (!%p281_p9), %s965_s17, 0 }
  0x30   : > { %s322_s25 = scalar_select %p321_p10, %s965_s17, 12 }
  0x31   : > { %s1247_s24 = smov (!%p328_p11, %s778_s24), 7  ;;  %343 = sbr.rel (%p782_p12) target bundleno = 57 (0x39), region = 63 }
  0x32   : > { %s777_s26 = sshll.u32 %s322_s25, 2  ;;  %s779_s5 = sshll.u32 %s1247_s24, 3 }
  0x33   : > { %s1148_s30 = scalar_lea.vmem %s1229_s0, %s777_s26  ;;  %s1153_s8 = scalar_lea.vmem %s1232_s3, %s779_s5 }
  0x34   : > { %s1158_s10 = scalar_lea.vmem %s1233_s4, %s779_s5 }
  0x36   : > { %v983_v32 = vmov 0.0  }
  0x37   : > { %344 = vst [vmem:[#allocation2 + $0x10] sm:$0xff] %v983_v32  ;;  %345 = vst [vmem:[#allocation2] sm:$0xff] %v983_v32 }
  0x38   : > { %346 = vst [vmem:[#allocation2 + $0x18] sm:$0xff] %v983_v32  ;;  %347 = vst [vmem:[#allocation2 + $0x8] sm:$0xff] %v983_v32 }
  0x39 PF: > { %v878_v33 = vld [vmem:[%s1160_s18 + $0xe4] ss:$16 sps:$4 sm:$0xff]   ;;  %v880_v34 = vld [vmem:[%s1160_s18 + $0xec] ss:$16 sps:$4 sm:$0xff]   ;;  %v984_v35 = vmov 0   ;;  %p815_p13 = scmp.ne.s32.totalorder %s965_s17, 12 }
  0x3a   : > { %577 = vmatprep.mubr.bf16.mxu0 %v984_v35  ;;  %618 = vmatprep.mubr.bf16.mxu1 %v984_v35  ;;  %v882_v36 = vld [vmem:[%s1160_s18 + $0xe0] ss:$16 sps:$4 sm:$0xff]   ;;  %v883_v37 = vld [vmem:[%s1160_s18 + $0xe8] ss:$16 sps:$4 sm:$0xff]   ;;  %v884_v38 = vld [vmem:[%s1160_s18 + $0xc4] ss:$16 sps:$4 sm:$0xff]  }
  0x3b   : > { %545 = vmatprep.subr.bf16.mxu0 %v878_v33  ;;  %586 = vmatprep.subr.bf16.mxu1 %v880_v34  ;;  %v886_v39 = vld [vmem:[%s1160_s18 + $0xcc] ss:$16 sps:$4 sm:$0xff]   ;;  %v888_v40 = vld [vmem:[%s1160_s18 + $0xc0] ss:$16 sps:$4 sm:$0xff]   ;;  %v889_v41 = vld [vmem:[%s1160_s18 + $0xc8] ss:$16 sps:$4 sm:$0xff]  }
  0x3c   : > { %546 = vmatpush1.bf16.msra.mxu0 %v882_v36  ;;  %587 = vmatpush1.bf16.msra.mxu1 %v883_v37  ;;  %v890_v42 = vld [vmem:[%s1160_s18 + $0xa4] ss:$16 sps:$4 sm:$0xff]   ;;  %v892_v43 = vld [vmem:[%s1160_s18 + $0xac] ss:$16 sps:$4 sm:$0xff]   ;;  %v894_v44 = vld [vmem:[%s1160_s18 + $0xa0] ss:$16 sps:$4 sm:$0xff]  }
  0x3d   : > { %547 = vmatprep.subr.bf16.mxu0 %v884_v38  ;;  %588 = vmatprep.subr.bf16.mxu1 %v886_v39  ;;  %v895_v45 = vld [vmem:[%s1160_s18 + $0xa8] ss:$16 sps:$4 sm:$0xff]   ;;  %v896_v46 = vld [vmem:[%s1160_s18 + $0x84] ss:$16 sps:$4 sm:$0xff]   ;;  %v898_v47 = vld [vmem:[%s1160_s18 + $0x8c] ss:$16 sps:$4 sm:$0xff]  }
  0x3e   : > { %v900_v48 = vld [vmem:[%s1160_s18 + $0x80] ss:$16 sps:$4 sm:$0xff]   ;;  %v901_v49 = vld [vmem:[%s1160_s18 + $0x88] ss:$16 sps:$4 sm:$0xff]   ;;  %v902_v50 = vld [vmem:[%s1160_s18 + $0x64] ss:$16 sps:$4 sm:$0xff]  }
  0x3f   : > { %v904_v51 = vld [vmem:[%s1160_s18 + $0x6c] ss:$16 sps:$4 sm:$0xff]   ;;  %v906_v52 = vld [vmem:[%s1160_s18 + $0x60] ss:$16 sps:$4 sm:$0xff]   ;;  %v907_v53 = vld [vmem:[%s1160_s18 + $0x68] ss:$16 sps:$4 sm:$0xff]  }
  0x40   : > { %548 = vmatpush1.bf16.msra.mxu0 %v888_v40  ;;  %589 = vmatpush1.bf16.msra.mxu1 %v889_v41  ;;  %v908_v54 = vld [vmem:[%s1160_s18 + $0x44] ss:$16 sps:$4 sm:$0xff]   ;;  %v910_v55 = vld [vmem:[%s1160_s18 + $0x4c] ss:$16 sps:$4 sm:$0xff]   ;;  %v912_v56 = vld [vmem:[%s1160_s18 + $0x40] ss:$16 sps:$4 sm:$0xff]  }
  0x41   : > { %549 = vmatprep.subr.bf16.mxu0 %v890_v42  ;;  %590 = vmatprep.subr.bf16.mxu1 %v892_v43  ;;  %v913_v57 = vld [vmem:[%s1160_s18 + $0x48] ss:$16 sps:$4 sm:$0xff]   ;;  %v914_v58 = vld [vmem:[%s1160_s18 + $0x24] ss:$16 sps:$4 sm:$0xff]   ;;  %v916_v59 = vld [vmem:[%s1160_s18 + $0x2c] ss:$16 sps:$4 sm:$0xff]  }
  0x42   : > { %v918_v60 = vld [vmem:[%s1160_s18 + $0x20] ss:$16 sps:$4 sm:$0xff]   ;;  %v919_v61 = vld [vmem:[%s1160_s18 + $0x28] ss:$16 sps:$4 sm:$0xff]   ;;  %v920_v62 = vld [vmem:[%s1160_s18 + $0x4] ss:$16 sps:$4 sm:$0xff]  }
  0x43   : > { %v922_v63 = vld [vmem:[%s1160_s18 + $0xc] ss:$16 sps:$4 sm:$0xff]   ;;  %v924_v0 = vld [vmem:[%s1160_s18] ss:$16 sps:$4 sm:$0xff]   ;;  %v925_v1 = vld [vmem:[%s1160_s18 + $0x8] ss:$16 sps:$4 sm:$0xff]  }
  0x44   : > { %550 = vmatpush1.bf16.msra.mxu0 %v894_v44  ;;  %591 = vmatpush1.bf16.msra.mxu1 %v895_v45  ;;  %v352_v2 = vld [vmem:[%s1148_s30] sm:$0xf]  ;;  %v348_v3 = vld [vmem:[#allocation2 + $0x10] sm:$0xff]  ;;  %v350_v4 = vld [vmem:[#allocation2 + $0x18] sm:$0xff] }
  0x45   : > { %551 = vmatprep.subr.bf16.mxu0 %v896_v46  ;;  %592 = vmatprep.subr.bf16.mxu1 %v898_v47  ;;  %v349_v7 = vld [vmem:[#allocation2] sm:$0xff]  ;;  %v351_v8 = vld [vmem:[#allocation2 + $0x8] sm:$0xff] }
  0x48   : > { %552 = vmatpush1.bf16.msra.mxu0 %v900_v48  ;;  %593 = vmatpush1.bf16.msra.mxu1 %v901_v49 }
  0x49   : > { %553 = vmatprep.subr.bf16.mxu0 %v902_v50  ;;  %594 = vmatprep.subr.bf16.mxu1 %v904_v51 }
  0x4c   : > { %554 = vmatpush1.bf16.msra.mxu0 %v906_v52  ;;  %595 = vmatpush1.bf16.msra.mxu1 %v907_v53 }
  0x4d   : > { %555 = vmatprep.subr.bf16.mxu0 %v908_v54  ;;  %596 = vmatprep.subr.bf16.mxu1 %v910_v55 }
  0x50   : > { %556 = vmatpush1.bf16.msra.mxu0 %v912_v56  ;;  %597 = vmatpush1.bf16.msra.mxu1 %v913_v57 }
  0x51   : > { %557 = vmatprep.subr.bf16.mxu0 %v914_v58  ;;  %598 = vmatprep.subr.bf16.mxu1 %v916_v59 }
  0x54   : > { %558 = vmatpush1.bf16.msra.mxu0 %v918_v60  ;;  %599 = vmatpush1.bf16.msra.mxu1 %v919_v61 }
  0x55   : > { %559 = vmatprep.subr.bf16.mxu0 %v920_v62  ;;  %600 = vmatprep.subr.bf16.mxu1 %v922_v63 }
  0x58   : > { %560 = vmatpush1.bf16.msra.mxu0 %v924_v0  ;;  %601 = vmatpush1.bf16.msra.mxu1 %v925_v1 }
  0x5b   : > { %578 = vmatmul.mubr.bf16.vlgmr.msra.gmra.mxu0 %v352_v2  ;;  %619 = vmatmul.mubr.bf16.vlgmr.msra.gmra.mxu1 %v352_v2 }
 0x11b   : > { %v579_v5 = vpop.f32.mrf.mxu0  ;;  %v620_v6 = vpop.f32.mrf.mxu1 }
 0x11c   : > { %v627_v9 = vadd.f32 %v579_v5, %v348_v3  ;;  %v629_v10 = vadd.f32 %v620_v6, %v350_v4 }
 0x11d   : > { %v581_v11 = vpop.f32.mrf.mxu0  ;;  %v622_v12 = vpop.f32.mrf.mxu1  ;;  %638 = sbr.rel (%p815_p13) target bundleno = 422 (0x1a6), region = 67 }
 0x11e   : > { %631 = vst [vmem:[#allocation2 + $0x10] sm:$0xff] %v627_v9  ;;  %633 = vst [vmem:[#allocation2 + $0x18] sm:$0xff] %v629_v10  ;;  %v628_v13 = vadd.f32 %v581_v11, %v349_v7  ;;  %v630_v14 = vadd.f32 %v622_v12, %v351_v8 }
 0x11f   : > { %v583_v15 = vpop.f32.mrf.mxu0  ;;  %v624_v16 = vpop.f32.mrf.mxu1 }
 0x120   : > { %632 = vst [vmem:[#allocation2] sm:$0xff] %v628_v13  ;;  %634 = vst [vmem:[#allocation2 + $0x8] sm:$0xff] %v630_v14 }
 0x121   : > { %v584_v17 = vpop.f32.mrf.mxu0  ;;  %v625_v18 = vpop.f32.mrf.mxu1 }
 0x122   : > { %v643_v19 = vld [vmem:[%s1231_s2] sm:$0xff]  ;;  %v985_v20 = vmov 0   ;;  %v654_v26 = vld [vmem:[%s1153_s8 + $0x8] sm:$0xff]  ;;  %v655_v31 = vld [vmem:[%s1153_s8 + $0x10] sm:$0xff] }
 0x123   : > { %926 = vset.pattern.permute.xlu0 %v985_v20  ;;  %v653_v25 = vld [vmem:[%s1153_s8] sm:$0xff]  ;;  %v656_v33 = vld [vmem:[%s1153_s8 + $0x18] sm:$0xff] }
 0x124   : > { %646 = vperm.xlu0 %926, %v643_v19  }
 0x125   : > { %v639_v21 = vld [vmem:[#allocation2 + $0x10] sm:$0xff]  ;;  %v641_v23 = vld [vmem:[#allocation2 + $0x18] sm:$0xff] }
 0x127   : > { %v640_v22 = vld [vmem:[#allocation2] sm:$0xff]  ;;  %v642_v24 = vld [vmem:[#allocation2 + $0x8] sm:$0xff] }
 0x19f   : > { %v647_v27 = vpop.permute.xlu0 %646 }
 0x1a0   : > { %v649_v28 = vadd.f32 %v647_v27, %v639_v21  ;;  %v650_v29 = vadd.f32 %v647_v27, %v640_v22  ;;  %v651_v30 = vadd.f32 %v647_v27, %v641_v23  ;;  %v652_v32 = vadd.f32 %v647_v27, %v642_v24 }
 0x1a2   : > { %v657_v34 = vadd.f32 %v653_v25, %v649_v28  ;;  %v658_v35 = vadd.f32 %v654_v26, %v650_v29  ;;  %v659_v36 = vadd.f32 %v655_v31, %v651_v30  ;;  %v660_v37 = vadd.f32 %v656_v33, %v652_v32 }
 0x1a4   : > { %661 = vst [vmem:[%s1158_s10] sm:$0xff] %v657_v34  ;;  %662 = vst [vmem:[%s1158_s10 + $0x8] sm:$0xff] %v658_v35 }
 0x1a5   : > { %663 = vst [vmem:[%s1158_s10 + $0x10] sm:$0xff] %v659_v36  ;;  %664 = vst [vmem:[%s1158_s10 + $0x18] sm:$0xff] %v660_v37 }
 0x1a6 PF: > { %s14_s21 = sadd.s32 1, %s981_s21   ;;  %s1234_s15 = smov %s961_s16 }
 0x1a7   : > { %p11_p0 = scmp.ge.s32.totalorder %s14_s21, 28   ;;  %s1235_s16 = smov %s1062_s28 }
 0x1a8   : > { %s1236_s17 = smov %s973_s19  ;;  %s1237_s18 = smov %s977_s20 }
 0x1a9   : > { %s1238_s19 = smov %s1241_s22  ;;  %s1239_s20 = smov %s1245_s23 }
 0x1aa   :  { %13 = sbr.rel (!%p11_p0) target bundleno = 4 (0x4), region = 108 }

</bundles_post_ra>
